<compile_context>
chip_gen: v6e
topology: v6e:2x2x1
jax: 0.10.0
libtpu: 0.0.40
codegen_flags: <defaults>
</compile_context>

<pallas_src>
import functools

import jax
import jax.numpy as jnp
from jax.experimental import pallas as pl
from jax.experimental.pallas import tpu as pltpu

KSIZE = 3
KK = KSIZE * KSIZE
EPS = 1e-5


def position_jnp(H, W):
    # matches torch `position`: channel 0 = loc_w, channel 1 = loc_h, shape (2,H,W)
    loc_w = jnp.tile(jnp.linspace(-1.0, 1.0, W, dtype=jnp.float32)[None, :], (H, 1))
    loc_h = jnp.tile(jnp.linspace(-1.0, 1.0, H, dtype=jnp.float32)[:, None], (1, W))
    return jnp.stack([loc_w, loc_h], axis=0)


def _shift_right(v):
    # out[..., q] = v[..., q-1] for q >= 1; out[..., 0] is junk (only ever feeds a
    # pad-column lane, which the wrapper discards).
    return jnp.concatenate([v[..., :1], v[..., :-1]], axis=-1)


def _shift_left(v):
    # out[..., q] = v[..., q+1] for q <= n-2; out[..., -1] is junk (pad-column lane).
    return jnp.concatenate([v[..., 1:], v[..., -1:]], axis=-1)


def _tpu_vmem_capacity_bytes():
    try:
        return max(int(pltpu.get_tpu_info().vmem_capacity_bytes), 32 << 20)
    except Exception:
        return 128 << 20


def _pick_row_tile(H, Wp, per_step_bytes, budget):
    """Largest row-tile TH dividing H with TH*Wp lane-legal ((8,128) rule) that
    fits `budget`; falls back to the smallest legal divisor."""
    divisors = [d for d in range(H, 0, -1) if H % d == 0]
    legal = [d for d in divisors if d == H or (d * Wp) % 128 == 0]
    for th in legal:
        if per_step_bytes(th * Wp) <= budget:
            return th
    # TODO(synk): if even the smallest legal tile misses the budget we still run
    # (correctness first); Mosaic may spill at very large C_in * image sizes.
    return legal[-1]


def gam0_kernel(b0_ref, b1_ref, b2_ref, hp_ref,
                w21_ref, w2_ref, s1d_ref, cb1_ref, wc1d_ref,
                wc1pa_ref, wc1pb_ref, s2_ref, t2_ref, wc2_ref, bc2_ref,
                w3_ref, b3_ref, out_ref, *, rel, approx_recip):
    # Hoist all loop-invariant reads once (JAX does not CSE re-reads/broadcasts).
    xb0 = b0_ref[0]                     # (C_in, TLB) row band a=0 (neighbour row -1)
    xb1 = b1_ref[0]                     # (C_in, TLB) centre row band
    xb2 = b2_ref[0]                     # (C_in, TLB) row band a=2 (neighbour row +1)
    hp = hp_ref[...]                    # (2*KK, TLB) pre-relu'd positional branch
    w21 = w21_ref[...]; w2 = w2_ref[...]
    s1d = s1d_ref[...]; cb1 = cb1_ref[...]
    wc1d = wc1d_ref[...]
    wc1pa = wc1pa_ref[...]; wc1pb = wc1pb_ref[...]
    s2 = s2_ref[...]; t2 = t2_ref[...]
    wc2 = wc2_ref[...]; bc2 = bc2_ref[...]
    w3 = w3_ref[...]; b3 = b3_ref[...]
    mmdt = xb1.dtype

    # conv1 (centre pixels) fused with conv2 of the centre band in ONE stacked
    # MXU matmul; conv2 alone on the other two bands.  All f32-accumulated.
    r1 = jnp.dot(w21, xb1, preferred_element_type=jnp.float32)          # (2*rel, TLB)
    y = (jnp.dot(w2, xb0, preferred_element_type=jnp.float32),
         r1[:rel],
         jnp.dot(w2, xb2, preferred_element_type=jnp.float32))
    x1 = r1[rel:]                                                        # conv1 (bias folded)
    c1 = x1 * s1d + cb1                                                  # BN1 affine + (b1-b2) folded

    ys = tuple(v * s1d for v in y)                                       # BN1 scale on the x2 side
    ysR = tuple(_shift_right(v) for v in ys)                             # column offset -1
    ysL = tuple(_shift_left(v) for v in ys)                              # column offset +1

    # Per-offset logits: subtraction2 + conv_w1 (positional branch streamed).
    logits = []
    for k in range(KK):
        a, b = divmod(k, KSIZE)
        x2s = (ysR[a], ys[a], ysL[a])[b]
        hd = jnp.maximum(c1 - x2s, 0.0)                                  # BN1 + ReLU (data branch)
        h = jnp.dot(wc1d, hd.astype(mmdt), preferred_element_type=jnp.float32)
        h = h + wc1pa * hp[2 * k:2 * k + 1] + wc1pb * hp[2 * k + 1:2 * k + 2]
        g = jnp.maximum(h * s2 + t2, 0.0)                                # BN2 + ReLU
        # 1-row conv (wc2) on the VPU/XLU instead of a <1%-utilized MXU pass.
        logits.append(jnp.sum(g * wc2, axis=0, keepdims=True) + bc2)     # (1, TLB)

    # Softmax over the 9 kernel offsets.
    m = logits[0]
    for k in range(1, KK):
        m = jnp.maximum(m, logits[k])
    es = [jnp.exp(v - m) for v in logits]
    den = es[0]
    for k in range(1, KK):
        den = den + es[k]
    inv = pl.reciprocal(den, approx=approx_recip)
    att = [e * inv for e in es]                                          # 9 x (1, TLB)

    # Aggregation of the RAW neighbourhoods (conv3 moved after the aggregation:
    # exact because the attention weights sum to 1).  Only two wide lane shifts.
    uC = att[1] * xb0 + att[4] * xb1 + att[7] * xb2
    uR = _shift_left(att[0]) * xb0 + _shift_left(att[3]) * xb1 + _shift_left(att[6]) * xb2
    uL = _shift_right(att[2]) * xb0 + _shift_right(att[5]) * xb1 + _shift_right(att[8]) * xb2
    yagg = uC + _shift_right(uR) + _shift_left(uL)                       # (C_in, TLB) f32

    res = jnp.dot(w3, yagg.astype(mmdt), preferred_element_type=jnp.float32) + b3
    out_ref[0] = res.astype(out_ref.dtype)


def gam0_forward(x, params, *, compute_dtype=jnp.bfloat16):
    N, C_in, H, W = x.shape
    Wp = W + 2
    Lb = H * Wp
    rel = params["w1"].shape[0]
    out_p = params["w3"].shape[0]
    cdt = jnp.dtype(compute_dtype)
    isz = cdt.itemsize
    f32 = jnp.float32

    # ---- generation-aware tiling / VMEM budget (includes wide f32 temporaries) ----
    phys_vmem = _tpu_vmem_capacity_bytes()

    def per_step_bytes(tlb):
        in_bufs = 2 * (3 * C_in + 2 * KK) * tlb * isz        # double-buffered streamed inputs
        out_bufs = 2 * out_p * tlb * 4
        wide = (14 * rel + 5 * C_in + 48) * tlb * 4          # ys/ysR/ysL/c1, u*, yagg, transients
        return in_bufs + out_bufs + wide

    budget = int(min(phys_vmem * 0.4, 64 << 20))
    TH = _pick_row_tile(H, Wp, per_step_bytes, budget)
    TLB = TH * Wp
    NT = H // TH

    est = per_step_bytes(TLB)
    cap = (48 << 20) if phys_vmem <= (96 << 20) else (100 << 20)
    vmem_limit = int(min(max(2 * est + (8 << 20), 32 << 20), cap, int(phys_vmem * 0.75)))

    # --- glue: reflection pad once; three overlapping row-band views (row unfold).
    xp = jnp.pad(x, ((0, 0), (0, 0), (1, 1), (1, 1)), mode="reflect")    # (N, C, H+2, Wp)
    bands = [xp[:, :, a:a + H, :].reshape(N, C_in, Lb).astype(cdt) for a in range(KSIZE)]

    # --- glue: batch-independent positional branch, pre-relu'd, in band-lane layout
    # (pad columns zero-filled; conv_p bias cancels in the subtraction).
    pos = position_jnp(H, W)                                             # (2, H, W)
    P = jnp.einsum("oc,chw->ohw", params["wp"], pos)
    Pp = jnp.pad(P, ((0, 0), (1, 1), (1, 1)), mode="reflect")
    pdiff = jnp.stack([P - Pp[:, a:a + H, b:b + W]
                       for a in range(KSIZE) for b in range(KSIZE)], axis=0)   # (KK, 2, H, W)

    s1 = params["bn1_gamma"] / jnp.sqrt(params["bn1_var"] + EPS)
    t1 = params["bn1_beta"] - params["bn1_mean"] * s1
    s1d, t1d = s1[:rel, None], t1[:rel, None]
    s1p, t1p = s1[rel:], t1[rel:]
    hp = jnp.maximum(pdiff * s1p[None, :, None, None] + t1p[None, :, None, None], 0.0)
    hp_pos = (jnp.pad(hp, ((0, 0), (0, 0), (0, 0), (1, 1)))
                .reshape(KK * 2, Lb).astype(cdt))                        # (2*KK, Lb)

    s2v = params["bn2_gamma"] / jnp.sqrt(params["bn2_var"] + EPS)
    t2v = params["bn2_beta"] - params["bn2_mean"] * s2v

    w21 = jnp.concatenate([params["w2"], params["w1"]], axis=0)          # stacked conv2/conv1
    cb1 = (params["b1"] - params["b2"])[:, None] * s1d + t1d
    wc1d = params["wc1"][:, :rel]
    wc1pa = params["wc1"][:, rel:rel + 1]
    wc1pb = params["wc1"][:, rel + 1:rel + 2]

    in_arrays = [
        bands[0], bands[1], bands[2], hp_pos,
        w21.astype(cdt), params["w2"].astype(cdt),
        s1d.astype(f32), cb1.astype(f32),
        wc1d.astype(cdt), wc1pa.astype(f32), wc1pb.astype(f32),
        s2v[:, None].astype(f32), t2v[:, None].astype(f32),
        params["wc2"].reshape(rel, 1).astype(f32), params["bc2"].reshape(1, 1).astype(f32),
        params["w3"].astype(cdt), params["b3"][:, None].astype(f32),
    ]

    band_spec = pl.BlockSpec((1, C_in, TLB), lambda t, n: (n, 0, t))

    def full_spec(arr):
        nd = arr.ndim
        return pl.BlockSpec(arr.shape, lambda t, n, _nd=nd: (0,) * _nd)

    in_specs = ([band_spec, band_spec, band_spec,
                 pl.BlockSpec((2 * KK, TLB), lambda t, n: (0, t))]       # resident across batch
                + [full_spec(a) for a in in_arrays[4:]])

    kernel = functools.partial(gam0_kernel, rel=rel,
                               approx_recip=(cdt != jnp.dtype(jnp.float32)))

    out_b = pl.pallas_call(
        kernel,
        out_shape=jax.ShapeDtypeStruct((N, out_p, Lb), jnp.float32),
        grid=(NT, N),                                                    # batch innermost
        in_specs=in_specs,
        out_specs=pl.BlockSpec((1, out_p, TLB), lambda t, n: (n, 0, t)),
        compiler_params=pltpu.CompilerParams(
            dimension_semantics=("parallel", "parallel"),
            vmem_limit_bytes=vmem_limit),
    )(*in_arrays)

    # Drop the pad columns (junk lanes); no transpose needed.
    out = out_b.reshape(N, out_p, H, Wp)[:, :, :, 1:W + 1]
    return out


# ---------------- pure-JAX reference (for correctness check) ----------------
def gam0_reference(x, params):
    N, C_in, H, W = x.shape
    L = H * W

    def conv1x1(t, w, b):
        return jnp.einsum("oc,nchw->nohw", w, t) + b[None, :, None, None]

    def unfold(t):  # (n,c,H,W) -> (n,c,KK,L), reflection pad 1
        n, c = t.shape[:2]
        tp = jnp.pad(t, ((0, 0), (0, 0), (1, 1), (1, 1)), mode="reflect")
        return jnp.stack(
            [tp[:, :, a:a + H, b:b + W].reshape(n, c, L)
             for a in range(KSIZE) for b in range(KSIZE)], axis=2)

    x1 = conv1x1(x, params["w1"], params["b1"])
    x2 = conv1x1(x, params["w2"], params["b2"])
    x3 = conv1x1(x, params["w3"], params["b3"])
    p = conv1x1(position_jnp(H, W)[None], params["wp"], params["bp"])

    sub2 = x1.reshape(N, -1, 1, L) - unfold(x2)                       # (N, rel, KK, L)
    subp = p.reshape(1, 2, 1, L) - unfold(p)                          # (1, 2, KK, L)
    cat = jnp.concatenate([sub2, jnp.tile(subp, (N, 1, 1, 1))], axis=1)

    s1 = params["bn1_gamma"] / jnp.sqrt(params["bn1_var"] + EPS)
    t1 = params["bn1_beta"] - params["bn1_mean"] * s1
    h = jax.nn.relu(cat * s1[None, :, None, None] + t1[None, :, None, None])
    h = jnp.einsum("or,nrkl->nokl", params["wc1"], h)
    s2 = params["bn2_gamma"] / jnp.sqrt(params["bn2_var"] + EPS)
    t2 = params["bn2_beta"] - params["bn2_mean"] * s2
    h = jax.nn.relu(h * s2[None, :, None, None] + t2[None, :, None, None])
    logit = jnp.einsum("or,nrkl->nokl", params["wc2"], h) + params["bc2"][None, :, None, None]
    w = jax.nn.softmax(logit, axis=-2)                                # (N, 1, KK, L)
    out = (w * unfold(x3)).sum(axis=-2)                               # (N, out, L)
    return out.reshape(N, -1, H, W)


def make_params(key, in_planes, rel_planes, out_planes):
    ks = jax.random.split(key, 16)
    r = lambda k, s, sc=0.3: (sc * jax.random.normal(k, s)).astype(jnp.float32)
    return dict(
        w1=r(ks[0], (rel_planes, in_planes)), b1=r(ks[1], (rel_planes,)),
        w2=r(ks[2], (rel_planes, in_planes)), b2=r(ks[3], (rel_planes,)),
        w3=r(ks[4], (out_planes, in_planes)), b3=r(ks[5], (out_planes,)),
        wp=r(ks[6], (2, 2)), bp=r(ks[7], (2,)),
        wc1=r(ks[8], (rel_planes, rel_planes + 2)),
        wc2=r(ks[9], (1, rel_planes)), bc2=r(ks[10], (1,)),
        bn1_gamma=(1.0 + 0.1 * jax.random.normal(ks[11], (rel_planes + 2,))).astype(jnp.float32),
        bn1_beta=r(ks[12], (rel_planes + 2,), 0.1),
        bn1_mean=jnp.zeros((rel_planes + 2,), jnp.float32),
        bn1_var=jnp.ones((rel_planes + 2,), jnp.float32),
        bn2_gamma=(1.0 + 0.1 * jax.random.normal(ks[13], (rel_planes,))).astype(jnp.float32),
        bn2_beta=r(ks[14], (rel_planes,), 0.1),
        bn2_mean=jnp.zeros((rel_planes,), jnp.float32),
        bn2_var=jnp.ones((rel_planes,), jnp.float32),
    )


if __name__ == "__main__":
    N, C_in, H, W = 2, 4, 16, 16
    rel_planes, out_planes = 2, 8

    key = jax.random.PRNGKey(0)
    kx, kp = jax.random.split(key)
    x = jax.random.normal(kx, (N, C_in, H, W), jnp.float32)
    params = make_params(kp, C_in, rel_planes, out_planes)

    ref = gam0_reference(x, params)

    # Exact-precision path: strict semantic check.
    out_f32 = jax.block_until_ready(gam0_forward(x, params, compute_dtype=jnp.float32))
    assert out_f32.shape == (N, out_planes, H, W)
    err32 = float(jnp.max(jnp.abs(out_f32 - ref)))
    assert err32 < 1e-3, f"f32 max abs err {err32}"

    # bf16 fast path (bf16 band/positional streams + bf16 matmul operands with
    # f32 accumulation, approx softmax reciprocal); exact semantics are asserted
    # at 1e-3 above, this only covers bf16 rounding.
    out_bf16 = jax.block_until_ready(gam0_forward(x, params, compute_dtype=jnp.bfloat16))
    err16 = float(jnp.max(jnp.abs(out_bf16 - ref)))
    assert err16 < 1e-1, f"bf16 max abs err {err16}"

    print("KERNEL_OK")
</pallas_src>

<mosaic_0001>
module attributes {stable_mosaic.version = 11 : i64} {
  func.func @gam0_kernel(%arg0: i32, %arg1: i32, %arg2: memref<1x4x288xf32, #tpu.memory_space<vmem>>, %arg3: memref<1x4x288xf32, #tpu.memory_space<vmem>>, %arg4: memref<1x4x288xf32, #tpu.memory_space<vmem>>, %arg5: memref<18x288xf32, #tpu.memory_space<vmem>>, %arg6: memref<4x4xf32, #tpu.memory_space<vmem>>, %arg7: memref<2x4xf32, #tpu.memory_space<vmem>>, %arg8: memref<2x1xf32, #tpu.memory_space<vmem>>, %arg9: memref<2x1xf32, #tpu.memory_space<vmem>>, %arg10: memref<2x2xf32, #tpu.memory_space<vmem>>, %arg11: memref<2x1xf32, #tpu.memory_space<vmem>>, %arg12: memref<2x1xf32, #tpu.memory_space<vmem>>, %arg13: memref<2x1xf32, #tpu.memory_space<vmem>>, %arg14: memref<2x1xf32, #tpu.memory_space<vmem>>, %arg15: memref<2x1xf32, #tpu.memory_space<vmem>>, %arg16: memref<1x1xf32, #tpu.memory_space<vmem>>, %arg17: memref<8x4xf32, #tpu.memory_space<vmem>>, %arg18: memref<8x1xf32, #tpu.memory_space<vmem>>, %arg19: memref<1x8x288xf32, #tpu.memory_space<vmem>>) attributes {dimension_semantics = [#tpu.dimension_semantics<parallel>, #tpu.dimension_semantics<parallel>], iteration_bounds = array<i64: 1, 2>, scalar_prefetch = 0 : i64, scratch_operands = 0 : i64, tpu.core_type = #tpu.core_type<tc>, window_params = [{transform_indices = @transform_0, window_bounds = array<i64: 1, 4, 288>}, {transform_indices = @transform_1, window_bounds = array<i64: 1, 4, 288>}, {transform_indices = @transform_2, window_bounds = array<i64: 1, 4, 288>}, {transform_indices = @transform_3, window_bounds = array<i64: 18, 288>}, {pipeline_mode = #tpu.pipeline_mode<synchronous>, transform_indices = @transform_4, window_bounds = array<i64: 4, 4>}, {pipeline_mode = #tpu.pipeline_mode<synchronous>, transform_indices = @transform_5, window_bounds = array<i64: 2, 4>}, {pipeline_mode = #tpu.pipeline_mode<synchronous>, transform_indices = @transform_6, window_bounds = array<i64: 2, 1>}, {pipeline_mode = #tpu.pipeline_mode<synchronous>, transform_indices = @transform_7, window_bounds = array<i64: 2, 1>}, {pipeline_mode = #tpu.pipeline_mode<synchronous>, transform_indices = @transform_8, window_bounds = array<i64: 2, 2>}, {pipeline_mode = #tpu.pipeline_mode<synchronous>, transform_indices = @transform_9, window_bounds = array<i64: 2, 1>}, {pipeline_mode = #tpu.pipeline_mode<synchronous>, transform_indices = @transform_10, window_bounds = array<i64: 2, 1>}, {pipeline_mode = #tpu.pipeline_mode<synchronous>, transform_indices = @transform_11, window_bounds = array<i64: 2, 1>}, {pipeline_mode = #tpu.pipeline_mode<synchronous>, transform_indices = @transform_12, window_bounds = array<i64: 2, 1>}, {pipeline_mode = #tpu.pipeline_mode<synchronous>, transform_indices = @transform_13, window_bounds = array<i64: 2, 1>}, {pipeline_mode = #tpu.pipeline_mode<synchronous>, transform_indices = @transform_14, window_bounds = array<i64: 1, 1>}, {pipeline_mode = #tpu.pipeline_mode<synchronous>, transform_indices = @transform_15, window_bounds = array<i64: 8, 4>}, {pipeline_mode = #tpu.pipeline_mode<synchronous>, transform_indices = @transform_16, window_bounds = array<i64: 8, 1>}, {transform_indices = @transform_17, window_bounds = array<i64: 1, 8, 288>}]} {
    %c0 = arith.constant 0 : index
    %c0_0 = arith.constant 0 : index
    %c0_1 = arith.constant 0 : index
    %0 = vector.load %arg2[%c0, %c0_0, %c0_1] : memref<1x4x288xf32, #tpu.memory_space<vmem>>, vector<1x4x288xf32>
    %1 = vector.shape_cast %0 : vector<1x4x288xf32> to vector<4x288xf32>
    %c0_2 = arith.constant 0 : index
    %c0_3 = arith.constant 0 : index
    %c0_4 = arith.constant 0 : index
    %2 = vector.load %arg3[%c0_2, %c0_3, %c0_4] : memref<1x4x288xf32, #tpu.memory_space<vmem>>, vector<1x4x288xf32>
    %3 = vector.shape_cast %2 : vector<1x4x288xf32> to vector<4x288xf32>
    %c0_5 = arith.constant 0 : index
    %c0_6 = arith.constant 0 : index
    %c0_7 = arith.constant 0 : index
    %4 = vector.load %arg4[%c0_5, %c0_6, %c0_7] : memref<1x4x288xf32, #tpu.memory_space<vmem>>, vector<1x4x288xf32>
    %5 = vector.shape_cast %4 : vector<1x4x288xf32> to vector<4x288xf32>
    %c0_8 = arith.constant 0 : index
    %c0_9 = arith.constant 0 : index
    %6 = vector.load %arg5[%c0_8, %c0_9] : memref<18x288xf32, #tpu.memory_space<vmem>>, vector<18x288xf32>
    %c0_10 = arith.constant 0 : index
    %c0_11 = arith.constant 0 : index
    %7 = vector.load %arg6[%c0_10, %c0_11] : memref<4x4xf32, #tpu.memory_space<vmem>>, vector<4x4xf32>
    %c0_12 = arith.constant 0 : index
    %c0_13 = arith.constant 0 : index
    %8 = vector.load %arg7[%c0_12, %c0_13] : memref<2x4xf32, #tpu.memory_space<vmem>>, vector<2x4xf32>
    %c0_14 = arith.constant 0 : index
    %c0_15 = arith.constant 0 : index
    %9 = vector.load %arg8[%c0_14, %c0_15] : memref<2x1xf32, #tpu.memory_space<vmem>>, vector<2x1xf32>
    %c0_16 = arith.constant 0 : index
    %c0_17 = arith.constant 0 : index
    %10 = vector.load %arg9[%c0_16, %c0_17] : memref<2x1xf32, #tpu.memory_space<vmem>>, vector<2x1xf32>
    %c0_18 = arith.constant 0 : index
    %c0_19 = arith.constant 0 : index
    %11 = vector.load %arg10[%c0_18, %c0_19] : memref<2x2xf32, #tpu.memory_space<vmem>>, vector<2x2xf32>
    %c0_20 = arith.constant 0 : index
    %c0_21 = arith.constant 0 : index
    %12 = vector.load %arg11[%c0_20, %c0_21] : memref<2x1xf32, #tpu.memory_space<vmem>>, vector<2x1xf32>
    %c0_22 = arith.constant 0 : index
    %c0_23 = arith.constant 0 : index
    %13 = vector.load %arg12[%c0_22, %c0_23] : memref<2x1xf32, #tpu.memory_space<vmem>>, vector<2x1xf32>
    %c0_24 = arith.constant 0 : index
    %c0_25 = arith.constant 0 : index
    %14 = vector.load %arg13[%c0_24, %c0_25] : memref<2x1xf32, #tpu.memory_space<vmem>>, vector<2x1xf32>
    %c0_26 = arith.constant 0 : index
    %c0_27 = arith.constant 0 : index
    %15 = vector.load %arg14[%c0_26, %c0_27] : memref<2x1xf32, #tpu.memory_space<vmem>>, vector<2x1xf32>
    %c0_28 = arith.constant 0 : index
    %c0_29 = arith.constant 0 : index
    %16 = vector.load %arg15[%c0_28, %c0_29] : memref<2x1xf32, #tpu.memory_space<vmem>>, vector<2x1xf32>
    %c0_30 = arith.constant 0 : index
    %c0_31 = arith.constant 0 : index
    %17 = vector.load %arg16[%c0_30, %c0_31] : memref<1x1xf32, #tpu.memory_space<vmem>>, vector<1x1xf32>
    %c0_32 = arith.constant 0 : index
    %c0_33 = arith.constant 0 : index
    %18 = vector.load %arg17[%c0_32, %c0_33] : memref<8x4xf32, #tpu.memory_space<vmem>>, vector<8x4xf32>
    %c0_34 = arith.constant 0 : index
    %c0_35 = arith.constant 0 : index
    %19 = vector.load %arg18[%c0_34, %c0_35] : memref<8x1xf32, #tpu.memory_space<vmem>>, vector<8x1xf32>
    %cst = arith.constant dense<0.000000e+00> : vector<4x288xf32>
    %20 = tpu.matmul %7, %3, %cst {dimension_numbers = #tpu.dot_dimension_numbers<[1], [0], [0], [1], [0, 0, 1, 1], [], []>} : vector<4x4xf32>, vector<4x288xf32>, vector<4x288xf32> -> vector<4x288xf32>
    %cst_36 = arith.constant dense<0.000000e+00> : vector<2x288xf32>
    %21 = tpu.matmul %8, %1, %cst_36 {dimension_numbers = #tpu.dot_dimension_numbers<[1], [0], [0], [1], [0, 0, 1, 1], [], []>} : vector<2x4xf32>, vector<4x288xf32>, vector<2x288xf32> -> vector<2x288xf32>
    %22 = vector.extract_strided_slice %20 {offsets = [0, 0], sizes = [2, 288], strides = [1, 1]} : vector<4x288xf32> to vector<2x288xf32>
    %cst_37 = arith.constant dense<0.000000e+00> : vector<2x288xf32>
    %23 = tpu.matmul %8, %5, %cst_37 {dimension_numbers = #tpu.dot_dimension_numbers<[1], [0], [0], [1], [0, 0, 1, 1], [], []>} : vector<2x4xf32>, vector<4x288xf32>, vector<2x288xf32> -> vector<2x288xf32>
    %24 = vector.extract_strided_slice %20 {offsets = [2, 0], sizes = [2, 288], strides = [1, 1]} : vector<4x288xf32> to vector<2x288xf32>
    %25 = vector.broadcast %9 : vector<2x1xf32> to vector<2x288xf32>
    %26 = arith.mulf %24, %25 : vector<2x288xf32>
    %27 = vector.broadcast %10 : vector<2x1xf32> to vector<2x288xf32>
    %28 = arith.addf %26, %27 : vector<2x288xf32>
    %29 = vector.broadcast %9 : vector<2x1xf32> to vector<2x288xf32>
    %30 = arith.mulf %21, %29 : vector<2x288xf32>
    %31 = vector.broadcast %9 : vector<2x1xf32> to vector<2x288xf32>
    %32 = arith.mulf %22, %31 : vector<2x288xf32>
    %33 = vector.broadcast %9 : vector<2x1xf32> to vector<2x288xf32>
    %34 = arith.mulf %23, %33 : vector<2x288xf32>
    %35 = vector.extract_strided_slice %30 {offsets = [0, 0], sizes = [2, 1], strides = [1, 1]} : vector<2x288xf32> to vector<2x1xf32>
    %36 = vector.extract_strided_slice %30 {offsets = [0, 0], sizes = [2, 287], strides = [1, 1]} : vector<2x288xf32> to vector<2x287xf32>
    %37 = tpu.concatenate %35, %36 in 1 : vector<2x1xf32>, vector<2x287xf32> -> vector<2x288xf32>
    %38 = vector.extract_strided_slice %32 {offsets = [0, 0], sizes = [2, 1], strides = [1, 1]} : vector<2x288xf32> to vector<2x1xf32>
    %39 = vector.extract_strided_slice %32 {offsets = [0, 0], sizes = [2, 287], strides = [1, 1]} : vector<2x288xf32> to vector<2x287xf32>
    %40 = tpu.concatenate %38, %39 in 1 : vector<2x1xf32>, vector<2x287xf32> -> vector<2x288xf32>
    %41 = vector.extract_strided_slice %34 {offsets = [0, 0], sizes = [2, 1], strides = [1, 1]} : vector<2x288xf32> to vector<2x1xf32>
    %42 = vector.extract_strided_slice %34 {offsets = [0, 0], sizes = [2, 287], strides = [1, 1]} : vector<2x288xf32> to vector<2x287xf32>
    %43 = tpu.concatenate %41, %42 in 1 : vector<2x1xf32>, vector<2x287xf32> -> vector<2x288xf32>
    %44 = vector.extract_strided_slice %30 {offsets = [0, 1], sizes = [2, 287], strides = [1, 1]} : vector<2x288xf32> to vector<2x287xf32>
    %45 = vector.extract_strided_slice %30 {offsets = [0, 287], sizes = [2, 1], strides = [1, 1]} : vector<2x288xf32> to vector<2x1xf32>
    %46 = tpu.concatenate %44, %45 in 1 : vector<2x287xf32>, vector<2x1xf32> -> vector<2x288xf32>
    %47 = vector.extract_strided_slice %32 {offsets = [0, 1], sizes = [2, 287], strides = [1, 1]} : vector<2x288xf32> to vector<2x287xf32>
    %48 = vector.extract_strided_slice %32 {offsets = [0, 287], sizes = [2, 1], strides = [1, 1]} : vector<2x288xf32> to vector<2x1xf32>
    %49 = tpu.concatenate %47, %48 in 1 : vector<2x287xf32>, vector<2x1xf32> -> vector<2x288xf32>
    %50 = vector.extract_strided_slice %34 {offsets = [0, 1], sizes = [2, 287], strides = [1, 1]} : vector<2x288xf32> to vector<2x287xf32>
    %51 = vector.extract_strided_slice %34 {offsets = [0, 287], sizes = [2, 1], strides = [1, 1]} : vector<2x288xf32> to vector<2x1xf32>
    %52 = tpu.concatenate %50, %51 in 1 : vector<2x287xf32>, vector<2x1xf32> -> vector<2x288xf32>
    %53 = arith.subf %28, %37 : vector<2x288xf32>
    %cst_38 = arith.constant 0.000000e+00 : f32
    %54 = vector.broadcast %cst_38 : f32 to vector<2x288xf32>
    %55 = arith.maximumf %53, %54 : vector<2x288xf32>
    %cst_39 = arith.constant dense<0.000000e+00> : vector<2x288xf32>
    %56 = tpu.matmul %11, %55, %cst_39 {dimension_numbers = #tpu.dot_dimension_numbers<[1], [0], [0], [1], [0, 0, 1, 1], [], []>} : vector<2x2xf32>, vector<2x288xf32>, vector<2x288xf32> -> vector<2x288xf32>
    %57 = vector.extract_strided_slice %6 {offsets = [0, 0], sizes = [1, 288], strides = [1, 1]} : vector<18x288xf32> to vector<1x288xf32>
    %58 = vector.broadcast %12 : vector<2x1xf32> to vector<2x288xf32>
    %59 = vector.broadcast %57 : vector<1x288xf32> to vector<2x288xf32>
    %60 = arith.mulf %58, %59 : vector<2x288xf32>
    %61 = arith.addf %56, %60 : vector<2x288xf32>
    %62 = vector.extract_strided_slice %6 {offsets = [1, 0], sizes = [1, 288], strides = [1, 1]} : vector<18x288xf32> to vector<1x288xf32>
    %63 = vector.broadcast %13 : vector<2x1xf32> to vector<2x288xf32>
    %64 = vector.broadcast %62 : vector<1x288xf32> to vector<2x288xf32>
    %65 = arith.mulf %63, %64 : vector<2x288xf32>
    %66 = arith.addf %61, %65 : vector<2x288xf32>
    %67 = vector.broadcast %14 : vector<2x1xf32> to vector<2x288xf32>
    %68 = arith.mulf %66, %67 : vector<2x288xf32>
    %69 = vector.broadcast %15 : vector<2x1xf32> to vector<2x288xf32>
    %70 = arith.addf %68, %69 : vector<2x288xf32>
    %cst_40 = arith.constant 0.000000e+00 : f32
    %71 = vector.broadcast %cst_40 : f32 to vector<2x288xf32>
    %72 = arith.maximumf %70, %71 : vector<2x288xf32>
    %73 = vector.broadcast %16 : vector<2x1xf32> to vector<2x288xf32>
    %74 = arith.mulf %72, %73 : vector<2x288xf32>
    %cst_41 = arith.constant dense<0.000000e+00> : vector<288xf32>
    %75 = vector.multi_reduction <add>, %74, %cst_41 [0] : vector<2x288xf32> to vector<288xf32>
    %76 = vector.shape_cast %75 : vector<288xf32> to vector<1x288xf32>
    %77 = vector.broadcast %17 : vector<1x1xf32> to vector<1x288xf32>
    %78 = arith.addf %76, %77 : vector<1x288xf32>
    %79 = arith.subf %28, %30 : vector<2x288xf32>
    %cst_42 = arith.constant 0.000000e+00 : f32
    %80 = vector.broadcast %cst_42 : f32 to vector<2x288xf32>
    %81 = arith.maximumf %79, %80 : vector<2x288xf32>
    %cst_43 = arith.constant dense<0.000000e+00> : vector<2x288xf32>
    %82 = tpu.matmul %11, %81, %cst_43 {dimension_numbers = #tpu.dot_dimension_numbers<[1], [0], [0], [1], [0, 0, 1, 1], [], []>} : vector<2x2xf32>, vector<2x288xf32>, vector<2x288xf32> -> vector<2x288xf32>
    %83 = vector.extract_strided_slice %6 {offsets = [2, 0], sizes = [1, 288], strides = [1, 1]} : vector<18x288xf32> to vector<1x288xf32>
    %84 = vector.broadcast %12 : vector<2x1xf32> to vector<2x288xf32>
    %85 = vector.broadcast %83 : vector<1x288xf32> to vector<2x288xf32>
    %86 = arith.mulf %84, %85 : vector<2x288xf32>
    %87 = arith.addf %82, %86 : vector<2x288xf32>
    %88 = vector.extract_strided_slice %6 {offsets = [3, 0], sizes = [1, 288], strides = [1, 1]} : vector<18x288xf32> to vector<1x288xf32>
    %89 = vector.broadcast %13 : vector<2x1xf32> to vector<2x288xf32>
    %90 = vector.broadcast %88 : vector<1x288xf32> to vector<2x288xf32>
    %91 = arith.mulf %89, %90 : vector<2x288xf32>
    %92 = arith.addf %87, %91 : vector<2x288xf32>
    %93 = vector.broadcast %14 : vector<2x1xf32> to vector<2x288xf32>
    %94 = arith.mulf %92, %93 : vector<2x288xf32>
    %95 = vector.broadcast %15 : vector<2x1xf32> to vector<2x288xf32>
    %96 = arith.addf %94, %95 : vector<2x288xf32>
    %cst_44 = arith.constant 0.000000e+00 : f32
    %97 = vector.broadcast %cst_44 : f32 to vector<2x288xf32>
    %98 = arith.maximumf %96, %97 : vector<2x288xf32>
    %99 = vector.broadcast %16 : vector<2x1xf32> to vector<2x288xf32>
    %100 = arith.mulf %98, %99 : vector<2x288xf32>
    %cst_45 = arith.constant dense<0.000000e+00> : vector<288xf32>
    %101 = vector.multi_reduction <add>, %100, %cst_45 [0] : vector<2x288xf32> to vector<288xf32>
    %102 = vector.shape_cast %101 : vector<288xf32> to vector<1x288xf32>
    %103 = vector.broadcast %17 : vector<1x1xf32> to vector<1x288xf32>
    %104 = arith.addf %102, %103 : vector<1x288xf32>
    %105 = arith.subf %28, %46 : vector<2x288xf32>
    %cst_46 = arith.constant 0.000000e+00 : f32
    %106 = vector.broadcast %cst_46 : f32 to vector<2x288xf32>
    %107 = arith.maximumf %105, %106 : vector<2x288xf32>
    %cst_47 = arith.constant dense<0.000000e+00> : vector<2x288xf32>
    %108 = tpu.matmul %11, %107, %cst_47 {dimension_numbers = #tpu.dot_dimension_numbers<[1], [0], [0], [1], [0, 0, 1, 1], [], []>} : vector<2x2xf32>, vector<2x288xf32>, vector<2x288xf32> -> vector<2x288xf32>
    %109 = vector.extract_strided_slice %6 {offsets = [4, 0], sizes = [1, 288], strides = [1, 1]} : vector<18x288xf32> to vector<1x288xf32>
    %110 = vector.broadcast %12 : vector<2x1xf32> to vector<2x288xf32>
    %111 = vector.broadcast %109 : vector<1x288xf32> to vector<2x288xf32>
    %112 = arith.mulf %110, %111 : vector<2x288xf32>
    %113 = arith.addf %108, %112 : vector<2x288xf32>
    %114 = vector.extract_strided_slice %6 {offsets = [5, 0], sizes = [1, 288], strides = [1, 1]} : vector<18x288xf32> to vector<1x288xf32>
    %115 = vector.broadcast %13 : vector<2x1xf32> to vector<2x288xf32>
    %116 = vector.broadcast %114 : vector<1x288xf32> to vector<2x288xf32>
    %117 = arith.mulf %115, %116 : vector<2x288xf32>
    %118 = arith.addf %113, %117 : vector<2x288xf32>
    %119 = vector.broadcast %14 : vector<2x1xf32> to vector<2x288xf32>
    %120 = arith.mulf %118, %119 : vector<2x288xf32>
    %121 = vector.broadcast %15 : vector<2x1xf32> to vector<2x288xf32>
    %122 = arith.addf %120, %121 : vector<2x288xf32>
    %cst_48 = arith.constant 0.000000e+00 : f32
    %123 = vector.broadcast %cst_48 : f32 to vector<2x288xf32>
    %124 = arith.maximumf %122, %123 : vector<2x288xf32>
    %125 = vector.broadcast %16 : vector<2x1xf32> to vector<2x288xf32>
    %126 = arith.mulf %124, %125 : vector<2x288xf32>
    %cst_49 = arith.constant dense<0.000000e+00> : vector<288xf32>
    %127 = vector.multi_reduction <add>, %126, %cst_49 [0] : vector<2x288xf32> to vector<288xf32>
    %128 = vector.shape_cast %127 : vector<288xf32> to vector<1x288xf32>
    %129 = vector.broadcast %17 : vector<1x1xf32> to vector<1x288xf32>
    %130 = arith.addf %128, %129 : vector<1x288xf32>
    %131 = arith.subf %28, %40 : vector<2x288xf32>
    %cst_50 = arith.constant 0.000000e+00 : f32
    %132 = vector.broadcast %cst_50 : f32 to vector<2x288xf32>
    %133 = arith.maximumf %131, %132 : vector<2x288xf32>
    %cst_51 = arith.constant dense<0.000000e+00> : vector<2x288xf32>
    %134 = tpu.matmul %11, %133, %cst_51 {dimension_numbers = #tpu.dot_dimension_numbers<[1], [0], [0], [1], [0, 0, 1, 1], [], []>} : vector<2x2xf32>, vector<2x288xf32>, vector<2x288xf32> -> vector<2x288xf32>
    %135 = vector.extract_strided_slice %6 {offsets = [6, 0], sizes = [1, 288], strides = [1, 1]} : vector<18x288xf32> to vector<1x288xf32>
    %136 = vector.broadcast %12 : vector<2x1xf32> to vector<2x288xf32>
    %137 = vector.broadcast %135 : vector<1x288xf32> to vector<2x288xf32>
    %138 = arith.mulf %136, %137 : vector<2x288xf32>
    %139 = arith.addf %134, %138 : vector<2x288xf32>
    %140 = vector.extract_strided_slice %6 {offsets = [7, 0], sizes = [1, 288], strides = [1, 1]} : vector<18x288xf32> to vector<1x288xf32>
    %141 = vector.broadcast %13 : vector<2x1xf32> to vector<2x288xf32>
    %142 = vector.broadcast %140 : vector<1x288xf32> to vector<2x288xf32>
    %143 = arith.mulf %141, %142 : vector<2x288xf32>
    %144 = arith.addf %139, %143 : vector<2x288xf32>
    %145 = vector.broadcast %14 : vector<2x1xf32> to vector<2x288xf32>
    %146 = arith.mulf %144, %145 : vector<2x288xf32>
    %147 = vector.broadcast %15 : vector<2x1xf32> to vector<2x288xf32>
    %148 = arith.addf %146, %147 : vector<2x288xf32>
    %cst_52 = arith.constant 0.000000e+00 : f32
    %149 = vector.broadcast %cst_52 : f32 to vector<2x288xf32>
    %150 = arith.maximumf %148, %149 : vector<2x288xf32>
    %151 = vector.broadcast %16 : vector<2x1xf32> to vector<2x288xf32>
    %152 = arith.mulf %150, %151 : vector<2x288xf32>
    %cst_53 = arith.constant dense<0.000000e+00> : vector<288xf32>
    %153 = vector.multi_reduction <add>, %152, %cst_53 [0] : vector<2x288xf32> to vector<288xf32>
    %154 = vector.shape_cast %153 : vector<288xf32> to vector<1x288xf32>
    %155 = vector.broadcast %17 : vector<1x1xf32> to vector<1x288xf32>
    %156 = arith.addf %154, %155 : vector<1x288xf32>
    %157 = arith.subf %28, %32 : vector<2x288xf32>
    %cst_54 = arith.constant 0.000000e+00 : f32
    %158 = vector.broadcast %cst_54 : f32 to vector<2x288xf32>
    %159 = arith.maximumf %157, %158 : vector<2x288xf32>
    %cst_55 = arith.constant dense<0.000000e+00> : vector<2x288xf32>
    %160 = tpu.matmul %11, %159, %cst_55 {dimension_numbers = #tpu.dot_dimension_numbers<[1], [0], [0], [1], [0, 0, 1, 1], [], []>} : vector<2x2xf32>, vector<2x288xf32>, vector<2x288xf32> -> vector<2x288xf32>
    %161 = vector.extract_strided_slice %6 {offsets = [8, 0], sizes = [1, 288], strides = [1, 1]} : vector<18x288xf32> to vector<1x288xf32>
    %162 = vector.broadcast %12 : vector<2x1xf32> to vector<2x288xf32>
    %163 = vector.broadcast %161 : vector<1x288xf32> to vector<2x288xf32>
    %164 = arith.mulf %162, %163 : vector<2x288xf32>
    %165 = arith.addf %160, %164 : vector<2x288xf32>
    %166 = vector.extract_strided_slice %6 {offsets = [9, 0], sizes = [1, 288], strides = [1, 1]} : vector<18x288xf32> to vector<1x288xf32>
    %167 = vector.broadcast %13 : vector<2x1xf32> to vector<2x288xf32>
    %168 = vector.broadcast %166 : vector<1x288xf32> to vector<2x288xf32>
    %169 = arith.mulf %167, %168 : vector<2x288xf32>
    %170 = arith.addf %165, %169 : vector<2x288xf32>
    %171 = vector.broadcast %14 : vector<2x1xf32> to vector<2x288xf32>
    %172 = arith.mulf %170, %171 : vector<2x288xf32>
    %173 = vector.broadcast %15 : vector<2x1xf32> to vector<2x288xf32>
    %174 = arith.addf %172, %173 : vector<2x288xf32>
    %cst_56 = arith.constant 0.000000e+00 : f32
    %175 = vector.broadcast %cst_56 : f32 to vector<2x288xf32>
    %176 = arith.maximumf %174, %175 : vector<2x288xf32>
    %177 = vector.broadcast %16 : vector<2x1xf32> to vector<2x288xf32>
    %178 = arith.mulf %176, %177 : vector<2x288xf32>
    %cst_57 = arith.constant dense<0.000000e+00> : vector<288xf32>
    %179 = vector.multi_reduction <add>, %178, %cst_57 [0] : vector<2x288xf32> to vector<288xf32>
    %180 = vector.shape_cast %179 : vector<288xf32> to vector<1x288xf32>
    %181 = vector.broadcast %17 : vector<1x1xf32> to vector<1x288xf32>
    %182 = arith.addf %180, %181 : vector<1x288xf32>
    %183 = arith.subf %28, %49 : vector<2x288xf32>
    %cst_58 = arith.constant 0.000000e+00 : f32
    %184 = vector.broadcast %cst_58 : f32 to vector<2x288xf32>
    %185 = arith.maximumf %183, %184 : vector<2x288xf32>
    %cst_59 = arith.constant dense<0.000000e+00> : vector<2x288xf32>
    %186 = tpu.matmul %11, %185, %cst_59 {dimension_numbers = #tpu.dot_dimension_numbers<[1], [0], [0], [1], [0, 0, 1, 1], [], []>} : vector<2x2xf32>, vector<2x288xf32>, vector<2x288xf32> -> vector<2x288xf32>
    %187 = vector.extract_strided_slice %6 {offsets = [10, 0], sizes = [1, 288], strides = [1, 1]} : vector<18x288xf32> to vector<1x288xf32>
    %188 = vector.broadcast %12 : vector<2x1xf32> to vector<2x288xf32>
    %189 = vector.broadcast %187 : vector<1x288xf32> to vector<2x288xf32>
    %190 = arith.mulf %188, %189 : vector<2x288xf32>
    %191 = arith.addf %186, %190 : vector<2x288xf32>
    %192 = vector.extract_strided_slice %6 {offsets = [11, 0], sizes = [1, 288], strides = [1, 1]} : vector<18x288xf32> to vector<1x288xf32>
    %193 = vector.broadcast %13 : vector<2x1xf32> to vector<2x288xf32>
    %194 = vector.broadcast %192 : vector<1x288xf32> to vector<2x288xf32>
    %195 = arith.mulf %193, %194 : vector<2x288xf32>
    %196 = arith.addf %191, %195 : vector<2x288xf32>
    %197 = vector.broadcast %14 : vector<2x1xf32> to vector<2x288xf32>
    %198 = arith.mulf %196, %197 : vector<2x288xf32>
    %199 = vector.broadcast %15 : vector<2x1xf32> to vector<2x288xf32>
    %200 = arith.addf %198, %199 : vector<2x288xf32>
    %cst_60 = arith.constant 0.000000e+00 : f32
    %201 = vector.broadcast %cst_60 : f32 to vector<2x288xf32>
    %202 = arith.maximumf %200, %201 : vector<2x288xf32>
    %203 = vector.broadcast %16 : vector<2x1xf32> to vector<2x288xf32>
    %204 = arith.mulf %202, %203 : vector<2x288xf32>
    %cst_61 = arith.constant dense<0.000000e+00> : vector<288xf32>
    %205 = vector.multi_reduction <add>, %204, %cst_61 [0] : vector<2x288xf32> to vector<288xf32>
    %206 = vector.shape_cast %205 : vector<288xf32> to vector<1x288xf32>
    %207 = vector.broadcast %17 : vector<1x1xf32> to vector<1x288xf32>
    %208 = arith.addf %206, %207 : vector<1x288xf32>
    %209 = arith.subf %28, %43 : vector<2x288xf32>
    %cst_62 = arith.constant 0.000000e+00 : f32
    %210 = vector.broadcast %cst_62 : f32 to vector<2x288xf32>
    %211 = arith.maximumf %209, %210 : vector<2x288xf32>
    %cst_63 = arith.constant dense<0.000000e+00> : vector<2x288xf32>
    %212 = tpu.matmul %11, %211, %cst_63 {dimension_numbers = #tpu.dot_dimension_numbers<[1], [0], [0], [1], [0, 0, 1, 1], [], []>} : vector<2x2xf32>, vector<2x288xf32>, vector<2x288xf32> -> vector<2x288xf32>
    %213 = vector.extract_strided_slice %6 {offsets = [12, 0], sizes = [1, 288], strides = [1, 1]} : vector<18x288xf32> to vector<1x288xf32>
    %214 = vector.broadcast %12 : vector<2x1xf32> to vector<2x288xf32>
    %215 = vector.broadcast %213 : vector<1x288xf32> to vector<2x288xf32>
    %216 = arith.mulf %214, %215 : vector<2x288xf32>
    %217 = arith.addf %212, %216 : vector<2x288xf32>
    %218 = vector.extract_strided_slice %6 {offsets = [13, 0], sizes = [1, 288], strides = [1, 1]} : vector<18x288xf32> to vector<1x288xf32>
    %219 = vector.broadcast %13 : vector<2x1xf32> to vector<2x288xf32>
    %220 = vector.broadcast %218 : vector<1x288xf32> to vector<2x288xf32>
    %221 = arith.mulf %219, %220 : vector<2x288xf32>
    %222 = arith.addf %217, %221 : vector<2x288xf32>
    %223 = vector.broadcast %14 : vector<2x1xf32> to vector<2x288xf32>
    %224 = arith.mulf %222, %223 : vector<2x288xf32>
    %225 = vector.broadcast %15 : vector<2x1xf32> to vector<2x288xf32>
    %226 = arith.addf %224, %225 : vector<2x288xf32>
    %cst_64 = arith.constant 0.000000e+00 : f32
    %227 = vector.broadcast %cst_64 : f32 to vector<2x288xf32>
    %228 = arith.maximumf %226, %227 : vector<2x288xf32>
    %229 = vector.broadcast %16 : vector<2x1xf32> to vector<2x288xf32>
    %230 = arith.mulf %228, %229 : vector<2x288xf32>
    %cst_65 = arith.constant dense<0.000000e+00> : vector<288xf32>
    %231 = vector.multi_reduction <add>, %230, %cst_65 [0] : vector<2x288xf32> to vector<288xf32>
    %232 = vector.shape_cast %231 : vector<288xf32> to vector<1x288xf32>
    %233 = vector.broadcast %17 : vector<1x1xf32> to vector<1x288xf32>
    %234 = arith.addf %232, %233 : vector<1x288xf32>
    %235 = arith.subf %28, %34 : vector<2x288xf32>
    %cst_66 = arith.constant 0.000000e+00 : f32
    %236 = vector.broadcast %cst_66 : f32 to vector<2x288xf32>
    %237 = arith.maximumf %235, %236 : vector<2x288xf32>
    %cst_67 = arith.constant dense<0.000000e+00> : vector<2x288xf32>
    %238 = tpu.matmul %11, %237, %cst_67 {dimension_numbers = #tpu.dot_dimension_numbers<[1], [0], [0], [1], [0, 0, 1, 1], [], []>} : vector<2x2xf32>, vector<2x288xf32>, vector<2x288xf32> -> vector<2x288xf32>
    %239 = vector.extract_strided_slice %6 {offsets = [14, 0], sizes = [1, 288], strides = [1, 1]} : vector<18x288xf32> to vector<1x288xf32>
    %240 = vector.broadcast %12 : vector<2x1xf32> to vector<2x288xf32>
    %241 = vector.broadcast %239 : vector<1x288xf32> to vector<2x288xf32>
    %242 = arith.mulf %240, %241 : vector<2x288xf32>
    %243 = arith.addf %238, %242 : vector<2x288xf32>
    %244 = vector.extract_strided_slice %6 {offsets = [15, 0], sizes = [1, 288], strides = [1, 1]} : vector<18x288xf32> to vector<1x288xf32>
    %245 = vector.broadcast %13 : vector<2x1xf32> to vector<2x288xf32>
    %246 = vector.broadcast %244 : vector<1x288xf32> to vector<2x288xf32>
    %247 = arith.mulf %245, %246 : vector<2x288xf32>
    %248 = arith.addf %243, %247 : vector<2x288xf32>
    %249 = vector.broadcast %14 : vector<2x1xf32> to vector<2x288xf32>
    %250 = arith.mulf %248, %249 : vector<2x288xf32>
    %251 = vector.broadcast %15 : vector<2x1xf32> to vector<2x288xf32>
    %252 = arith.addf %250, %251 : vector<2x288xf32>
    %cst_68 = arith.constant 0.000000e+00 : f32
    %253 = vector.broadcast %cst_68 : f32 to vector<2x288xf32>
    %254 = arith.maximumf %252, %253 : vector<2x288xf32>
    %255 = vector.broadcast %16 : vector<2x1xf32> to vector<2x288xf32>
    %256 = arith.mulf %254, %255 : vector<2x288xf32>
    %cst_69 = arith.constant dense<0.000000e+00> : vector<288xf32>
    %257 = vector.multi_reduction <add>, %256, %cst_69 [0] : vector<2x288xf32> to vector<288xf32>
    %258 = vector.shape_cast %257 : vector<288xf32> to vector<1x288xf32>
    %259 = vector.broadcast %17 : vector<1x1xf32> to vector<1x288xf32>
    %260 = arith.addf %258, %259 : vector<1x288xf32>
    %261 = arith.subf %28, %52 : vector<2x288xf32>
    %cst_70 = arith.constant 0.000000e+00 : f32
    %262 = vector.broadcast %cst_70 : f32 to vector<2x288xf32>
    %263 = arith.maximumf %261, %262 : vector<2x288xf32>
    %cst_71 = arith.constant dense<0.000000e+00> : vector<2x288xf32>
    %264 = tpu.matmul %11, %263, %cst_71 {dimension_numbers = #tpu.dot_dimension_numbers<[1], [0], [0], [1], [0, 0, 1, 1], [], []>} : vector<2x2xf32>, vector<2x288xf32>, vector<2x288xf32> -> vector<2x288xf32>
    %265 = vector.extract_strided_slice %6 {offsets = [16, 0], sizes = [1, 288], strides = [1, 1]} : vector<18x288xf32> to vector<1x288xf32>
    %266 = vector.broadcast %12 : vector<2x1xf32> to vector<2x288xf32>
    %267 = vector.broadcast %265 : vector<1x288xf32> to vector<2x288xf32>
    %268 = arith.mulf %266, %267 : vector<2x288xf32>
    %269 = arith.addf %264, %268 : vector<2x288xf32>
    %270 = vector.extract_strided_slice %6 {offsets = [17, 0], sizes = [1, 288], strides = [1, 1]} : vector<18x288xf32> to vector<1x288xf32>
    %271 = vector.broadcast %13 : vector<2x1xf32> to vector<2x288xf32>
    %272 = vector.broadcast %270 : vector<1x288xf32> to vector<2x288xf32>
    %273 = arith.mulf %271, %272 : vector<2x288xf32>
    %274 = arith.addf %269, %273 : vector<2x288xf32>
    %275 = vector.broadcast %14 : vector<2x1xf32> to vector<2x288xf32>
    %276 = arith.mulf %274, %275 : vector<2x288xf32>
    %277 = vector.broadcast %15 : vector<2x1xf32> to vector<2x288xf32>
    %278 = arith.addf %276, %277 : vector<2x288xf32>
    %cst_72 = arith.constant 0.000000e+00 : f32
    %279 = vector.broadcast %cst_72 : f32 to vector<2x288xf32>
    %280 = arith.maximumf %278, %279 : vector<2x288xf32>
    %281 = vector.broadcast %16 : vector<2x1xf32> to vector<2x288xf32>
    %282 = arith.mulf %280, %281 : vector<2x288xf32>
    %cst_73 = arith.constant dense<0.000000e+00> : vector<288xf32>
    %283 = vector.multi_reduction <add>, %282, %cst_73 [0] : vector<2x288xf32> to vector<288xf32>
    %284 = vector.shape_cast %283 : vector<288xf32> to vector<1x288xf32>
    %285 = vector.broadcast %17 : vector<1x1xf32> to vector<1x288xf32>
    %286 = arith.addf %284, %285 : vector<1x288xf32>
    %287 = arith.maximumf %78, %104 : vector<1x288xf32>
    %288 = arith.maximumf %287, %130 : vector<1x288xf32>
    %289 = arith.maximumf %288, %156 : vector<1x288xf32>
    %290 = arith.maximumf %289, %182 : vector<1x288xf32>
    %291 = arith.maximumf %290, %208 : vector<1x288xf32>
    %292 = arith.maximumf %291, %234 : vector<1x288xf32>
    %293 = arith.maximumf %292, %260 : vector<1x288xf32>
    %294 = arith.maximumf %293, %286 : vector<1x288xf32>
    %295 = arith.subf %78, %294 : vector<1x288xf32>
    %296 = math.exp %295 : vector<1x288xf32>
    %297 = arith.subf %104, %294 : vector<1x288xf32>
    %298 = math.exp %297 : vector<1x288xf32>
    %299 = arith.subf %130, %294 : vector<1x288xf32>
    %300 = math.exp %299 : vector<1x288xf32>
    %301 = arith.subf %156, %294 : vector<1x288xf32>
    %302 = math.exp %301 : vector<1x288xf32>
    %303 = arith.subf %182, %294 : vector<1x288xf32>
    %304 = math.exp %303 : vector<1x288xf32>
    %305 = arith.subf %208, %294 : vector<1x288xf32>
    %306 = math.exp %305 : vector<1x288xf32>
    %307 = arith.subf %234, %294 : vector<1x288xf32>
    %308 = math.exp %307 : vector<1x288xf32>
    %309 = arith.subf %260, %294 : vector<1x288xf32>
    %310 = math.exp %309 : vector<1x288xf32>
    %311 = arith.subf %286, %294 : vector<1x288xf32>
    %312 = math.exp %311 : vector<1x288xf32>
    %313 = arith.addf %296, %298 : vector<1x288xf32>
    %314 = arith.addf %313, %300 : vector<1x288xf32>
    %315 = arith.addf %314, %302 : vector<1x288xf32>
    %316 = arith.addf %315, %304 : vector<1x288xf32>
    %317 = arith.addf %316, %306 : vector<1x288xf32>
    %318 = arith.addf %317, %308 : vector<1x288xf32>
    %319 = arith.addf %318, %310 : vector<1x288xf32>
    %320 = arith.addf %319, %312 : vector<1x288xf32>
    %321 = tpu.reciprocal %320 : vector<1x288xf32> -> vector<1x288xf32>
    %322 = arith.mulf %296, %321 : vector<1x288xf32>
    %323 = arith.mulf %298, %321 : vector<1x288xf32>
    %324 = arith.mulf %300, %321 : vector<1x288xf32>
    %325 = arith.mulf %302, %321 : vector<1x288xf32>
    %326 = arith.mulf %304, %321 : vector<1x288xf32>
    %327 = arith.mulf %306, %321 : vector<1x288xf32>
    %328 = arith.mulf %308, %321 : vector<1x288xf32>
    %329 = arith.mulf %310, %321 : vector<1x288xf32>
    %330 = arith.mulf %312, %321 : vector<1x288xf32>
    %331 = vector.broadcast %323 : vector<1x288xf32> to vector<4x288xf32>
    %332 = arith.mulf %331, %1 : vector<4x288xf32>
    %333 = vector.broadcast %326 : vector<1x288xf32> to vector<4x288xf32>
    %334 = arith.mulf %333, %3 : vector<4x288xf32>
    %335 = arith.addf %332, %334 : vector<4x288xf32>
    %336 = vector.broadcast %329 : vector<1x288xf32> to vector<4x288xf32>
    %337 = arith.mulf %336, %5 : vector<4x288xf32>
    %338 = arith.addf %335, %337 : vector<4x288xf32>
    %339 = vector.extract_strided_slice %322 {offsets = [0, 1], sizes = [1, 287], strides = [1, 1]} : vector<1x288xf32> to vector<1x287xf32>
    %340 = vector.extract_strided_slice %322 {offsets = [0, 287], sizes = [1, 1], strides = [1, 1]} : vector<1x288xf32> to vector<1x1xf32>
    %341 = tpu.concatenate %339, %340 in 1 : vector<1x287xf32>, vector<1x1xf32> -> vector<1x288xf32>
    %342 = vector.broadcast %341 : vector<1x288xf32> to vector<4x288xf32>
    %343 = arith.mulf %342, %1 : vector<4x288xf32>
    %344 = vector.extract_strided_slice %325 {offsets = [0, 1], sizes = [1, 287], strides = [1, 1]} : vector<1x288xf32> to vector<1x287xf32>
    %345 = vector.extract_strided_slice %325 {offsets = [0, 287], sizes = [1, 1], strides = [1, 1]} : vector<1x288xf32> to vector<1x1xf32>
    %346 = tpu.concatenate %344, %345 in 1 : vector<1x287xf32>, vector<1x1xf32> -> vector<1x288xf32>
    %347 = vector.broadcast %346 : vector<1x288xf32> to vector<4x288xf32>
    %348 = arith.mulf %347, %3 : vector<4x288xf32>
    %349 = arith.addf %343, %348 : vector<4x288xf32>
    %350 = vector.extract_strided_slice %328 {offsets = [0, 1], sizes = [1, 287], strides = [1, 1]} : vector<1x288xf32> to vector<1x287xf32>
    %351 = vector.extract_strided_slice %328 {offsets = [0, 287], sizes = [1, 1], strides = [1, 1]} : vector<1x288xf32> to vector<1x1xf32>
    %352 = tpu.concatenate %350, %351 in 1 : vector<1x287xf32>, vector<1x1xf32> -> vector<1x288xf32>
    %353 = vector.broadcast %352 : vector<1x288xf32> to vector<4x288xf32>
    %354 = arith.mulf %353, %5 : vector<4x288xf32>
    %355 = arith.addf %349, %354 : vector<4x288xf32>
    %356 = vector.extract_strided_slice %324 {offsets = [0, 0], sizes = [1, 1], strides = [1, 1]} : vector<1x288xf32> to vector<1x1xf32>
    %357 = vector.extract_strided_slice %324 {offsets = [0, 0], sizes = [1, 287], strides = [1, 1]} : vector<1x288xf32> to vector<1x287xf32>
    %358 = tpu.concatenate %356, %357 in 1 : vector<1x1xf32>, vector<1x287xf32> -> vector<1x288xf32>
    %359 = vector.broadcast %358 : vector<1x288xf32> to vector<4x288xf32>
    %360 = arith.mulf %359, %1 : vector<4x288xf32>
    %361 = vector.extract_strided_slice %327 {offsets = [0, 0], sizes = [1, 1], strides = [1, 1]} : vector<1x288xf32> to vector<1x1xf32>
    %362 = vector.extract_strided_slice %327 {offsets = [0, 0], sizes = [1, 287], strides = [1, 1]} : vector<1x288xf32> to vector<1x287xf32>
    %363 = tpu.concatenate %361, %362 in 1 : vector<1x1xf32>, vector<1x287xf32> -> vector<1x288xf32>
    %364 = vector.broadcast %363 : vector<1x288xf32> to vector<4x288xf32>
    %365 = arith.mulf %364, %3 : vector<4x288xf32>
    %366 = arith.addf %360, %365 : vector<4x288xf32>
    %367 = vector.extract_strided_slice %330 {offsets = [0, 0], sizes = [1, 1], strides = [1, 1]} : vector<1x288xf32> to vector<1x1xf32>
    %368 = vector.extract_strided_slice %330 {offsets = [0, 0], sizes = [1, 287], strides = [1, 1]} : vector<1x288xf32> to vector<1x287xf32>
    %369 = tpu.concatenate %367, %368 in 1 : vector<1x1xf32>, vector<1x287xf32> -> vector<1x288xf32>
    %370 = vector.broadcast %369 : vector<1x288xf32> to vector<4x288xf32>
    %371 = arith.mulf %370, %5 : vector<4x288xf32>
    %372 = arith.addf %366, %371 : vector<4x288xf32>
    %373 = vector.extract_strided_slice %355 {offsets = [0, 0], sizes = [4, 1], strides = [1, 1]} : vector<4x288xf32> to vector<4x1xf32>
    %374 = vector.extract_strided_slice %355 {offsets = [0, 0], sizes = [4, 287], strides = [1, 1]} : vector<4x288xf32> to vector<4x287xf32>
    %375 = tpu.concatenate %373, %374 in 1 : vector<4x1xf32>, vector<4x287xf32> -> vector<4x288xf32>
    %376 = arith.addf %338, %375 : vector<4x288xf32>
    %377 = vector.extract_strided_slice %372 {offsets = [0, 1], sizes = [4, 287], strides = [1, 1]} : vector<4x288xf32> to vector<4x287xf32>
    %378 = vector.extract_strided_slice %372 {offsets = [0, 287], sizes = [4, 1], strides = [1, 1]} : vector<4x288xf32> to vector<4x1xf32>
    %379 = tpu.concatenate %377, %378 in 1 : vector<4x287xf32>, vector<4x1xf32> -> vector<4x288xf32>
    %380 = arith.addf %376, %379 : vector<4x288xf32>
    %cst_74 = arith.constant dense<0.000000e+00> : vector<8x288xf32>
    %381 = tpu.matmul %18, %380, %cst_74 {dimension_numbers = #tpu.dot_dimension_numbers<[1], [0], [0], [1], [0, 0, 1, 1], [], []>} : vector<8x4xf32>, vector<4x288xf32>, vector<8x288xf32> -> vector<8x288xf32>
    %382 = vector.broadcast %19 : vector<8x1xf32> to vector<8x288xf32>
    %383 = arith.addf %381, %382 : vector<8x288xf32>
    %c0_75 = arith.constant 0 : index
    %c0_76 = arith.constant 0 : index
    %c0_77 = arith.constant 0 : index
    %384 = vector.load %arg19[%c0_75, %c0_76, %c0_77] : memref<1x8x288xf32, #tpu.memory_space<vmem>>, vector<1x8x288xf32>
    %385 = vector.shape_cast %384 : vector<1x8x288xf32> to vector<8x288xf32>
    %386 = vector.shape_cast %383 : vector<8x288xf32> to vector<1x8x288xf32>
    tpu.vector_store %arg19[%c0_75, %c0_76, %c0_77], %386 {strides = array<i32>} : memref<1x8x288xf32, #tpu.memory_space<vmem>>, vector<1x8x288xf32>,
    return
  }
  func.func @transform_0(%arg0: i32, %arg1: i32) -> (i32, i32, i32) {
    %c0_i32 = arith.constant 0 : i32
    %c0_i32_0 = arith.constant 0 : i32
    return %arg1, %c0_i32, %arg0 : i32, i32, i32
  }
  func.func @transform_1(%arg0: i32, %arg1: i32) -> (i32, i32, i32) {
    %c0_i32 = arith.constant 0 : i32
    %c0_i32_0 = arith.constant 0 : i32
    return %arg1, %c0_i32, %arg0 : i32, i32, i32
  }
  func.func @transform_2(%arg0: i32, %arg1: i32) -> (i32, i32, i32) {
    %c0_i32 = arith.constant 0 : i32
    %c0_i32_0 = arith.constant 0 : i32
    return %arg1, %c0_i32, %arg0 : i32, i32, i32
  }
  func.func @transform_3(%arg0: i32, %arg1: i32) -> (i32, i32) {
    %c0_i32 = arith.constant 0 : i32
    %c0_i32_0 = arith.constant 0 : i32
    return %c0_i32, %arg0 : i32, i32
  }
  func.func @transform_4(%arg0: i32, %arg1: i32) -> (i32, i32) {
    %c0_i32 = arith.constant 0 : i32
    %c0_i32_0 = arith.constant 0 : i32
    %c0_i32_1 = arith.constant 0 : i32
    return %c0_i32, %c0_i32_0 : i32, i32
  }
  func.func @transform_5(%arg0: i32, %arg1: i32) -> (i32, i32) {
    %c0_i32 = arith.constant 0 : i32
    %c0_i32_0 = arith.constant 0 : i32
    %c0_i32_1 = arith.constant 0 : i32
    return %c0_i32, %c0_i32_0 : i32, i32
  }
  func.func @transform_6(%arg0: i32, %arg1: i32) -> (i32, i32) {
    %c0_i32 = arith.constant 0 : i32
    %c0_i32_0 = arith.constant 0 : i32
    %c0_i32_1 = arith.constant 0 : i32
    return %c0_i32, %c0_i32_0 : i32, i32
  }
  func.func @transform_7(%arg0: i32, %arg1: i32) -> (i32, i32) {
    %c0_i32 = arith.constant 0 : i32
    %c0_i32_0 = arith.constant 0 : i32
    %c0_i32_1 = arith.constant 0 : i32
    return %c0_i32, %c0_i32_0 : i32, i32
  }
  func.func @transform_8(%arg0: i32, %arg1: i32) -> (i32, i32) {
    %c0_i32 = arith.constant 0 : i32
    %c0_i32_0 = arith.constant 0 : i32
    %c0_i32_1 = arith.constant 0 : i32
    return %c0_i32, %c0_i32_0 : i32, i32
  }
  func.func @transform_9(%arg0: i32, %arg1: i32) -> (i32, i32) {
    %c0_i32 = arith.constant 0 : i32
    %c0_i32_0 = arith.constant 0 : i32
    %c0_i32_1 = arith.constant 0 : i32
    return %c0_i32, %c0_i32_0 : i32, i32
  }
  func.func @transform_10(%arg0: i32, %arg1: i32) -> (i32, i32) {
    %c0_i32 = arith.constant 0 : i32
    %c0_i32_0 = arith.constant 0 : i32
    %c0_i32_1 = arith.constant 0 : i32
    return %c0_i32, %c0_i32_0 : i32, i32
  }
  func.func @transform_11(%arg0: i32, %arg1: i32) -> (i32, i32) {
    %c0_i32 = arith.constant 0 : i32
    %c0_i32_0 = arith.constant 0 : i32
    %c0_i32_1 = arith.constant 0 : i32
    return %c0_i32, %c0_i32_0 : i32, i32
  }
  func.func @transform_12(%arg0: i32, %arg1: i32) -> (i32, i32) {
    %c0_i32 = arith.constant 0 : i32
    %c0_i32_0 = arith.constant 0 : i32
    %c0_i32_1 = arith.constant 0 : i32
    return %c0_i32, %c0_i32_0 : i32, i32
  }
  func.func @transform_13(%arg0: i32, %arg1: i32) -> (i32, i32) {
    %c0_i32 = arith.constant 0 : i32
    %c0_i32_0 = arith.constant 0 : i32
    %c0_i32_1 = arith.constant 0 : i32
    return %c0_i32, %c0_i32_0 : i32, i32
  }
  func.func @transform_14(%arg0: i32, %arg1: i32) -> (i32, i32) {
    %c0_i32 = arith.constant 0 : i32
    %c0_i32_0 = arith.constant 0 : i32
    %c0_i32_1 = arith.constant 0 : i32
    return %c0_i32, %c0_i32_0 : i32, i32
  }
  func.func @transform_15(%arg0: i32, %arg1: i32) -> (i32, i32) {
    %c0_i32 = arith.constant 0 : i32
    %c0_i32_0 = arith.constant 0 : i32
    %c0_i32_1 = arith.constant 0 : i32
    return %c0_i32, %c0_i32_0 : i32, i32
  }
  func.func @transform_16(%arg0: i32, %arg1: i32) -> (i32, i32) {
    %c0_i32 = arith.constant 0 : i32
    %c0_i32_0 = arith.constant 0 : i32
    %c0_i32_1 = arith.constant 0 : i32
    return %c0_i32, %c0_i32_0 : i32, i32
  }
  func.func @transform_17(%arg0: i32, %arg1: i32) -> (i32, i32, i32) {
    %c0_i32 = arith.constant 0 : i32
    %c0_i32_0 = arith.constant 0 : i32
    return %arg1, %c0_i32, %arg0 : i32, i32, i32
  }
}

</mosaic_0001>

<bundles_post_ra>
// kernel: tpu_custom_call.1
= control target key start
LH: loop header
LB: loop body
LE: loop exit
PB: predicated region body
PF: predicated region fallthrough
CT: control target
= control target key end

     0   :  { %s6099_s0 = inlined_call_operand.vmem [shape: f32[2,4,288], index: 0, kind: input, shape index: {}]   ;;  %s6100_s1 = inlined_call_operand.hbm [shape: f32[2,4,288], index: 1, kind: input, shape index: {}]   ;;  %s6101_s2 = inlined_call_operand.hbm [shape: f32[2,4,288], index: 2, kind: input, shape index: {}]   ;;  %s6102_s3 = inlined_call_operand.hbm [shape: f32[18,288], index: 3, kind: input, shape index: {}]   ;;  %s6103_s4 = inlined_call_operand.vmem [shape: f32[4,4], index: 4, kind: input, shape index: {}]   ;;  %s6104_s5 = inlined_call_operand.vmem [shape: f32[2,4], index: 5, kind: input, shape index: {}]   ;;  %s6105_s6 = inlined_call_operand.vmem [shape: f32[2,1], index: 6, kind: input, shape index: {}]   ;;  %s6106_s7 = inlined_call_operand.vmem [shape: f32[2,1], index: 7, kind: input, shape index: {}]   ;;  %s6107_s8 = inlined_call_operand.vmem [shape: f32[2,2], index: 8, kind: input, shape index: {}]   ;;  %s6108_s9 = inlined_call_operand.vmem [shape: f32[2,1], index: 9, kind: input, shape index: {}]   ;;  %s6109_s10 = inlined_call_operand.vmem [shape: f32[2,1], index: 10, kind: input, shape index: {}]   ;;  %s6110_s11 = inlined_call_operand.vmem [shape: f32[2,1], index: 11, kind: input, shape index: {}]   ;;  %s6111_s12 = inlined_call_operand.vmem [shape: f32[2,1], index: 12, kind: input, shape index: {}]   ;;  %s6112_s13 = inlined_call_operand.vmem [shape: f32[2,1], index: 13, kind: input, shape index: {}]   ;;  %s6113_s14 = inlined_call_operand.<no memory space> [shape: f32[1,1], index: 14, kind: input, shape index: {}]   ;;  %s6114_s15 = inlined_call_operand.vmem [shape: f32[8,4], index: 15, kind: input, shape index: {}]   ;;  %s6115_s16 = inlined_call_operand.vmem [shape: f32[8,1], index: 16, kind: input, shape index: {}]   ;;  %s6116_s17 = inlined_call_operand.hbm [shape: f32[2,8,288], index: 17, kind: output, shape index: {}]  }
   0x1   :  { %6133 = sst [smem:[#allocation35_spill]] %s6099_s0  ;;  %v22_v0 = vstv %s6113_s14 }
   0x2   :  { %6134 = sst [smem:[#allocation36_spill]] %s6100_s1  ;;  %23 = vst [vmem:[#allocation2] sm:$0x1] %v22_v0 }
   0x3   :  { %6135 = sst [smem:[#allocation37_spill]] %s6102_s3 }
   0x4   :  { %6136 = sst [smem:[#allocation38_spill]] %s6107_s8 }
   0x5   :  { %6137 = sst [smem:[#allocation39_spill]] %s6111_s12 }
   0x6   :  { %6138 = sst [smem:[#allocation40_spill]] %s6114_s15 }
   0x7   :  { %6139 = sst [smem:[#allocation41_spill]] %s6115_s16 }
   0x8   :  { %6140 = sst [smem:[#allocation42_spill]] %s6116_s17 }
   0x9   :  { %24 = vsyncpa [#allocation4], 0 }
   0xa   :  { %26 = vsyncpa [#allocation4 + $0x1], 0 }
   0xb   :  { %27 = vsyncpa [#allocation7], 0 }
   0xc   :  { %29 = vsyncpa [#allocation7 + $0x1], 0 }
   0xd   :  { %30 = vsyncpa [#allocation5], 0 }
   0xe   :  { %32 = vsyncpa [#allocation5 + $0x1], 0  ;;  %s4759_s26 = smov 0   ;;  %s4761_s27 = smov 0  }
   0xf   :  { %s4763_s28 = smov 0   ;;  %s4765_s29 = smov 0  }
  0x10   :  { %s4767_s0 = smov 0   ;;  %s4769_s30 = smov 0  }
  0x11 LB: > { %6141 = sst [smem:[#allocation14_spill]] %s4633_s26  ;;  %s4790_s14 = sadd.s32 4294967295, %s4653_s30   ;;  %s4653_s30 = sphi %s4769_s30, %s38_s30   ;;  %s4649_s0 = sphi %s4767_s0, %s6198_s0   ;;  %s4645_s29 = sphi %s4765_s29, %s6197_s29   ;;  %s4641_s28 = sphi %s4763_s28, %s6196_s28   ;;  %s4637_s27 = sphi %s4761_s27, %s6200_s27   ;;  %s4633_s26 = sphi %s4759_s26, %s6199_s26  }
  0x12   : > { %6142 = sst [smem:[#allocation15_spill]] %s4641_s28  ;;  %s4151_s18 = sadd.s32 4294967294, %s4653_s30  }
  0x13   : > { %6143 = sst [smem:[#allocation16_spill]] %s4649_s0  ;;  %p100_p0 = scmp.ne.s32.totalorder %s4637_s27, %s4633_s26 }
  0x14   : > { %6144 = sst [smem:[#allocation17_spill]] %s4653_s30  ;;  %p101_p1 = scmp.eq.s32.totalorder %s4790_s14, 0 }
  0x15   : > { %p459_p3 = scmp.eq.s32.totalorder %s4151_s18, 1  ;;  %p4152_p5 = scmp.ge.s32.totalorder %s4653_s30, 1 }
  0x16   : > { %p4799_p4 = por %p101_p1, %p100_p0  ;;  %p466_p7 = scmp.lt.s32.totalorder %s4653_s30, 3 }
  0x17   : > { %p4804_p6 = por %p459_p3, %p100_p0  ;;  %s4655_s21 = smov [#allocation8]  }
  0x18   : > { %p4809_p8 = pnand %p4152_p5, %p466_p7  ;;  %s481_s22 = sshll.u32 %s4655_s21, 4  ;;  %s482_s22 = int_to_ptr.vmem [resolvable:$true] %s481_s22 }
  0x19   : > { %s6146_s1 = scalar_select %p4804_p6, 1, 0 }
  0x1a   : > { %p4337_p9 = pneg %p4809_p8  ;;  %p4154_p10 = scmp.ge.s32.totalorder %s4653_s30, 2 }
  0x1b   : > { %6147 = sst [smem:[#allocation18_spill]] %s6146_s1  ;;  %s47_s24 = sadd.s32 1, %s4649_s0 }
  0x1c   : > { %p4818_p11 = pnand %p4337_p9, %p101_p1  ;;  %s4494_s25 = scalar_lea.vmem %s482_s22, 1152 }
  0x1d   : > { %p4495_p13 = scmp.ne.s32.totalorder %s482_s22, %s4494_s25  ;;  %p4502_p5 = scmp.lt.s32.totalorder %s482_s22, %s482_s22 }
  0x1e   : > { %p4485_p12 = pneg %p4818_p11  ;;  %p4503_p7 = scmp.lt.s32.totalorder %s4494_s25, %s4494_s25 }
  0x20   : > { %p4497_p0 = pnand %p4495_p13, %p4485_p12  ;;  %p4504_p2 = por %p4503_p7, %p4502_p5 }
  0x22   : > { %p4498_p3 = pneg %p4497_p0 }
  0x24   : > { %p4505_p6 = pnand %p4504_p2, %p4498_p3 }
  0x26   : > { %4508 = shalt.err (!%p4505_p6)
}
  0x27   : > { %s4656_s18 = smov 384   ;;  %s4657_s21 = smov 24  }
  0x28   : > { %s6150_s3 = sld [smem:[#allocation37_spill]]  ;;  %p48_p2 = scmp.ge.s32.totalorder %s47_s24, 2 }
  0x29   : > { %s87_s25 = sadd.s32 1, %s4641_s28  ;;  %p94_p6 = scmp.ne.s32.totalorder %s4641_s28, %s4637_s27 }
  0x2a   : > { %p95_p9 = scmp.eq.s32.totalorder %s4653_s30, 0  ;;  %s6202_s24 = smov (%p48_p2, %s47_s24), 0 }
  0x2b   : > { %6151 = sst [smem:[#allocation19_spill]] %s6202_s24  ;;  %p6152_p13 = scmp.eq.s32.totalorder %s4790_s14, 1 }
  0x2c   : > { %p96_p12 = por %p95_p9, %p94_p6  ;;  %s82_s15 = ssub.s32 %s4649_s0, %s6202_s24 }
  0x2d   : > { %p4838_p0 = por %p6152_p13, %p94_p6  ;;  %p4353_p3 = scmp.lt.s32.totalorder %s4653_s30, 2 }
  0x2e   : > { %4340 = dma.hbm_to_vmem [thread:$0]  (!%p4818_p11), %s6150_s3, 1152, %s482_s22, [#allocation7], %s4656_s18, %s4656_s18, %s4657_s21  }
  0x2f   : > { %s6153_s17 = scalar_select %p4838_p0, 1, 0 }
  0x30   : > { %p85_p5 = scmp.eq.s32.totalorder %s82_s15, 0  ;;  %s547_s23 = sand.u32 1, %s4641_s28  }
  0x31   : > { %6154 = sst [smem:[#allocation20_spill]] %s6153_s17  ;;  %s4319_s26 = smul.u32 12, %s547_s23 }
  0x32   : > { %s4847_s1 = scalar_select %p85_p5, %s4641_s28, %s87_s25  }
  0x33   : > { %s4320_s22 = smul.u32 192, %s4649_s0  ;;  %s551_s18 = scalar_lea.vmem [#allocation3], %s4319_s26 }
  0x34   : > { %6155 = sst [smem:[#allocation21_spill]] %s4847_s1  ;;  %s561_s21 = sshll.u32 %s551_s18, 4  ;;  %s562_s21 = int_to_ptr.vmem [resolvable:$true] %s561_s21 }
  0x35   : > { %p4850_p11 = pnand %p4353_p3, %p96_p12  ;;  %s6157_s12 = sld [smem:[#allocation36_spill]] }
  0x36   : > { %s568_s24 = sand.u32 1, %s4653_s30   ;;  %s548_s15 = scalar_lea.sflag [#allocation4], %s547_s23 }
  0x37   : > { %p4511_p7 = pneg %p4850_p11  ;;  %s4522_s25 = scalar_lea.vmem %s562_s21, 192 }
  0x38   : > { %p4523_p2 = scmp.ne.s32.totalorder %s562_s21, %s4522_s25  ;;  %s4658_s18 = smov [#allocation3]  }
  0x39   : > { %s4527_s0 = sshll.u32 %s4658_s18, 4  ;;  %s4528_s0 = int_to_ptr.vmem [resolvable:$false] %s4527_s0 }
  0x3a   : > { %p4525_p6 = pnand %p4523_p2, %p4511_p7  ;;  %s4529_s1 = scalar_lea.vmem %s4528_s0, 384 }
  0x3b   : > { %s559_s17 = scalar_lea.hbm %s6157_s12, %s4320_s22  ;;  %p4530_p12 = scmp.lt.s32.totalorder %s562_s21, %s4528_s0 }
  0x3c   : > { %p4526_p9 = pneg %p4525_p6  ;;  %p4531_p13 = scmp.lt.s32.totalorder %s4529_s1, %s4522_s25 }
  0x3e   : > { %p4532_p3 = por %p4531_p13, %p4530_p12 }
  0x40   : > { %p4533_p5 = pnand %p4532_p3, %p4526_p9 }
  0x42   : > { %4536 = shalt.err (!%p4533_p5)
}
  0x43   : > { %4344 = dma.hbm_to_vmem [thread:$0]  (!%p4850_p11), %s559_s17, 192, %s562_s21, %s548_s15  }
  0x44   : > { %s580_s16 = scalar_lea.hbm %s6101_s2, %s4320_s22  ;;  %s572_s23 = scalar_lea.vmem [#allocation6], %s4319_s26 }
  0x45   : > { %s582_s28 = sshll.u32 %s572_s23, 4  ;;  %s569_s30 = scalar_lea.sflag [#allocation7], %s568_s24  ;;  %s583_s28 = int_to_ptr.vmem [resolvable:$true] %s582_s28 }
  0x46   : > { %s4550_s18 = scalar_lea.vmem %s583_s28, 192  ;;  %s4659_s0 = smov [#allocation6]  }
  0x47   : > { %p4551_p2 = scmp.ne.s32.totalorder %s583_s28, %s4550_s18  ;;  %s4555_s1 = sshll.u32 %s4659_s0, 4  ;;  %s4556_s1 = int_to_ptr.vmem [resolvable:$false] %s4555_s1 }
  0x48   : > { %s4557_s25 = scalar_lea.vmem %s4556_s1, 384  ;;  %p4558_p9 = scmp.lt.s32.totalorder %s583_s28, %s4556_s1 }
  0x49   : > { %p4553_p6 = pnand %p4551_p2, %p4511_p7  ;;  %p4559_p13 = scmp.lt.s32.totalorder %s4557_s25, %s4550_s18 }
  0x4b   : > { %p4554_p12 = pneg %p4553_p6  ;;  %p4560_p3 = por %p4559_p13, %p4558_p9 }
  0x4d   : > { %p4561_p5 = pnand %p4560_p3, %p4554_p12 }
  0x4f   : > { %4564 = shalt.err (!%p4561_p5)
}
  0x50   : > { %4347 = dma.hbm_to_vmem [thread:$0]  (!%p4850_p11), %s580_s16, 192, %s583_s28, %s569_s30  }
  0x51   : > { %591 = sbr.rel (%p4809_p8) target bundleno = 1278 (0x4fe), region = 88 }
  0x56   : > { %s4876_s17 = sand.u32 1, %s4637_s27  }
  0x57   : > { %s4323_s24 = smul.u32 12, %s4876_s17  ;;  %s594_s26 = scalar_lea.sflag [#allocation4], %s4876_s17 }
  0x59   : > { %s4880_s22 = scalar_lea.vmem [#allocation3], %s4323_s24 }
  0x5a   : > { %4616 = dma.done.wait (%p4799_p4), %s594_s26, 192  }
  0x5b   : > { %4618 = vsyncadd (%p4799_p4), %s594_s26, 4294967104  ;;  %s602_s3 = sand.u32 1, %s4790_s14   ;;  %s4887_s30 = scalar_lea.vmem [#allocation6], %s4323_s24 }
  0x5c   : > { %s603_s28 = scalar_lea.sflag [#allocation7], %s602_s3 }
  0x5d   : > { %4620 = dma.done.wait (%p4799_p4), %s603_s28, 192  }
  0x5e   : > { %4622 = vsyncadd (%p4799_p4), %s603_s28, 4294967104 }
  0x5f   : > { %4624 = dma.done.wait (%p101_p1), [#allocation7], 1152  }
  0x60   : > { %4626 = vsyncadd (%p101_p1), [#allocation7], 4294966144  ;;  %v4660_v1 = vmov 0.0   ;;  %vm4661_vm0 = vmmov 0   ;;  %p676_p8 = scmp.lt.s32.totalorder %s4645_s29, 1  ;;  %v4662_v2 = vmov 0  }
  0x61   : > { %4254 = vmatprep.subr.mxu1 %v4660_v1  ;;  %4256 = vmatprep.mubr.msk.f32.mxu1 %vm4661_vm0, %v4660_v1  ;;  %vm724_vm1 = vcmask 1043456   ;;  %vm720_vm2 = vcmask 31744   ;;  %v692_v3 = vld [vmem:[%s4880_s22 + $0x8] sm:$0xf]  ;;  %v704_v4 = vld [vmem:[%s6103_s4] sm:$0xf] }
  0x62   : > { %795 = vmatprep.mubr.f32.mxu0 %v4660_v1  ;;  %4412 = vset.pattern.permute.xlu0 %v4662_v2  ;;  %s677_s19 = scalar_select %p676_p8, %s4645_s29, 1  ;;  %v691_v5 = vld [vmem:[%s4880_s22] sm:$0xff]  ;;  %v693_v10 = vld [vmem:[%s4887_s30] sm:$0xff]  ;;  %vm1212_vm3 = vcmask 7168   ;;  %vm1253_vm4 = vcmask 252928   ;;  %vm1249_vm5 = vcmask 1039360  }
  0x63   : > { %4413 = vset.pattern.permute.xlu1 %v4662_v2  ;;  %s6158_s12 = sld [smem:[#allocation35_spill]]  ;;  %4255 = vmatpush3.msk.msra.mxu1 %vm724_vm1, %v692_v3  ;;  %v4914_v6 = vcombine.high %v691_v5, %v691_v5  ;;  %v705_v11 = vld [vmem:[%s6104_s5] sm:$0x3]  ;;  %v4936_v13 = vcombine.high %v693_v10, %v693_v10  ;;  %s4663_s26 = smov 1   ;;  %vm1318_vm6 = vcmask 1041408   ;;  %vm1314_vm7 = vcmask 15360  }
  0x64   : > { %s4325_s14 = smul.u32 12, %s677_s19  ;;  %4257 = vmatmul.mubr.msk.f32.vlgmr.msra.gmra.mxu1 %vm720_vm2, %v704_v4  ;;  %4259 = vmatprep.subr.mxu1 %v4660_v1  ;;  %v694_v12 = vld [vmem:[%s4887_s30 + $0x8] sm:$0xf]  ;;  %s4664_s3 = smov 127   ;;  %v714_v54 = vld [vmem:[#allocation2] sm:$0x1] }
  0x65   : > { %6159 = vst [vmem:[#allocation22_spill] sm:$0xff] %v4914_v6  ;;  %4160 = vmatprep.subr.msk.mxu0 %vm724_vm1, %v4914_v6  ;;  %4261 = vmatprep.mubr.msk.f32.mxu1 %vm4661_vm0, %v4660_v1  ;;  %6161 = vst [vmem:[#allocation24_spill] sm:$0xff] %v4936_v13  ;;  %v706_v14 = vld [vmem:[%s6105_s6] sm:$0x3]  ;;  %s6162_s0 = sld [smem:[#allocation39_spill]]  ;;  %vm1530_vm8 = vcmask 254976  }
  0x66   : > { %4161 = vmatpush1.msk.msra.mxu0 %vm724_vm1, %v691_v5  ;;  %1177 = vperm.xlu0 %4412, %v706_v14   ;;  %v707_v15 = vld [vmem:[%s6106_s7] sm:$0x3]  ;;  %s6163_s24 = sld [smem:[#allocation38_spill]]  ;;  %s4324_s19 = smul.u32 24, %s4876_s17  ;;  %vm3992_vm9 = vcmask 261120  }
  0x67   : > { %4162 = vmatmul.mubr.msk.f32.vlgmr.msra.gmra.mxu0 %vm720_vm2, %v704_v4  ;;  %v709_v49 = vld [vmem:[%s6108_s9] sm:$0x3]  ;;  %s6188_s28 = sld [smem:[#allocation40_spill]]  ;;  %s4665_s1 = smov [#allocation9]  }
  0x68   : > { %948 = vmatprep.mubr.f32.mxu0 %v4660_v1  ;;  %v711_v50 = vld [vmem:[%s6110_s11] sm:$0x3]  ;;  %s674_s20 = scalar_lea.vmem [#allocation9], %s4324_s19  ;;  %s6190_s23 = sld [smem:[#allocation42_spill]] }
  0x69   : > { %s4911_s16 = scalar_lea.vmem %s6158_s12, %s4325_s14  ;;  %v713_v51 = vld [vmem:[%s6112_s13] sm:$0x3]  ;;  %s4326_s14 = smul.u32 384, %s4645_s29 }
  0x6a   : > { %v689_v7 = vld [vmem:[%s4911_s16] sm:$0xff]  ;;  %v690_v8 = vld [vmem:[%s4911_s16 + $0x8] sm:$0xf]  ;;  %1187 = vperm.xlu0 %4412, %v707_v15   ;;  %s4011_s21 = sshll.u32 %s674_s20, 4  ;;  %s3995_s29 = scalar_lea.sflag [#allocation5], %s4876_s17  ;;  %s4012_s21 = int_to_ptr.vmem [resolvable:$true] %s4011_s21 }
  0x6b   : > { %v4920_v9 = vcombine.high %v689_v7, %v689_v7  ;;  %4260 = vmatpush3.msk.msra.mxu1 %vm724_vm1, %v690_v8  ;;  %v710_v52 = vld [vmem:[%s6109_s10] sm:$0x3]  ;;  %s4569_s25 = sshll.u32 %s4665_s1, 4  ;;  %s4570_s25 = int_to_ptr.vmem [resolvable:$false] %s4569_s25 }
  0x6c   : > { %4262 = vmatmul.mubr.msk.f32.vlgmr.msra.gmra.mxu1 %vm720_vm2, %v705_v11  ;;  %4264 = vmatprep.subr.mxu1 %v4660_v1  ;;  %v712_v53 = vld [vmem:[%s6162_s0] sm:$0x3]  ;;  %s4565_s0 = scalar_lea.vmem %s4012_s21, 384  ;;  %p4572_p7 = scmp.lt.s32.totalorder %s4012_s21, %s4570_s25 }
  0x6d   : > { %6160 = vst [vmem:[#allocation23_spill] sm:$0xff] %v4920_v9  ;;  %4165 = vmatprep.subr.msk.mxu0 %vm724_vm1, %v4920_v9  ;;  %4265 = vmatpush3.msk.msra.mxu1 %vm724_vm1, %v694_v12  ;;  %p4566_p1 = scmp.ne.s32.totalorder %s4012_s21, %s4565_s0 }
  0x6e   : > { %4166 = vmatpush1.msk.msra.mxu0 %vm724_vm1, %v689_v7  ;;  %4266 = vmatprep.mubr.msk.f32.mxu1 %vm4661_vm0, %v4660_v1  ;;  %s6057_s18 = scalar_lea.hbm %s6190_s23, %s4326_s14 }
  0x6f   : > { %4167 = vmatmul.mubr.msk.f32.vlgmr.msra.gmra.mxu0 %vm720_vm2, %v705_v11  ;;  %4170 = vmatprep.subr.msk.mxu0 %vm724_vm1, %v4936_v13  ;;  %p4567_p4 = pnand %p4566_p1, %p4838_p0 }
  0x70   : > { %4267 = vmatmul.mubr.msk.f32.vlgmr.msra.gmra.mxu1 %vm720_vm2, %v705_v11  ;;  %4171 = vmatpush1.msk.msra.mxu0 %vm724_vm1, %v693_v10 }
  0x71   : > { %1098 = vmatprep.mubr.f32.mxu0 %v4660_v1  ;;  %4269 = vmatprep.subr.mxu1 %v4660_v1  ;;  %p4568_p11 = pneg %p4567_p4 }
  0x72   : > { %4271 = vmatprep.mubr.msk.f32.mxu1 %vm4661_vm0, %v4660_v1 }
  0x73   : > { %4172 = vmatmul.mubr.msk.f32.vlgmr.msra.gmra.mxu0 %vm720_vm2, %v705_v11 }
  0x74   : > { %1389 = vmatprep.mubr.f32.mxu0 %v4660_v1 }
  0xe1   : > { %v1178_v16 = vpop.permute.xlu0 %1177 }
  0xe2   : > { %v4966_v21 = vrot.slane %v1178_v16, 6 }
  0xe5   : > { %v1188_v19 = vpop.permute.xlu0 %1187 }
  0xe6   : > { %v4970_v25 = vrot.slane %v1188_v19, 6 }
 0x124   : > { %v4962_v17 = vpop.f32.mrf.mxu1 }
 0x125   : > { %v4997_v45 = vmul.f32 %v1178_v16, %v4962_v17  ;;  %v1184_v56 = vmul.f32 %v4966_v21, %v4962_v17 }
 0x126   : > { %v4258_v18 = vpop.f32.mrf.mxu1 }
 0x127   : > { %v4964_v20 = vpop.f32.mrf.mxu0  ;;  %v5049_v62 = vadd.f32 %v4970_v25, %v1184_v56 }
 0x128   : > { %v4988_v40 = vmul.f32 %v1178_v16, %v4964_v20  ;;  %v1182_v57 = vmul.f32 %v4966_v21, %v4964_v20 }
 0x129   : > { %v799_v24 = vpop.f32.mrf.mxu0 }
 0x12a   : > { %v1183_v26 = vmul.f32 %v4966_v21, %v799_v24  ;;  %v1198_v27 = vmul.f32 %v1178_v16, %v799_v24  ;;  %v5052_v63 = vadd.f32 %v4970_v25, %v1182_v57 }
 0x12c   : > { %v1021_v22 = vpop.f32.mrf.mxu1  ;;  %v4976_v30 = vadd.f32 %v4970_v25, %v1183_v26  ;;  %v2255_v31 = vrot.slane %v1198_v27, 6 }
 0x12d   : > { %v4968_v23 = vmul.f32 %v1178_v16, %v1021_v22 }
 0x12e   : > { %v4263_v28 = vpop.f32.mrf.mxu1  ;;  %v4981_v35 = vsub.f32 %v4976_v30, %v2255_v31 }
 0x12f   : > { %1210 = vrot.lane.b32.xlu0 %v4968_v23, %s4663_s26  ;;  %v950_v29 = vpop.f32.mrf.mxu0  ;;  %v1552_v0 = vrot.slane %v4968_v23, 6 }
 0x130   : > { %v4978_v32 = vmul.f32 %v1178_v16, %v950_v29  ;;  %v1171_v33 = vpop.f32.mrf.mxu1 }
 0x131   : > { %v952_v34 = vpop.f32.mrf.mxu0  ;;  %v5014_v48 = vmul.f32 %v1178_v16, %v1171_v33  ;;  %v1558_v14 = vsub.f32 %v5049_v62, %v1552_v0  ;;  %v5072_v33 = vld [vmem:[%s6163_s24] sm:$0x3]  ;;  %s4571_s24 = scalar_lea.vmem %s4570_s25, 768 }
 0x132   : > { %v1195_v36 = vmul.f32 %v1178_v16, %v952_v34  ;;  %1206 = vrot.lane.b32.xlu1 %v4978_v32, %s4663_s26  ;;  %v4268_v37 = vpop.f32.mrf.mxu1  ;;  %v1550_v2 = vrot.slane %v4978_v32, 6  ;;  %p4573_p2 = scmp.lt.s32.totalorder %s4571_s24, %s4565_s0 }
 0x133   : > { %1247 = vrot.lane.b32.xlu0 %v4968_v23, %s4664_s3  ;;  %v1100_v38 = vpop.f32.mrf.mxu0  ;;  %v1561_v25 = vmax.f32 %v1558_v14, 0.0 }
 0x134   : > { %v1551_v39 = vrot.slane %v1195_v36, 6  ;;  %v5009_v47 = vmul.f32 %v1178_v16, %v1100_v38  ;;  %p4574_p6 = por %p4573_p2, %p4572_p7 }
 0x135   : > { %v1102_v41 = vpop.f32.mrf.mxu0 }
 0x136   : > { %v4991_v42 = vsub.f32 %v4976_v30, %v1551_v39  ;;  %v1201_v43 = vmul.f32 %v1178_v16, %v1102_v41  ;;  %1208 = vrot.lane.b32.xlu1 %v1195_v36, %s4663_s26  ;;  %v1556_v16 = vsub.f32 %v5052_v63, %v1550_v2  ;;  %v2256_v41 = vrot.slane %v4997_v45, 6  ;;  %p4575_p12 = pnand %p4574_p6, %p4568_p11 }
 0x137   : > { %1220 = vrot.lane.b32.xlu0 %v4988_v40, %s4663_s26 }
 0x138   : > { %v2959_v44 = vrot.slane %v1201_v43, 6  ;;  %v1560_v26 = vmax.f32 %v4991_v42, 0.0  ;;  %v1559_v28 = vmax.f32 %v1556_v16, 0.0 }
 0x13a   : > { %v5000_v46 = vsub.f32 %v4976_v30, %v2959_v44  ;;  %1243 = vrot.lane.b32.xlu1 %v4978_v32, %s4664_s3  ;;  %v2254_v44 = vrot.slane %v4988_v40, 6 }
 0x13b   : > { %1224 = vrot.lane.b32.xlu0 %v4997_v45, %s4663_s26 }
 0x13c   : > { %v2260_v2 = vsub.f32 %v5052_v63, %v2254_v44 }
 0x13e   : > { %1245 = vrot.lane.b32.xlu1 %v1195_v36, %s4664_s3 }
 0x13f   : > { %1259 = vrot.lane.b32.xlu0 %v4997_v45, %s4664_s3 }
 0x142   : > { %1222 = vrot.lane.b32.xlu1 %v1198_v27, %s4663_s26 }
 0x143   : > { %1233 = vrot.lane.b32.xlu0 %v5009_v47, %s4663_s26 }
 0x146   : > { %1257 = vrot.lane.b32.xlu1 %v1198_v27, %s4664_s3 }
 0x147   : > { %1237 = vrot.lane.b32.xlu0 %v5014_v48, %s4663_s26 }
 0x14a   : > { %1255 = vrot.lane.b32.xlu1 %v4988_v40, %s4664_s3 }
 0x14b   : > { %1269 = vrot.lane.b32.xlu0 %v5014_v48, %s4664_s3 }
 0x14e   : > { %1235 = vrot.lane.b32.xlu1 %v1201_v43, %s4663_s26 }
 0x14f   : > { %1290 = vperm.xlu0 %4412, %v709_v49   ;;  %v1582_v49 = vrot.slane %v1561_v25, 2 }
 0x152   : > { %1267 = vrot.lane.b32.xlu1 %v1201_v43, %s4664_s3 }
 0x153   : > { %1491 = vperm.xlu0 %4412, %v711_v50  }
 0x156   : > { %1265 = vrot.lane.b32.xlu1 %v5009_v47, %s4664_s3 }
 0x157   : > { %1510 = vperm.xlu0 %4412, %v713_v51   ;;  %v1581_v51 = vrot.slane %v1560_v26, 2 }
 0x15a   : > { %1468 = vperm.xlu1 %4413, %v710_v52   ;;  %v1580_v52 = vrot.slane %v1559_v28, 2 }
 0x15e   : > { %1499 = vperm.xlu1 %4413, %v712_v53  }
 0x162   : > { %1540 = vperm.xlu1 %4413, %v714_v54  }
 0x1a1   : > { %v1211_v55 = vpop.permute.xlu0 %1210 }
 0x1a4   : > { %v1207_v58 = vpop.permute.xlu1 %1206 }
 0x1a5   : > { %v1216_v59 = vsel %vm1212_vm3, %v4978_v32, %v1207_v58  ;;  %v1248_v60 = vpop.permute.xlu0 %1247 }
 0x1a6   : > { %v1276_v61 = vrot.slane %v1216_v59, 6  ;;  %v1254_v3 = vsel %vm1253_vm4, %v1248_v60, %v4968_v23 }
 0x1a7   : > { %v1787_v15 = vrot.slane %v1254_v3, 6 }
 0x1a8   : > { %v1209_v4 = vpop.permute.xlu1 %1208  ;;  %v1282_v5 = vsub.f32 %v5052_v63, %v1276_v61 }
 0x1a9   : > { %v1213_v7 = vsel %vm1212_vm3, %v1207_v58, %v1209_v4  ;;  %v1214_v8 = vsel %vm1212_vm3, %v1209_v4, %v1211_v55  ;;  %v1221_v10 = vpop.permute.xlu0 %1220  ;;  %v1793_v27 = vsub.f32 %v5049_v62, %v1787_v15 }
 0x1aa   : > { %v1277_v11 = vrot.slane %v1213_v7, 6  ;;  %v1278_v12 = vrot.slane %v1214_v8, 6  ;;  %v1285_v20 = vmax.f32 %v1282_v5, 0.0  ;;  %v1229_v24 = vsel %vm1212_vm3, %v4988_v40, %v1221_v10 }
 0x1ab   : > { %v2020_v36 = vrot.slane %v1229_v24, 6  ;;  %v1796_v50 = vmax.f32 %v1793_v27, 0.0  ;;  %v2262_v5 = vsub.f32 %v5049_v62, %v2256_v41 }
 0x1ac   : > { %v1283_v17 = vsub.f32 %v4976_v30, %v1277_v11  ;;  %v1284_v18 = vsub.f32 %v5049_v62, %v1278_v12  ;;  %v1244_v19 = vpop.permute.xlu1 %1243  ;;  %v1311_v34 = vrot.slane %v1285_v20, 2 }
 0x1ad   : > { %v1225_v21 = vpop.permute.xlu0 %1224  ;;  %v2026_v56 = vsub.f32 %v5052_v63, %v2020_v36  ;;  %v1817_v3 = vrot.slane %v1796_v50, 2  ;;  %v2265_v24 = vmax.f32 %v2262_v5, 0.0 }
 0x1ae   : > { %v1286_v22 = vmax.f32 %v1283_v17, 0.0  ;;  %v1287_v23 = vmax.f32 %v1284_v18, 0.0 }
 0x1af   : > { %v2029_v14 = vmax.f32 %v2026_v56, 0.0 }
 0x1b0   : > { %v1312_v29 = vrot.slane %v1286_v22, 2  ;;  %v1313_v31 = vrot.slane %v1287_v23, 2  ;;  %v1246_v32 = vpop.permute.xlu1 %1245  ;;  %v2264_v23 = vmax.f32 %v4981_v35, 0.0  ;;  %v2960_v35 = vrot.slane %v5014_v48, 6 }
 0x1b1   : > { %v1250_v37 = vsel %vm1249_vm5, %v1244_v19, %v1246_v32  ;;  %v1251_v38 = vsel %vm1249_vm5, %v1246_v32, %v1248_v60  ;;  %v1260_v39 = vpop.permute.xlu0 %1259 }
 0x1b2   : > { %v1785_v42 = vrot.slane %v1250_v37, 6  ;;  %v1786_v43 = vrot.slane %v1251_v38, 6  ;;  %4175 = vmatprep.subr.msk.mxu0 %vm1318_vm6, %v1312_v29  ;;  %4270 = vmatpush3.msk.msra.mxu1 %vm1318_vm6, %v1313_v31  ;;  %v1264_v55 = vsel %vm1253_vm4, %v1260_v39, %v4997_v45  ;;  %v2050_v31 = vrot.slane %v2029_v14, 2 }
 0x1b3   : > { %4176 = vmatpush1.msk.msra.mxu0 %vm1318_vm6, %v1311_v34  ;;  %4272 = vmatmul.mubr.msk.f32.vlgmr.msra.gmra.mxu1 %vm1314_vm7, %v5072_v33  ;;  %v2491_v4 = vrot.slane %v1264_v55, 6  ;;  %v2958_v38 = vrot.slane %v5009_v47, 6  ;;  %v2285_v41 = vrot.slane %v2264_v23, 2  ;;  %v2966_v56 = vsub.f32 %v5049_v62, %v2960_v35 }
 0x1b4   : > { %v1791_v53 = vsub.f32 %v5052_v63, %v1785_v42  ;;  %v1792_v54 = vsub.f32 %v4976_v30, %v1786_v43  ;;  %4274 = vmatprep.subr.mxu1 %v4660_v1  ;;  %4177 = vmatmul.mubr.msk.f32.vlgmr.msra.gmra.mxu0 %vm1314_vm7, %v5072_v33  ;;  %v1223_v40 = vpop.permute.xlu1 %1222  ;;  %v2286_v42 = vrot.slane %v2265_v24, 2 }
 0x1b5   : > { %4275 = vmatpush3.msk.msra.mxu1 %vm1318_vm6, %v1582_v49  ;;  %v1226_v57 = vsel %vm1212_vm3, %v1221_v10, %v1223_v40  ;;  %v1227_v58 = vsel %vm1212_vm3, %v1223_v40, %v1225_v21  ;;  %4180 = vmatprep.subr.msk.mxu0 %vm1318_vm6, %v1581_v51  ;;  %v5095_v59 = vpop.permute.xlu0 %1233  ;;  %v2263_v21 = vmax.f32 %v2260_v2, 0.0  ;;  %v2497_v22 = vsub.f32 %v5049_v62, %v2491_v4 }
 0x1b6   : > { %v1794_v60 = vmax.f32 %v1791_v53, 0.0  ;;  %v1795_v45 = vmax.f32 %v1792_v54, 0.0  ;;  %v2021_v61 = vrot.slane %v1226_v57, 6  ;;  %v2022_v0 = vrot.slane %v1227_v58, 6  ;;  %4181 = vmatpush1.msk.msra.mxu0 %vm1318_vm6, %v1580_v52  ;;  %4276 = vmatprep.mubr.msk.f32.mxu1 %vm4661_vm0, %v4660_v1 }
 0x1b7   : > { %4279 = vmatprep.subr.mxu1 %v4660_v1  ;;  %1653 = vmatprep.mubr.f32.mxu0 %v4660_v1  ;;  %v1242_v15 = vsel %vm1212_vm3, %v5009_v47, %v5095_v59  ;;  %v2284_v47 = vrot.slane %v2263_v21, 2 }
 0x1b8   : > { %v1815_v7 = vrot.slane %v1794_v60, 2  ;;  %v1816_v8 = vrot.slane %v1795_v45, 2  ;;  %v2027_v10 = vsub.f32 %v4976_v30, %v2021_v61  ;;  %v2028_v11 = vsub.f32 %v5049_v62, %v2022_v0  ;;  %4277 = vmatmul.mubr.msk.f32.vlgmr.msra.gmra.mxu1 %vm1314_vm7, %v5072_v33  ;;  %v1258_v12 = vpop.permute.xlu1 %1257  ;;  %4182 = vmatmul.mubr.msk.f32.vlgmr.msra.gmra.mxu0 %vm1314_vm7, %v5072_v33 }
 0x1b9   : > { %4280 = vmatpush3.msk.msra.mxu1 %vm1318_vm6, %v1817_v3  ;;  %v1262_v16 = vsel %vm1249_vm5, %v1258_v12, %v1260_v39  ;;  %v1238_v17 = vpop.permute.xlu0 %1237  ;;  %4281 = vmatprep.mubr.msk.f32.mxu1 %vm4661_vm0, %v4660_v1  ;;  %v2724_v27 = vrot.slane %v1242_v15, 6  ;;  %v2500_v39 = vmax.f32 %v2497_v22, 0.0 }
 0x1ba   : > { %v2030_v18 = vmax.f32 %v2027_v10, 0.0  ;;  %v2031_v19 = vmax.f32 %v2028_v11, 0.0  ;;  %v2490_v20 = vrot.slane %v1262_v16, 6  ;;  %4185 = vmatprep.subr.msk.mxu0 %vm1318_vm6, %v1816_v8  ;;  %1888 = vmatprep.mubr.f32.mxu0 %v4660_v1  ;;  %v2968_v10 = vmax.f32 %v5000_v46, 0.0 }
 0x1bb   : > { %4186 = vmatpush1.msk.msra.mxu0 %vm1318_vm6, %v1815_v7  ;;  %4284 = vmatprep.subr.mxu1 %v4660_v1  ;;  %v2730_v43 = vsub.f32 %v5052_v63, %v2724_v27  ;;  %v2521_v57 = vrot.slane %v2500_v39, 2  ;;  %v2969_v7 = vmax.f32 %v2966_v56, 0.0  ;;  %v5241_v39 = vld [vmem:[#allocation8 + $0x18] sm:$0xff]  ;;  %v5263_v56 = vld [vmem:[#allocation8 + $0x40] sm:$0x3] }
 0x1bc   : > { %v2051_v25 = vrot.slane %v2030_v18, 2  ;;  %v2052_v26 = vrot.slane %v2031_v19, 2  ;;  %v2496_v28 = vsub.f32 %v4976_v30, %v2490_v20  ;;  %4282 = vmatmul.mubr.msk.f32.vlgmr.msra.gmra.mxu1 %vm1314_vm7, %v5072_v33  ;;  %v1256_v29 = vpop.permute.xlu1 %1255  ;;  %4187 = vmatmul.mubr.msk.f32.vlgmr.msra.gmra.mxu0 %vm1314_vm7, %v5072_v33 }
 0x1bd   : > { %v1261_v32 = vsel %vm1249_vm5, %v1256_v29, %v1258_v12  ;;  %4286 = vmatprep.mubr.msk.f32.mxu1 %vm4661_vm0, %v4660_v1  ;;  %2123 = vmatprep.mubr.f32.mxu0 %v4660_v1  ;;  %v1270_v37 = vpop.permute.xlu0 %1269  ;;  %v2733_v0 = vmax.f32 %v2730_v43, 0.0  ;;  %v5222_v29 = vld [vmem:[#allocation8 + $0x10] sm:$0xff] }
 0x1be   : > { %v2499_v34 = vmax.f32 %v2496_v28, 0.0  ;;  %v2489_v36 = vrot.slane %v1261_v32, 6  ;;  %4190 = vmatprep.subr.msk.mxu0 %vm1318_vm6, %v2051_v25  ;;  %4285 = vmatpush3.msk.msra.mxu1 %vm1318_vm6, %v2052_v26  ;;  %v1274_v51 = vsel %vm1253_vm4, %v1270_v37, %v5014_v48  ;;  %v2964_v48 = vsub.f32 %v5052_v63, %v2958_v38  ;;  %v5226_v32 = vld [vmem:[#allocation8 + $0x8] sm:$0xff] }
 0x1bf   : > { %4191 = vmatpush1.msk.msra.mxu0 %vm1318_vm6, %v2050_v31  ;;  %4289 = vmatprep.subr.mxu1 %v4660_v1  ;;  %v1293_v26 = vlaneseq  ;;  %v5224_v31 = vld [vmem:[#allocation8] sm:$0xff]  ;;  %v5239_v38 = vld [vmem:[#allocation8 + $0x28] sm:$0xff] }
 0x1c0   : > { %v2520_v44 = vrot.slane %v2499_v34, 2  ;;  %v2495_v49 = vsub.f32 %v5052_v63, %v2489_v36  ;;  %4287 = vmatmul.mubr.msk.f32.vlgmr.msra.gmra.mxu1 %vm1314_vm7, %v5072_v33  ;;  %4192 = vmatmul.mubr.msk.f32.vlgmr.msra.gmra.mxu0 %vm1314_vm7, %v5072_v33  ;;  %v1236_v50 = vpop.permute.xlu1 %1235  ;;  %v2967_v8 = vmax.f32 %v2964_v48, 0.0  ;;  %v5265_v48 = vld [vmem:[#allocation8 + $0x30] sm:$0x3] }
 0x1c1   : > { %4195 = vmatprep.subr.msk.mxu0 %vm1318_vm6, %v2285_v41  ;;  %4290 = vmatpush3.msk.msra.mxu1 %vm1318_vm6, %v2286_v42  ;;  %v1239_v52 = vsel %vm1212_vm3, %v5095_v59, %v1236_v50  ;;  %v1240_v53 = vsel %vm1212_vm3, %v1236_v50, %v1238_v17  ;;  %v3195_v59 = vrot.slane %v1274_v51, 6  ;;  %v2754_v17 = vrot.slane %v2733_v0, 2  ;;  %v5243_v41 = vld [vmem:[#allocation8 + $0x20] sm:$0xff] }
 0x1c2   : > { %v2498_v54 = vmax.f32 %v2495_v49, 0.0  ;;  %v2725_v55 = vrot.slane %v1239_v52, 6  ;;  %v2726_v40 = vrot.slane %v1240_v53, 6  ;;  %4196 = vmatpush1.msk.msra.mxu0 %vm1318_vm6, %v2284_v47  ;;  %4291 = vmatprep.mubr.msk.f32.mxu1 %vm4661_vm0, %v4660_v1  ;;  %v2988_v20 = vrot.slane %v2967_v8, 2 }
 0x1c3   : > { %4200 = vmatprep.subr.msk.mxu0 %vm1318_vm6, %v2520_v44  ;;  %4294 = vmatprep.subr.mxu1 %v4660_v1  ;;  %v3201_v11 = vsub.f32 %v5049_v62, %v3195_v59  ;;  %v5217_v27 = vshrl.u32 %v1293_v26, 7 }
 0x1c4   : > { %v2519_v58 = vrot.slane %v2498_v54, 2  ;;  %v2731_v60 = vsub.f32 %v4976_v30, %v2725_v55  ;;  %v2732_v45 = vsub.f32 %v5049_v62, %v2726_v40  ;;  %2357 = vmatprep.mubr.f32.mxu0 %v4660_v1  ;;  %4292 = vmatmul.mubr.msk.f32.vlgmr.msra.gmra.mxu1 %vm1314_vm7, %v5072_v33  ;;  %v1268_v61 = vpop.permute.xlu1 %1267  ;;  %v2989_v62 = vrot.slane %v2968_v10, 2 }
 0x1c5   : > { %4295 = vmatpush3.msk.msra.mxu1 %vm1318_vm6, %v2521_v57  ;;  %4197 = vmatmul.mubr.msk.f32.vlgmr.msra.gmra.mxu0 %vm1314_vm7, %v5072_v33  ;;  %v1272_v2 = vsel %vm1249_vm5, %v1268_v61, %v1270_v37  ;;  %v3204_v21 = vmax.f32 %v3201_v11, 0.0  ;;  %v5220_v28 = vsub.s32 0, %v5217_v27  ;;  %v1564_v35 = vsub.s32 2, %v5217_v27  ;;  %v5267_v57 = vld [vmem:[#allocation8 + $0x38] sm:$0x3] }
 0x1c6   : > { %v2734_v3 = vmax.f32 %v2731_v60, 0.0  ;;  %v2735_v4 = vmax.f32 %v2732_v45, 0.0  ;;  %v3194_v5 = vrot.slane %v1272_v2, 6  ;;  %4201 = vmatpush1.msk.msra.mxu0 %vm1318_vm6, %v2519_v58  ;;  %4296 = vmatprep.mubr.msk.f32.mxu1 %vm4661_vm0, %v4660_v1  ;;  %v5231_v34 = vsub.s32 6, %v5217_v27 }
 0x1c7   : > { %2592 = vmatprep.mubr.f32.mxu0 %v4660_v1  ;;  %4299 = vmatprep.subr.mxu1 %v4660_v1  ;;  %v1296_v36 = vrot.slane %v5224_v31, %v5220_v28  ;;  %v1300_v37 = vrot.slane %v5226_v32, %v5220_v28  ;;  %v1573_v42 = vrot.slane %v5222_v29, %v1564_v35 }
 0x1c8   : > { %v2755_v12 = vrot.slane %v2734_v3, 2  ;;  %v2756_v14 = vrot.slane %v2735_v4, 2  ;;  %v3200_v15 = vsub.f32 %v4976_v30, %v3194_v5  ;;  %4297 = vmatmul.mubr.msk.f32.vlgmr.msra.gmra.mxu1 %vm1314_vm7, %v5072_v33  ;;  %v1266_v16 = vpop.permute.xlu1 %1265  ;;  %v2990_v30 = vrot.slane %v2969_v7, 2 }
 0x1c9   : > { %4202 = vmatmul.mubr.msk.f32.vlgmr.msra.gmra.mxu0 %vm1314_vm7, %v5072_v33  ;;  %v1271_v46 = vsel %vm1249_vm5, %v1266_v16, %v1268_v61  ;;  %4301 = vmatprep.mubr.msk.f32.mxu1 %vm4661_vm0, %v4660_v1  ;;  %v1565_v43 = vrot.slane %v5224_v31, %v1564_v35  ;;  %v1569_v44 = vrot.slane %v5226_v32, %v1564_v35 }
 0x1ca   : > { %v3203_v18 = vmax.f32 %v3200_v15, 0.0  ;;  %v3193_v19 = vrot.slane %v1271_v46, 6  ;;  %4205 = vmatprep.subr.msk.mxu0 %vm1318_vm6, %v2755_v12  ;;  %4300 = vmatpush3.msk.msra.mxu1 %vm1318_vm6, %v2756_v14  ;;  %v2043_v51 = vrot.slane %v5222_v29, %v5231_v34  ;;  %v2035_v52 = vrot.slane %v5224_v31, %v5231_v34  ;;  %v1291_v58 = vpop.permute.xlu0 %1290 }
 0x1cb   : > { %4206 = vmatpush1.msk.msra.mxu0 %vm1318_vm6, %v2754_v17  ;;  %2827 = vmatprep.mubr.f32.mxu0 %v4660_v1  ;;  %v2039_v53 = vrot.slane %v5226_v32, %v5231_v34  ;;  %v2277_v54 = vrot.slane %v5239_v38, %v5220_v28  ;;  %v2269_v55 = vrot.slane %v5241_v39, %v5220_v28 }
 0x1cc   : > { %v3224_v22 = vrot.slane %v3203_v18, 2  ;;  %v3199_v23 = vsub.f32 %v5052_v63, %v3193_v19  ;;  %4302 = vmatmul.mubr.msk.f32.vlgmr.msra.gmra.mxu1 %vm1314_vm7, %v5072_v33  ;;  %4304 = vmatprep.subr.mxu1 %v4660_v1  ;;  %v3225_v63 = vrot.slane %v3204_v21, 2  ;;  %v2273_v40 = vrot.slane %v5243_v41, %v5220_v28 }
 0x1cd   : > { %4207 = vmatmul.mubr.msk.f32.vlgmr.msra.gmra.mxu0 %vm1314_vm7, %v5072_v33  ;;  %4210 = vmatprep.subr.msk.mxu0 %vm1318_vm6, %v2989_v62  ;;  %v2512_v59 = vrot.slane %v5239_v38, %v1564_v35  ;;  %v2504_v60 = vrot.slane %v5241_v39, %v1564_v35  ;;  %v2508_v45 = vrot.slane %v5243_v41, %v1564_v35  ;;  %v5300_v19 = vsub.s32 1, %v5217_v27 }
 0x1ce   : > { %v3202_v24 = vmax.f32 %v3199_v23, 0.0  ;;  %4305 = vmatpush3.msk.msra.mxu1 %vm1318_vm6, %v2990_v30  ;;  %4211 = vmatpush1.msk.msra.mxu0 %vm1318_vm6, %v2988_v20  ;;  %v2981_v3 = vrot.slane %v5239_v38, %v5231_v34  ;;  %v2973_v4 = vrot.slane %v5241_v39, %v5231_v34  ;;  %v2977_v5 = vrot.slane %v5243_v41, %v5231_v34 }
 0x1cf   : > { %4306 = vmatprep.mubr.msk.f32.mxu1 %vm4661_vm0, %v4660_v1  ;;  %4215 = vmatprep.subr.msk.mxu0 %vm1318_vm6, %v3224_v22  ;;  %v3216_v7 = vrot.slane %v5263_v56, %v5220_v28  ;;  %v3208_v8 = vrot.slane %v5265_v48, %v5220_v28  ;;  %v3212_v10 = vrot.slane %v5267_v57, %v5220_v28  ;;  %v5309_v21 = vsub.s32 3, %v5217_v27 }
 0x1d0   : > { %v3223_v25 = vrot.slane %v3202_v24, 2  ;;  %4309 = vmatprep.subr.mxu1 %v4660_v1  ;;  %3061 = vmatprep.mubr.f32.mxu0 %v4660_v1  ;;  %v5287_v12 = vmul.f32 %v1296_v36, %v1291_v58  ;;  %v5289_v14 = vmul.f32 %v1300_v37, %v1291_v58  ;;  %v5291_v15 = vmul.f32 %v1573_v42, %v1291_v58 }
 0x1d1   : > { %4307 = vmatmul.mubr.msk.f32.vlgmr.msra.gmra.mxu1 %vm1314_vm7, %v5072_v33  ;;  %4212 = vmatmul.mubr.msk.f32.vlgmr.msra.gmra.mxu0 %vm1314_vm7, %v5072_v33  ;;  %v5293_v16 = vmul.f32 %v1565_v43, %v1291_v58  ;;  %v1575_v17 = vmul.f32 %v1569_v44, %v1291_v58  ;;  %v5304_v62 = vmul.f32 %v2043_v51, %v1291_v58 }
 0x1d2   : > { %4310 = vmatpush3.msk.msra.mxu1 %vm1318_vm6, %v3225_v63  ;;  %4216 = vmatpush1.msk.msra.mxu0 %vm1318_vm6, %v3223_v25  ;;  %v5306_v20 = vmul.f32 %v2035_v52, %v1291_v58  ;;  %v5311_v22 = vmul.f32 %v2039_v53, %v1291_v58  ;;  %v5313_v23 = vmul.f32 %v2277_v54, %v1291_v58  ;;  %v5318_v63 = vsub.s32 5, %v5217_v27 }
 0x1d3   : > { %4311 = vmatprep.mubr.msk.f32.mxu1 %vm4661_vm0, %v4660_v1  ;;  %3296 = vmatprep.mubr.f32.mxu0 %v4660_v1  ;;  %v5315_v24 = vmul.f32 %v2269_v55, %v1291_v58  ;;  %v5320_v25 = vmul.f32 %v2273_v40, %v1291_v58  ;;  %v5322_v26 = vmul.f32 %v2512_v59, %v1291_v58 }
 0x1d4   : > { %4314 = vmatprep.subr.mxu1 %v4660_v1  ;;  %v5324_v35 = vmul.f32 %v2504_v60, %v1291_v58  ;;  %v5326_v34 = vmul.f32 %v2508_v45, %v1291_v58  ;;  %v1474_v43 = vrot.slane %v5224_v31, %v5300_v19  ;;  %v1478_v44 = vrot.slane %v5226_v32, %v5300_v19 }
 0x1d5   : > { %4312 = vmatmul.mubr.msk.f32.vlgmr.msra.gmra.mxu1 %vm1314_vm7, %v5072_v33  ;;  %4217 = vmatmul.mubr.msk.f32.vlgmr.msra.gmra.mxu0 %vm1314_vm7, %v5072_v33  ;;  %v1799_v33 = vsub.s32 4, %v5217_v27  ;;  %v1741_v52 = vrot.slane %v5222_v29, %v5309_v21  ;;  %v1737_v53 = vrot.slane %v5226_v32, %v5309_v21  ;;  %v5351_v54 = vmul.f32 %v2973_v4, %v1291_v58 }
 0x1d6   : > { %3913 = vmatprep.mubr.f32.mxu0 %v4660_v1  ;;  %4316 = vmatprep.mubr.msk.f32.mxu1 %vm4661_vm0, %v4660_v1  ;;  %v1304_v1 = vrot.slane %v5222_v29, %v5220_v28  ;;  %6164 = vst [vmem:[#allocation25_spill] sm:$0xff] %v5326_v34  ;;  %v5353_v55 = vmul.f32 %v2977_v5, %v1291_v58 }
 0x1d7   : > { %v1808_v49 = vrot.slane %v5222_v29, %v1799_v33  ;;  %v1800_v50 = vrot.slane %v5224_v31, %v1799_v33  ;;  %v1804_v47 = vrot.slane %v5226_v32, %v1799_v33  ;;  %v2747_v61 = vrot.slane %v5239_v38, %v1799_v33  ;;  %6169 = vst [vmem:[#allocation30_spill] sm:$0xff] %v5351_v54 }
 0x1d8   : > { %v2739_v0 = vrot.slane %v5241_v39, %v1799_v33  ;;  %v2743_v2 = vrot.slane %v5243_v41, %v1799_v33  ;;  %v1307_v11 = vmul.f32 %v1304_v1, %v1291_v58  ;;  %6170 = vst [vmem:[#allocation31_spill] sm:$0xff] %v5353_v55  ;;  %v1976_v59 = vrot.slane %v5222_v29, %v5318_v63 }
 0x1d9   : > { %v5295_v46 = vmul.f32 %v1808_v49, %v1291_v58  ;;  %v5297_v18 = vmul.f32 %v1800_v50, %v1291_v58  ;;  %v5302_v30 = vmul.f32 %v1804_v47, %v1291_v58  ;;  %v5328_v1 = vmul.f32 %v2747_v61, %v1291_v58  ;;  %v5345_v47 = vpop.permute.xlu1 %1468 }
 0x1da   : > { %v5330_v36 = vmul.f32 %v2739_v0, %v1291_v58  ;;  %v5332_v37 = vmul.f32 %v2743_v2, %v1291_v58  ;;  %v5341_v49 = vsub.s32 7, %v5217_v27  ;;  %v5343_v50 = vmul.f32 %v2981_v3, %v1291_v58 }
 0x1db   : > { %6165 = vst [vmem:[#allocation26_spill] sm:$0xff] %v5328_v1  ;;  %v1733_v27 = vrot.slane %v5224_v31, %v5309_v21  ;;  %v1968_v60 = vrot.slane %v5224_v31, %v5318_v63  ;;  %v5363_v45 = vmul.f32 %v3216_v7, %v1291_v58  ;;  %v1482_v61 = vrot.slane %v5222_v29, %v5300_v19 }
 0x1dc   : > { %6166 = vst [vmem:[#allocation27_spill] sm:$0xff] %v5330_v36  ;;  %6167 = vst [vmem:[#allocation28_spill] sm:$0xff] %v5332_v37  ;;  %v1972_v0 = vrot.slane %v5226_v32, %v5318_v63  ;;  %v5369_v2 = vmul.f32 %v3208_v8, %v1291_v58  ;;  %v5371_v3 = vmul.f32 %v3212_v10, %v1291_v58  ;;  %v5414_v37 = vpop.permute.xlu0 %1491 }
 0x1dd   : > { %6168 = vst [vmem:[#allocation29_spill] sm:$0xff] %v5343_v50  ;;  %6171 = vst [vmem:[#allocation32_spill] sm:$0xff] %v5363_v45  ;;  %v5374_v4 = vmul.f32 %v1474_v43, %v5345_v47  ;;  %v5377_v5 = vmul.f32 %v1478_v44, %v5345_v47  ;;  %v2211_v13 = vrot.slane %v5222_v29, %v5341_v49  ;;  %v5390_v58 = vpop.permute.xlu1 %1499 }
 0x1de   : > { %6172 = vst [vmem:[#allocation33_spill] sm:$0xff] %v5369_v2  ;;  %6173 = vst [vmem:[#allocation34_spill] sm:$0xff] %v5371_v3  ;;  %v2203_v6 = vrot.slane %v5224_v31, %v5341_v49  ;;  %v5388_v8 = vmul.f32 %v1741_v52, %v5345_v47  ;;  %v1743_v10 = vmul.f32 %v1737_v53, %v5345_v47 }
 0x1df   : > { %v2207_v43 = vrot.slane %v5226_v32, %v5341_v49  ;;  %v2445_v44 = vrot.slane %v5239_v38, %v5300_v19  ;;  %v5398_v9 = vmul.f32 %v1733_v27, %v5345_v47  ;;  %v1979_v31 = vmul.f32 %v1976_v59, %v5345_v47 }
 0x1e0   : > { %v1977_v52 = vmul.f32 %v1968_v60, %v5345_v47  ;;  %v2437_v2 = vrot.slane %v5241_v39, %v5300_v19  ;;  %v1978_v55 = vmul.f32 %v1972_v0, %v5345_v47  ;;  %v1485_v32 = vmul.f32 %v1482_v61, %v5345_v47 }
 0x1e1   : > { %v2214_v27 = vmul.f32 %v2211_v13, %v5345_v47  ;;  %v2441_v59 = vrot.slane %v5243_v41, %v5300_v19  ;;  %v2680_v60 = vrot.slane %v5239_v38, %v5309_v21  ;;  %v5419_v61 = vmul.f32 %v2445_v44, %v5345_v47  ;;  %v1541_v13 = vpop.permute.xlu1 %1540 }
 0x1e2   : > { %v5423_v36 = vmul.f32 %v2437_v2, %v5345_v47  ;;  %v2672_v1 = vrot.slane %v5241_v39, %v5309_v21 }
 0x1e3   : > { %v5435_v2 = vmul.f32 %v2441_v59, %v5345_v47  ;;  %v2907_v59 = vrot.slane %v5241_v39, %v5318_v63 }
 0x273   : > { %v1462_v33 = vpop.f32.mrf.mxu1 }
 0x274   : > { %v5334_v42 = vpop.f32.mrf.mxu0  ;;  %v1463_v45 = vadd.f32 %v1462_v33, %v1307_v11  ;;  %v2213_v33 = vmul.f32 %v2207_v43, %v5345_v47 }
 0x275   : > { %v4273_v51 = vpop.f32.mrf.mxu1 }
 0x276   : > { %v5355_v40 = vpop.f32.mrf.mxu0  ;;  %v1488_v44 = vadd.f32 %v1485_v32, %v1463_v45  ;;  %v5444_v32 = vmul.f32 %v2672_v1, %v5345_v47 }
 0x278   : > { %v5379_v51 = vpop.f32.mrf.mxu1  ;;  %v5381_v7 = vpop.f32.mrf.mxu0 }
 0x27a   : > { %v4278_v29 = vpop.f32.mrf.mxu1  ;;  %v1657_v3 = vpop.f32.mrf.mxu0 }
 0x27b   : > { %v1658_v53 = vadd.f32 %v1657_v3, %v1575_v17  ;;  %v5408_v29 = vmul.f32 %v2203_v6, %v5345_v47 }
 0x27c   : > { %v1961_v54 = vpop.f32.mrf.mxu1  ;;  %v1890_v50 = vpop.f32.mrf.mxu0 }
 0x27d   : > { %v1746_v11 = vadd.f32 %v1743_v10, %v1658_v53  ;;  %v1962_v17 = vadd.f32 %v1961_v54, %v5295_v46  ;;  %v1891_v6 = vadd.f32 %v1890_v50, %v5297_v18  ;;  %v2676_v10 = vrot.slane %v5243_v41, %v5309_v21 }
 0x27e   : > { %v4283_v0 = vpop.f32.mrf.mxu1  ;;  %v1892_v3 = vpop.f32.mrf.mxu0  ;;  %v5432_v50 = vrot.slane %v1541_v13, %v5220_v28 }
 0x27f   : > { %v1749_v46 = vmul.f32 %v1746_v11, %v5414_v37  ;;  %v1982_v54 = vadd.f32 %v1979_v31, %v1962_v17  ;;  %v1893_v43 = vadd.f32 %v1892_v3, %v5302_v30  ;;  %v1980_v53 = vadd.f32 %v1977_v52, %v1891_v6 }
 0x280   : > { %v2196_v34 = vpop.f32.mrf.mxu1  ;;  %v2125_v18 = vpop.f32.mrf.mxu0  ;;  %v5438_v0 = vmul.f32 %v2680_v60, %v5345_v47  ;;  %v2915_v17 = vrot.slane %v5239_v38, %v5318_v63  ;;  %v2911_v60 = vrot.slane %v5243_v41, %v5318_v63  ;;  %v1496_v6 = vmul.f32 %v5414_v37, %v1488_v44 }
 0x281   : > { %v1752_v21 = vadd.f32 %v1749_v46, %v5390_v58  ;;  %v1985_v11 = vmul.f32 %v1982_v54, %v5414_v37  ;;  %v1981_v31 = vadd.f32 %v1978_v55, %v1893_v43  ;;  %v2197_v30 = vadd.f32 %v2196_v34, %v5304_v62 }
 0x282   : > { %v4288_v45 = vpop.f32.mrf.mxu1  ;;  %v2127_v52 = vpop.f32.mrf.mxu0  ;;  %v5454_v55 = vmul.f32 %v2676_v10, %v5345_v47  ;;  %v3149_v62 = vrot.slane %v5239_v38, %v5341_v49  ;;  %v1394_v34 = vadd.f32 %v5355_v40, %v5289_v14  ;;  %v1983_v3 = vmul.f32 %v1980_v53, %v5414_v37 }
 0x283   : > { %v2217_v13 = vadd.f32 %v2214_v27, %v2197_v30  ;;  %v1988_v1 = vadd.f32 %v1985_v11, %v5390_v58  ;;  %v2126_v46 = vadd.f32 %v2125_v18, %v5306_v20  ;;  %v1755_v63 = vmax.f32 %v1752_v21, 0.0 }
 0x284   : > { %v2430_v54 = vpop.f32.mrf.mxu1  ;;  %v1984_v27 = vmul.f32 %v1981_v31, %v5414_v37  ;;  %v2128_v10 = vadd.f32 %v2127_v52, %v5311_v22  ;;  %v5468_v30 = vmul.f32 %v2915_v17, %v5345_v47  ;;  %v5471_v14 = vmul.f32 %v2907_v59, %v5345_v47 }
 0x285   : > { %v2220_v43 = vmul.f32 %v2217_v13, %v5414_v37  ;;  %v2431_v44 = vadd.f32 %v2430_v54, %v5313_v23  ;;  %v3141_v20 = vrot.slane %v5241_v39, %v5341_v49  ;;  %v1504_v53 = vadd.f32 %v5390_v58, %v1496_v6  ;;  %v5482_v23 = vpop.permute.xlu0 %1510 }
 0x286   : > { %v4293_v38 = vpop.f32.mrf.mxu1  ;;  %v5478_v18 = vmul.f32 %v2911_v60, %v5345_v47  ;;  %v3145_v22 = vrot.slane %v5243_v41, %v5341_v49  ;;  %v1487_v21 = vadd.f32 %v5377_v5, %v1394_v34  ;;  %v1991_v11 = vmax.f32 %v1988_v1, 0.0 }
 0x287   : > { %v2223_v40 = vadd.f32 %v2220_v43, %v5390_v58  ;;  %v1986_v31 = vadd.f32 %v1983_v3, %v5390_v58  ;;  %v5489_v39 = vmul.f32 %v3149_v62, %v5345_v47  ;;  %v1758_v52 = vmul.f32 %v1755_v63, %v5482_v23 }
 0x288   : > { %v5486_v45 = vpop.f32.mrf.mxu1  ;;  %v1987_v17 = vadd.f32 %v1984_v27, %v5390_v58  ;;  %v2215_v59 = vadd.f32 %v5408_v29, %v2126_v46  ;;  %v2216_v60 = vadd.f32 %v2213_v33, %v2128_v10  ;;  %v1727_v41 = vadd.f32 %v5379_v51, %v5291_v15 }
 0x289   : > { %v2226_v49 = vmax.f32 %v2223_v40, 0.0  ;;  %v2451_v5 = vadd.f32 %v5419_v61, %v2431_v44  ;;  %v5498_v6 = vmul.f32 %v3141_v20, %v5345_v47  ;;  %v1392_v62 = vadd.f32 %v5334_v42, %v5287_v12 }
 0x28a   : > { %v4298_v13 = vpop.f32.mrf.mxu1  ;;  %v1507_v34 = vmax.f32 %v1504_v53, 0.0  ;;  %v5503_v1 = vmul.f32 %v3145_v22, %v5345_v47  ;;  %v3384_v29 = vrot.slane %v5263_v56, %v5300_v19  ;;  %v1495_v33 = vmul.f32 %v5414_v37, %v1487_v21 }
 0x28b   : > { %v1994_v15 = vmul.f32 %v1991_v11, %v5482_v23  ;;  %v1989_v51 = vmax.f32 %v1986_v31, 0.0  ;;  %v3376_v3 = vrot.slane %v5265_v48, %v5300_v19  ;;  %v1767_v46 = vsel %vm1318_vm6, %v1758_v52, 0.0 }
 0x28c   : > { %v5509_v61 = vpop.f32.mrf.mxu1  ;;  %v1990_v12 = vmax.f32 %v1987_v17, 0.0  ;;  %v2218_v42 = vmul.f32 %v2215_v59, %v5414_v37  ;;  %v2219_v54 = vmul.f32 %v2216_v60, %v5414_v37  ;;  %v1747_v63 = vadd.f32 %v5388_v8, %v1727_v41 }
 0x28d   : > { %v2229_v56 = vmul.f32 %v2226_v49, %v5482_v23  ;;  %v2454_v27 = vmul.f32 %v2451_v5, %v5414_v37  ;;  %v3380_v10 = vrot.slane %v5267_v57, %v5300_v19  ;;  %v1486_v44 = vadd.f32 %v5374_v4, %v1392_v62  ;;  %v2359_v4 = vpop.f32.mrf.mxu0 }
 0x28e   : > { %v4303_v43 = vpop.f32.mrf.mxu1  ;;  %v1656_v48 = vadd.f32 %v5381_v7, %v5293_v16  ;;  %v1515_v38 = vmul.f32 %v5482_v23, %v1507_v34  ;;  %v5526_v20 = vmul.f32 %v3384_v29, %v5345_v47  ;;  %v1768_v40 = vrot.slane %v1767_v46, 4 }
 0x28f   : > { %v2009_v8 = vsel %vm1530_vm8, %v1994_v15, 0.0  ;;  %v1992_v53 = vmul.f32 %v1989_v51, %v5482_v23  ;;  %v1503_v22 = vadd.f32 %v5390_v58, %v1495_v33  ;;  %v1993_v21 = vmul.f32 %v1990_v12, %v5482_v23 }
 0x290   : > { %v2221_v57 = vadd.f32 %v2218_v42, %v5390_v58  ;;  %v2222_v19 = vadd.f32 %v2219_v54, %v5390_v58  ;;  %v5537_v7 = vmul.f32 %v3376_v3, %v5345_v47  ;;  %v1750_v11 = vmul.f32 %v1747_v63, %v5414_v37  ;;  %v2361_v42 = vpop.f32.mrf.mxu0 }
 0x291   : > { %v5534_v16 = vpop.f32.mrf.mxu1  ;;  %v2244_v31 = vsel %vm1530_vm8, %v2229_v56, 0.0  ;;  %v2457_v52 = vadd.f32 %v2454_v27, %v5390_v58  ;;  %v5543_v17 = vmul.f32 %v3380_v10, %v5345_v47  ;;  %v1494_v59 = vmul.f32 %v5414_v37, %v1486_v44 }
 0x292   : > { %v1745_v60 = vadd.f32 %v5398_v9, %v1656_v48  ;;  %v2010_v41 = vrot.slane %v2009_v8, 4  ;;  %v1531_v49 = vsel %vm1530_vm8, %v1515_v38, 0.0  ;;  %v1769_v13 = vadd.f32 %v1768_v40, %v1767_v46 }
 0x293   : > { %v4308_v5 = vpop.f32.mrf.mxu1  ;;  %v1995_v62 = vsel %vm1318_vm6, %v1992_v53, 0.0  ;;  %v2360_v34 = vadd.f32 %v2359_v4, %v5315_v24  ;;  %v1506_v29 = vmax.f32 %v1503_v22, 0.0  ;;  %v2002_v33 = vsel %vm1318_vm6, %v1993_v21, 0.0 }
 0x294   : > { %v2245_v15 = vrot.slane %v2244_v31, 4  ;;  %v2224_v51 = vmax.f32 %v2221_v57, 0.0  ;;  %v2225_v47 = vmax.f32 %v2222_v19, 0.0  ;;  %v2460_v12 = vmax.f32 %v2457_v52, 0.0 }
 0x295   : > { %v5551_v3 = vpop.f32.mrf.mxu1  ;;  %v2449_v9 = vadd.f32 %v5423_v36, %v2360_v34  ;;  %v1532_v54 = vrot.slane %v1531_v49, 4  ;;  %v1753_v63 = vadd.f32 %v1750_v11, %v5390_v58  ;;  %v5556_v46 = vmul.f32 %v1745_v60, %v5414_v37 }
 0x296   : > { %v2011_v56 = vadd.f32 %v2010_v41, %v2009_v8  ;;  %v1996_v24 = vrot.slane %v1995_v62, 4  ;;  %v1502_v27 = vadd.f32 %v5390_v58, %v1494_v59  ;;  %v1770_v10 = vrot.slane %v1769_v13, 2 }
 0x297   : > { %v4313_v43 = vpop.f32.mrf.mxu1  ;;  %v2003_v44 = vrot.slane %v2002_v33, 4  ;;  %v2452_v48 = vmul.f32 %v2449_v9, %v5414_v37  ;;  %v1514_v38 = vmul.f32 %v5482_v23, %v1506_v29  ;;  %v2246_v40 = vadd.f32 %v2245_v15, %v2244_v31 }
 0x298   : > { %v2227_v36 = vmul.f32 %v2224_v51, %v5482_v23  ;;  %v2228_v53 = vmul.f32 %v2225_v47, %v5482_v23  ;;  %v2362_v22 = vadd.f32 %v2361_v42, %v5320_v25  ;;  %v2463_v21 = vmul.f32 %v2460_v12, %v5482_v23 }
 0x299   : > { %v2455_v8 = vadd.f32 %v2452_v48, %v5390_v58  ;;  %v1533_v57 = vadd.f32 %v1532_v54, %v1531_v49  ;;  %v1756_v19 = vmax.f32 %v1753_v63, 0.0  ;;  %v2012_v4 = vrot.slane %v2011_v56, 2 }
 0x29a   : > { %v1997_v11 = vadd.f32 %v1996_v24, %v1995_v62  ;;  %v2450_v52 = vadd.f32 %v5435_v2, %v2362_v22  ;;  %v1505_v59 = vmax.f32 %v1502_v27, 0.0  ;;  %v2004_v60 = vadd.f32 %v2003_v44, %v2002_v33 }
 0x29b   : > { %v1523_v31 = vsel %vm1318_vm6, %v1514_v38, 0.0  ;;  %v1534_v41 = vrot.slane %v1533_v57, 2  ;;  %v1759_v5 = vmul.f32 %v1756_v19, %v5482_v23  ;;  %v2247_v34 = vrot.slane %v2246_v40, 2 }
 0x29c   : > { %v2230_v25 = vsel %vm1318_vm6, %v2227_v36, 0.0  ;;  %v2237_v29 = vsel %vm1318_vm6, %v2228_v53, 0.0  ;;  %v2458_v15 = vmax.f32 %v2455_v8, 0.0  ;;  %v1771_v51 = vadd.f32 %v1770_v10, %v1769_v13 }
 0x29d   : > { %v2478_v49 = vsel %vm1530_vm8, %v2463_v21, 0.0  ;;  %v2453_v62 = vmul.f32 %v2450_v52, %v5414_v37  ;;  %v1774_v2 = vsel %vm1530_vm8, %v1759_v5, 0.0  ;;  %v2013_v47 = vadd.f32 %v2012_v4, %v2011_v56 }
 0x29e   : > { %v1998_v33 = vrot.slane %v1997_v11, 2  ;;  %v1535_v12 = vadd.f32 %v1534_v41, %v1533_v57  ;;  %v1775_v9 = vrot.slane %v1774_v2, 4  ;;  %v2005_v42 = vrot.slane %v2004_v60, 2 }
 0x29f   : > { %v2231_v54 = vrot.slane %v2230_v25, 4  ;;  %v2238_v63 = vrot.slane %v2237_v29, 4  ;;  %v1513_v24 = vmul.f32 %v5482_v23, %v1505_v59  ;;  %v2248_v27 = vadd.f32 %v2247_v34, %v2246_v40 }
 0x2a0   : > { %v2479_v43 = vrot.slane %v2478_v49, 4  ;;  %v2461_v44 = vmul.f32 %v2458_v15, %v5482_v23  ;;  %v1776_v13 = vadd.f32 %v1775_v9, %v1774_v2  ;;  %v1772_v10 = vrot.slane %v1771_v51, 1 }
 0x2a1   : > { %v1524_v48 = vrot.slane %v1523_v31, 4  ;;  %v2456_v38 = vadd.f32 %v2453_v62, %v5390_v58  ;;  %v2666_v56 = vadd.f32 %v5486_v45, %v5322_v26  ;;  %v2014_v36 = vrot.slane %v2013_v47, 1  ;;  %v2594_v45 = vpop.f32.mrf.mxu0 }
 0x2a2   : > { %v1999_v53 = vadd.f32 %v1998_v33, %v1997_v11  ;;  %v1536_v22 = vrot.slane %v1535_v12, 1  ;;  %v1777_v21 = vrot.slane %v1776_v13, 2  ;;  %v2006_v8 = vadd.f32 %v2005_v42, %v2004_v60 }
 0x2a3   : > { %v2232_v57 = vadd.f32 %v2231_v54, %v2230_v25  ;;  %v2239_v19 = vadd.f32 %v2238_v63, %v2237_v29  ;;  %v2686_v40 = vadd.f32 %v5438_v0, %v2666_v56  ;;  %v2249_v4 = vrot.slane %v2248_v27, 1 }
 0x2a4   : > { %v2480_v52 = vadd.f32 %v2479_v43, %v2478_v49  ;;  %v2464_v59 = vsel %vm1318_vm6, %v2461_v44, 0.0  ;;  %v1778_v41 = vadd.f32 %v1777_v21, %v1776_v13  ;;  %v1773_v5 = vadd.f32 %v1772_v10, %v1771_v51  ;;  %v2596_v43 = vpop.f32.mrf.mxu0 }
 0x2a5   : > { %v1525_v34 = vadd.f32 %v1524_v48, %v1523_v31  ;;  %v2459_v15 = vmax.f32 %v2456_v38, 0.0  ;;  %v1751_v26 = vadd.f32 %v5556_v46, %v5390_v58  ;;  %v2015_v11 = vadd.f32 %v2014_v36, %v2013_v47 }
 0x2a6   : > { %v2000_v62 = vrot.slane %v1999_v53, 1  ;;  %v1537_v2 = vadd.f32 %v1536_v22, %v1535_v12  ;;  %v1779_v60 = vrot.slane %v1778_v41, 1  ;;  %v2007_v25 = vrot.slane %v2006_v8, 1 }
 0x2a7   : > { %v2233_v29 = vrot.slane %v2232_v57, 2  ;;  %v2465_v33 = vrot.slane %v2464_v59, 4  ;;  %v2689_v0 = vmul.f32 %v2686_v40, %v5414_v37  ;;  %v2250_v49 = vadd.f32 %v2249_v4, %v2248_v27 }
 0x2a8   : > { %v2240_v9 = vrot.slane %v2239_v19, 2  ;;  %v2481_v42 = vrot.slane %v2480_v52, 2  ;;  %v1780_v54 = vadd.f32 %v1779_v60, %v1778_v41  ;;  %v1526_v51 = vrot.slane %v1525_v34, 2 }
 0x2a9   : > { %v2462_v31 = vmul.f32 %v2459_v15, %v5482_v23  ;;  %v1516_v63 = vsel %vm1318_vm6, %v1513_v24, 0.0  ;;  %v1754_v46 = vmax.f32 %v1751_v26, 0.0  ;;  %v5587_v47 = vadd.f32 %v5432_v50, %v1537_v2 }
 0x2aa   : > { %v5590_v12 = vadd.f32 %v1780_v54, %v5432_v50  ;;  %v5593_v44 = vadd.f32 %v2015_v11, %v5432_v50  ;;  %v2595_v27 = vadd.f32 %v2594_v45, %v5324_v35  ;;  %v5596_v13 = vadd.f32 %v2000_v62, %v1999_v53  ;;  %v2829_v53 = vpop.f32.mrf.mxu0 }
 0x2ab   : > { %v2008_v10 = vadd.f32 %v2007_v25, %v2006_v8  ;;  %v2466_v48 = vadd.f32 %v2465_v33, %v2464_v59  ;;  %v2692_v38 = vadd.f32 %v2689_v0, %v5390_v58  ;;  %v2234_v24 = vadd.f32 %v2233_v29, %v2232_v57  ;;  %v6174_v57 = vld [vmem:[#allocation25_spill] sm:$0xff]  ;;  %v6176_v33 = vld [vmem:[#allocation27_spill] sm:$0xff] }
 0x2ac   : > { %v5600_v56 = vadd.f32 %v2250_v49, %v5432_v50  ;;  %v3429_v36 = vmax.f32 %v5587_v47, %v5590_v12  ;;  %v1517_v22 = vrot.slane %v1516_v63, 4  ;;  %v2241_v21 = vadd.f32 %v2240_v9, %v2239_v19  ;;  %v6175_v19 = vld [vmem:[#allocation26_spill] sm:$0xff] }
 0x2ad   : > { %v2471_v40 = vsel %vm1318_vm6, %v2462_v31, 0.0  ;;  %v1757_v4 = vmul.f32 %v1754_v46, %v5482_v23  ;;  %v2684_v35 = vadd.f32 %v5444_v32, %v2595_v27  ;;  %v2482_v8 = vadd.f32 %v2481_v42, %v2480_v52 }
 0x2ae   : > { %v1527_v59 = vadd.f32 %v1526_v51, %v1525_v34  ;;  %v5608_v41 = vmax.f32 %v3429_v36, %v5593_v44  ;;  %v2597_v15 = vadd.f32 %v2596_v43, %v6174_v57  ;;  %v2467_v26 = vrot.slane %v2466_v48, 2 }
 0x2af   : > { %v5612_v45 = vadd.f32 %v1773_v5, %v5432_v50  ;;  %v2695_v11 = vmax.f32 %v2692_v38, 0.0  ;;  %v2901_v62 = vadd.f32 %v5509_v61, %v6175_v19  ;;  %v2235_v2 = vrot.slane %v2234_v24, 1  ;;  %v2831_v5 = vpop.f32.mrf.mxu0  ;;  %v6177_v38 = vld [vmem:[#allocation28_spill] sm:$0xff] }
 0x2b0   : > { %v2472_v60 = vrot.slane %v2471_v40, 4  ;;  %v3435_v32 = vmax.f32 %v5608_v41, %v5600_v56  ;;  %v1518_v52 = vadd.f32 %v1517_v22, %v1516_v63  ;;  %v1760_v34 = vsel %vm1318_vm6, %v1757_v4, 0.0 }
 0x2b1   : > { %v2687_v25 = vmul.f32 %v2684_v35, %v5414_v37  ;;  %v2921_v29 = vadd.f32 %v5468_v30, %v2901_v62  ;;  %v2830_v0 = vadd.f32 %v2829_v53, %v6176_v33  ;;  %v2242_v49 = vrot.slane %v2241_v21, 1  ;;  %v6178_v35 = vld [vmem:[#allocation29_spill] sm:$0xff] }
 0x2b2   : > { %v2483_v9 = vrot.slane %v2482_v8, 1  ;;  %v1528_v42 = vrot.slane %v1527_v59, 1  ;;  %v2685_v61 = vadd.f32 %v5454_v55, %v2597_v15  ;;  %v2468_v54 = vadd.f32 %v2467_v26, %v2466_v48 }
 0x2b3   : > { %v2698_v51 = vmul.f32 %v2695_v11, %v5482_v23  ;;  %v2924_v31 = vmul.f32 %v2921_v29, %v5414_v37  ;;  %v2919_v63 = vadd.f32 %v5471_v14, %v2830_v0  ;;  %v2473_v46 = vadd.f32 %v2472_v60, %v2471_v40 }
 0x2b4   : > { %v1519_v43 = vrot.slane %v1518_v52, 2  ;;  %v1761_v27 = vrot.slane %v1760_v34, 4  ;;  %v2832_v30 = vadd.f32 %v2831_v5, %v6177_v38  ;;  %v2690_v36 = vadd.f32 %v2687_v25, %v5390_v58 }
 0x2b5   : > { %v2927_v22 = vadd.f32 %v2924_v31, %v5390_v58  ;;  %v2922_v4 = vmul.f32 %v2919_v63, %v5414_v37  ;;  %v3135_v55 = vadd.f32 %v5534_v16, %v6178_v35  ;;  %v2243_v48 = vadd.f32 %v2242_v49, %v2241_v21 }
 0x2b6   : > { %v2484_v53 = vadd.f32 %v2483_v9, %v2482_v8  ;;  %v5633_v57 = vadd.f32 %v2008_v10, %v5432_v50  ;;  %v2688_v14 = vmul.f32 %v2685_v61, %v5414_v37  ;;  %v2713_v40 = vsel %vm1530_vm8, %v2698_v51, 0.0  ;;  %v3063_v10 = vpop.f32.mrf.mxu0 }
 0x2b7   : > { %v2930_v15 = vmax.f32 %v2927_v22, 0.0  ;;  %v2925_v26 = vadd.f32 %v2922_v4, %v5390_v58  ;;  %v2920_v11 = vadd.f32 %v5478_v18, %v2832_v30  ;;  %v1529_v19 = vadd.f32 %v1528_v42, %v1527_v59  ;;  %v6179_v22 = vld [vmem:[#allocation30_spill] sm:$0xff] }
 0x2b8   : > { %v2474_v62 = vrot.slane %v2473_v46, 2  ;;  %v1520_v60 = vadd.f32 %v1519_v43, %v1518_v52  ;;  %v1762_v25 = vadd.f32 %v1761_v27, %v1760_v34  ;;  %v2236_v29 = vadd.f32 %v2235_v2, %v2234_v24  ;;  %v3065_v63 = vpop.f32.mrf.mxu0 }
 0x2b9   : > { %v2469_v16 = vrot.slane %v2468_v54, 1  ;;  %v2693_v21 = vmax.f32 %v2690_v36, 0.0  ;;  %v3155_v8 = vadd.f32 %v5489_v39, %v3135_v55  ;;  %v2714_v33 = vrot.slane %v2713_v40, 4 }
 0x2ba   : > { %v2691_v0 = vadd.f32 %v2688_v14, %v5390_v58  ;;  %v2933_v5 = vmul.f32 %v2930_v15, %v5482_v23  ;;  %v2928_v49 = vmax.f32 %v2925_v26, 0.0  ;;  %v5643_v9 = vadd.f32 %v2243_v48, %v5432_v50  ;;  %v6180_v48 = vld [vmem:[#allocation31_spill] sm:$0xff] }
 0x2bb   : > { %v5646_v18 = vadd.f32 %v2484_v53, %v5432_v50  ;;  %v2923_v59 = vmul.f32 %v2920_v11, %v5414_v37  ;;  %v3158_v24 = vmul.f32 %v3155_v8, %v5414_v37  ;;  %v5651_v2 = vadd.f32 %v5432_v50, %v1529_v19 }
 0x2bc   : > { %v2475_v39 = vadd.f32 %v2474_v62, %v2473_v46  ;;  %v1521_v52 = vrot.slane %v1520_v60, 1  ;;  %v1763_v34 = vrot.slane %v1762_v25, 2  ;;  %v2470_v42 = vadd.f32 %v2469_v16, %v2468_v54 }
 0x2bd   : > { %v5655_v61 = vadd.f32 %v5596_v13, %v5432_v50  ;;  %v2696_v51 = vmul.f32 %v2693_v21, %v5482_v23  ;;  %v3161_v31 = vadd.f32 %v3158_v24, %v5390_v58  ;;  %v2715_v43 = vadd.f32 %v2714_v33, %v2713_v40  ;;  %v3298_v24 = vpop.f32.mrf.mxu0 }
 0x2be   : > { %v2694_v27 = vmax.f32 %v2691_v0, 0.0  ;;  %v2948_v38 = vsel %vm1530_vm8, %v2933_v5, 0.0  ;;  %v2931_v30 = vmul.f32 %v2928_v49, %v5482_v23  ;;  %v5662_v46 = vadd.f32 %v2236_v29, %v5432_v50 }
 0x2bf   : > { %v2926_v54 = vadd.f32 %v2923_v59, %v5390_v58  ;;  %v3164_v36 = vmax.f32 %v3161_v31, 0.0  ;;  %v3064_v13 = vadd.f32 %v3063_v10, %v6179_v22  ;;  %v2476_v4 = vrot.slane %v2475_v39, 1 }
 0x2c0   : > { %v1522_v35 = vadd.f32 %v1521_v52, %v1520_v60  ;;  %v1764_v55 = vadd.f32 %v1763_v34, %v1762_v25  ;;  %v3066_v53 = vadd.f32 %v3065_v63, %v6180_v48  ;;  %v2699_v14 = vsel %vm1318_vm6, %v2696_v51, 0.0  ;;  %v6181_v63 = vld [vmem:[#allocation32_spill] sm:$0xff] }
 0x2c1   : > { %v2949_v40 = vrot.slane %v2948_v38, 4  ;;  %v3167_v15 = vmul.f32 %v3164_v36, %v5482_v23  ;;  %v3153_v26 = vadd.f32 %v5498_v6, %v3064_v13  ;;  %v2716_v11 = vrot.slane %v2715_v43, 2 }
 0x2c2   : > { %v5671_v19 = vadd.f32 %v2470_v42, %v5432_v50  ;;  %v2697_v62 = vmul.f32 %v2694_v27, %v5482_v23  ;;  %v2934_v29 = vsel %vm1318_vm6, %v2931_v30, 0.0  ;;  %v2929_v16 = vmax.f32 %v2926_v54, 0.0  ;;  %v6182_v54 = vld [vmem:[#allocation33_spill] sm:$0xff] }
 0x2c3   : > { %v3182_v60 = vsel %vm1530_vm8, %v3167_v15, 0.0  ;;  %v3156_v25 = vmul.f32 %v3153_v26, %v5414_v37  ;;  %v3154_v21 = vadd.f32 %v5503_v1, %v3066_v53  ;;  %v5678_v8 = vadd.f32 %v2476_v4, %v2475_v39 }
 0x2c4   : > { %v5681_v10 = vadd.f32 %v5432_v50, %v1522_v35  ;;  %v1765_v6 = vrot.slane %v1764_v55, 1  ;;  %v2700_v33 = vrot.slane %v2699_v14, 4  ;;  %v2950_v0 = vadd.f32 %v2949_v40, %v2948_v38  ;;  %v3300_v40 = vpop.f32.mrf.mxu0 }
 0x2c5   : > { %v3183_v5 = vrot.slane %v3182_v60, 4  ;;  %v3159_v49 = vadd.f32 %v3156_v25, %v5390_v58  ;;  %v3157_v59 = vmul.f32 %v3154_v21, %v5414_v37  ;;  %v2717_v52 = vadd.f32 %v2716_v11, %v2715_v43 }
 0x2c6   : > { %v5689_v1 = vmax.f32 %v3435_v32, %v5646_v18  ;;  %v2706_v39 = vsel %vm1318_vm6, %v2697_v62, 0.0  ;;  %v2935_v34 = vrot.slane %v2934_v29, 4  ;;  %v2932_v42 = vmul.f32 %v2929_v16, %v5482_v23 }
 0x2c7   : > { %v3162_v51 = vmax.f32 %v3159_v49, 0.0  ;;  %v3160_v31 = vadd.f32 %v3157_v59, %v5390_v58  ;;  %v3370_v27 = vadd.f32 %v5551_v3, %v6181_v63  ;;  %v1766_v38 = vadd.f32 %v1765_v6, %v1764_v55 }
 0x2c8   : > { %v2701_v30 = vadd.f32 %v2700_v33, %v2699_v14  ;;  %v3184_v43 = vadd.f32 %v3183_v5, %v3182_v60  ;;  %v3299_v36 = vadd.f32 %v3298_v24, %v6182_v54  ;;  %v2951_v22 = vrot.slane %v2950_v0, 2  ;;  %v6183_v60 = vld [vmem:[#allocation34_spill] sm:$0xff] }
 0x2c9   : > { %v3165_v41 = vmul.f32 %v3162_v51, %v5482_v23  ;;  %v3163_v32 = vmax.f32 %v3160_v31, 0.0  ;;  %v3390_v13 = vadd.f32 %v5526_v20, %v3370_v27  ;;  %v2718_v4 = vrot.slane %v2717_v52, 1 }
 0x2ca   : > { %v2707_v35 = vrot.slane %v2706_v39, 4  ;;  %v2936_v48 = vadd.f32 %v2935_v34, %v2934_v29  ;;  %v3388_v53 = vadd.f32 %v5537_v7, %v3299_v36  ;;  %v2941_v15 = vsel %vm1318_vm6, %v2932_v42, 0.0 }
 0x2cb   : > { %v3168_v3 = vsel %vm1318_vm6, %v3165_v41, 0.0  ;;  %v3166_v55 = vmul.f32 %v3163_v32, %v5482_v23  ;;  %v3393_v14 = vmul.f32 %v3390_v13, %v5414_v37  ;;  %v2702_v26 = vrot.slane %v2701_v30, 2 }
 0x2cc   : > { %v3185_v11 = vrot.slane %v3184_v43, 2  ;;  %v3169_v62 = vrot.slane %v3168_v3, 4  ;;  %v3391_v16 = vmul.f32 %v3388_v53, %v5414_v37  ;;  %v5706_v20 = vadd.f32 %v1766_v38, %v5432_v50 }
 0x2cd   : > { %v2952_v29 = vadd.f32 %v2951_v22, %v2950_v0  ;;  %v3396_v7 = vadd.f32 %v3393_v14, %v5390_v58  ;;  %v3301_v25 = vadd.f32 %v3300_v40, %v6183_v60  ;;  %v2942_v21 = vrot.slane %v2941_v15, 4 }
 0x2ce   : > { %v3170_v6 = vadd.f32 %v3169_v62, %v3168_v3  ;;  %v3175_v33 = vsel %vm1318_vm6, %v3166_v55, 0.0  ;;  %v3394_v5 = vadd.f32 %v3391_v16, %v5390_v58  ;;  %v2708_v49 = vadd.f32 %v2707_v35, %v2706_v39 }
 0x2cf   : > { %v2937_v59 = vrot.slane %v2936_v48, 2  ;;  %v3399_v24 = vmax.f32 %v3396_v7, 0.0  ;;  %v3389_v34 = vadd.f32 %v5543_v17, %v3301_v25  ;;  %v2719_v42 = vadd.f32 %v2718_v4, %v2717_v52 }
 0x2d0   : > { %v2703_v51 = vadd.f32 %v2702_v26, %v2701_v30  ;;  %v3186_v31 = vadd.f32 %v3185_v11, %v3184_v43  ;;  %v3397_v63 = vmax.f32 %v3394_v5, 0.0  ;;  %v3171_v0 = vrot.slane %v3170_v6, 2 }
 0x2d1   : > { %v3176_v27 = vrot.slane %v3175_v33, 4  ;;  %v3402_v38 = vmul.f32 %v3399_v24, %v5482_v23  ;;  %v3392_v54 = vmul.f32 %v3389_v34, %v5414_v37  ;;  %v3427_v36 = vmax.f32 %v5681_v10, %v5706_v20 }
 0x2d2   : > { %v2953_v22 = vrot.slane %v2952_v29, 1  ;;  %v2943_v41 = vadd.f32 %v2942_v21, %v2941_v15  ;;  %v3400_v39 = vmul.f32 %v3397_v63, %v5482_v23  ;;  %v2709_v32 = vrot.slane %v2708_v49, 2 }
 0x2d3   : > { %v2938_v13 = vadd.f32 %v2937_v59, %v2936_v48  ;;  %v3417_v17 = vsel %vm1530_vm8, %v3402_v38, 0.0  ;;  %v3395_v52 = vadd.f32 %v3392_v54, %v5390_v58  ;;  %v2704_v30 = vrot.slane %v2703_v51, 1 }
 0x2d4   : > { %v3187_v43 = vrot.slane %v3186_v31, 1  ;;  %v3418_v4 = vrot.slane %v3417_v17, 4  ;;  %v3403_v35 = vsel %vm1318_vm6, %v3400_v39, 0.0  ;;  %v3172_v53 = vadd.f32 %v3171_v0, %v3170_v6 }
 0x2d5   : > { %v3177_v37 = vadd.f32 %v3176_v27, %v3175_v33  ;;  %v3404_v40 = vrot.slane %v3403_v35, 4  ;;  %v3398_v3 = vmax.f32 %v3395_v52, 0.0  ;;  %v5722_v55 = vadd.f32 %v2719_v42, %v5432_v50 }
 0x2d6   : > { %v2954_v15 = vadd.f32 %v2953_v22, %v2952_v29  ;;  %v2944_v14 = vrot.slane %v2943_v41, 2  ;;  %v3419_v26 = vadd.f32 %v3418_v4, %v3417_v17  ;;  %v3430_v48 = vmax.f32 %v3427_v36, %v5655_v61 }
 0x2d7   : > { %v2939_v11 = vrot.slane %v2938_v13, 1  ;;  %v3405_v62 = vadd.f32 %v3404_v40, %v3403_v35  ;;  %v3401_v58 = vmul.f32 %v3398_v3, %v5482_v23  ;;  %v2705_v16 = vadd.f32 %v2704_v30, %v2703_v51 }
 0x2d8   : > { %v2710_v7 = vadd.f32 %v2709_v32, %v2708_v49  ;;  %v3188_v60 = vadd.f32 %v3187_v43, %v3186_v31  ;;  %v3420_v25 = vrot.slane %v3419_v26, 2  ;;  %v3173_v21 = vrot.slane %v3172_v53, 1 }
 0x2d9   : > { %v3178_v6 = vrot.slane %v3177_v37, 2  ;;  %v3406_v33 = vrot.slane %v3405_v62, 2  ;;  %v3410_v5 = vsel %vm1318_vm6, %v3401_v58, 0.0  ;;  %v5728_v59 = vadd.f32 %v2954_v15, %v5432_v50 }
 0x2da   : > { %v2945_v29 = vadd.f32 %v2944_v14, %v2943_v41  ;;  %v3421_v24 = vadd.f32 %v3420_v25, %v3419_v26  ;;  %v3411_v34 = vrot.slane %v3410_v5, 4  ;;  %v3441_v42 = vmax.f32 %v5689_v1, %v5722_v55 }
 0x2db   : > { %v3433_v23 = vmax.f32 %v3430_v48, %v5662_v46  ;;  %v2940_v51 = vadd.f32 %v2939_v11, %v2938_v13  ;;  %v3407_v49 = vadd.f32 %v3406_v33, %v3405_v62  ;;  %v2711_v31 = vrot.slane %v2710_v7, 1 }
 0x2dc   : > { %v5734_v63 = vadd.f32 %v3188_v60, %v5432_v50  ;;  %v3422_v0 = vrot.slane %v3421_v24, 1  ;;  %v3412_v27 = vadd.f32 %v3411_v34, %v3410_v5  ;;  %v5737_v38 = vadd.f32 %v2705_v16, %v5432_v50 }
 0x2dd   : > { %v3174_v54 = vadd.f32 %v3173_v21, %v3172_v53  ;;  %v3179_v36 = vadd.f32 %v3178_v6, %v3177_v37  ;;  %v3408_v22 = vrot.slane %v3407_v49, 1  ;;  %v3444_v41 = vmax.f32 %v3441_v42, %v5728_v59 }
 0x2de   : > { %v2946_v39 = vrot.slane %v2945_v29, 1  ;;  %v3423_v1 = vadd.f32 %v3422_v0, %v3421_v24  ;;  %v3413_v32 = vrot.slane %v3412_v27, 2  ;;  %v3428_v13 = vmax.f32 %v5651_v2, %v5612_v45 }
 0x2df   : > { %v3436_v17 = vmax.f32 %v3433_v23, %v5671_v19  ;;  %v5744_v52 = vadd.f32 %v2940_v51, %v5432_v50  ;;  %v3409_v30 = vadd.f32 %v3408_v22, %v3407_v49  ;;  %v2712_v43 = vadd.f32 %v2711_v31, %v2710_v7 }
 0x2e0   : > { %v3447_v4 = vmax.f32 %v3444_v41, %v5734_v63  ;;  %v3426_v35 = vadd.f32 %v3423_v1, %v5432_v50  ;;  %v3414_v53 = vadd.f32 %v3413_v32, %v3412_v27  ;;  %v5750_v40 = vadd.f32 %v3174_v54, %v5432_v50 }
 0x2e1   : > { %v3439_v37 = vmax.f32 %v3436_v17, %v5737_v38  ;;  %v3180_v3 = vrot.slane %v3179_v36, 1  ;;  %v5754_v15 = vadd.f32 %v5678_v8, %v5432_v50  ;;  %v3431_v14 = vmax.f32 %v3428_v13, %v5633_v57 }
 0x2e2   : > { %v2947_v26 = vadd.f32 %v2946_v39, %v2945_v29  ;;  %v3450_v48 = vmax.f32 %v3447_v4, %v3426_v35  ;;  %v5759_v62 = vadd.f32 %v3409_v30, %v5432_v50  ;;  %v3415_v58 = vrot.slane %v3414_v53, 1 }
 0x2e3   : > { %v3442_v11 = vmax.f32 %v3439_v37, %v5744_v52  ;;  %v3434_v16 = vmax.f32 %v3431_v14, %v5643_v9  ;;  %v5763_v7 = vadd.f32 %v2712_v43, %v5432_v50  ;;  %v3181_v21 = vadd.f32 %v3180_v3, %v3179_v36 }
 0x2e4   : > { %v3453_v60 = vsub.f32 %v5587_v47, %v3450_v48  ;;  %v3462_v8 = vsub.f32 %v5590_v12, %v3450_v48  ;;  %v3471_v6 = vsub.f32 %v5593_v44, %v3450_v48  ;;  %v3480_v33 = vsub.f32 %v5600_v56, %v3450_v48 }
 0x2e5   : > { %v3445_v25 = vmax.f32 %v3442_v11, %v5750_v40  ;;  %v3437_v5 = vmax.f32 %v3434_v16, %v5754_v15  ;;  %v5772_v29 = vadd.f32 %v2947_v26, %v5432_v50  ;;  %v3416_v42 = vadd.f32 %v3415_v58, %v3414_v53 }
 0x2e6   : > { %v3458_v24 = vmul.f32 1.442695, %v3453_v60  ;;  %v3467_v47 = vmul.f32 1.442695, %v3462_v8  ;;  %v3525_v23 = vsub.f32 %v3426_v35, %v3450_v48  ;;  %v5779_v51 = vadd.f32 %v3181_v21, %v5432_v50 }
 0x2e7   : > { %v5775_v34 = vmax.f32 %v3445_v25, %v5759_v62  ;;  %v3440_v12 = vmax.f32 %v3437_v5, %v5763_v7  ;;  %v3476_v44 = vmul.f32 1.442695, %v3471_v6  ;;  %v3489_v56 = vsub.f32 %v5646_v18, %v3450_v48 }
 0x2e8   : > { %4417 = vpow2.f32 %v3458_v24  ;;  %v3498_v31 = vsub.f32 %v5722_v55, %v3450_v48  ;;  %v5785_v0 = vadd.f32 %v3416_v42, %v5432_v50  ;;  %v3485_v27 = vmul.f32 1.442695, %v3480_v33 }
 0x2e9   : > { %v3443_v49 = vmax.f32 %v3440_v12, %v5772_v29  ;;  %4419 = vpow2.f32 %v3467_v47  ;;  %v3451_v54 = vsub.f32 %v5681_v10, %v5775_v34  ;;  %v3530_v36 = vmul.f32 1.442695, %v3525_v23 }
 0x2ea   : > { %v3460_v22 = vsub.f32 %v5706_v20, %v5775_v34  ;;  %4421 = vpow2.f32 %v3476_v44  ;;  %v3494_v18 = vmul.f32 1.442695, %v3489_v56  ;;  %v3507_v39 = vsub.f32 %v5728_v59, %v3450_v48 }
 0x2eb   : > { %v3446_v41 = vmax.f32 %v3443_v49, %v5779_v51  ;;  %v3503_v1 = vmul.f32 1.442695, %v3498_v31  ;;  %v3469_v50 = vsub.f32 %v5655_v61, %v5775_v34  ;;  %4423 = vpow2.f32 %v3485_v27 }
 0x2ec   : > { %v3516_v10 = vsub.f32 %v5734_v63, %v3450_v48  ;;  %v3454_v32 = vmul.f32 1.442695, %v3451_v54  ;;  %4425 = vpow2.f32 %v3530_v36  ;;  %v3463_v13 = vmul.f32 1.442695, %v3460_v22 }
 0x2ed   : > { %v5796_v55 = vmax.f32 %v3446_v41, %v5785_v0  ;;  %v3478_v20 = vsub.f32 %v5662_v46, %v5775_v34  ;;  %4427 = vpow2.f32 %v3494_v18  ;;  %v3512_v17 = vmul.f32 1.442695, %v3507_v39 }
 0x2ee   : > { %v3487_v59 = vsub.f32 %v5671_v19, %v5775_v34  ;;  %4429 = vpow2.f32 %v3503_v1  ;;  %v3472_v30 = vmul.f32 1.442695, %v3469_v50  ;;  %v3496_v61 = vsub.f32 %v5737_v38, %v5775_v34 }
 0x2ef   : > { %v3521_v43 = vmul.f32 1.442695, %v3516_v10  ;;  %4431 = vpow2.f32 %v3454_v32  ;;  %v3452_v63 = vsub.f32 %v5651_v2, %v5796_v55  ;;  %v3481_v4 = vmul.f32 1.442695, %v3478_v20 }
 0x2f0   : > { %4433 = vpow2.f32 %v3463_v13  ;;  %v3461_v46 = vsub.f32 %v5612_v45, %v5796_v55  ;;  %v3490_v35 = vmul.f32 1.442695, %v3487_v59  ;;  %v3505_v19 = vsub.f32 %v5744_v52, %v5775_v34 }
 0x2f1   : > { %4435 = vpow2.f32 %v3512_v17  ;;  %v3499_v53 = vmul.f32 1.442695, %v3496_v61  ;;  %v3470_v38 = vsub.f32 %v5633_v57, %v5796_v55  ;;  %v3514_v2 = vsub.f32 %v5750_v40, %v5775_v34 }
 0x2f2   : > { %4437 = vpow2.f32 %v3472_v30  ;;  %v3456_v3 = vmul.f32 1.442695, %v3452_v63  ;;  %v3465_v45 = vmul.f32 1.442695, %v3461_v46  ;;  %v3479_v26 = vsub.f32 %v5643_v9, %v5796_v55 }
 0x2f3   : > { %4439 = vpow2.f32 %v3521_v43  ;;  %v3523_v52 = vsub.f32 %v5759_v62, %v5775_v34  ;;  %v3508_v48 = vmul.f32 1.442695, %v3505_v19  ;;  %v3474_v40 = vmul.f32 1.442695, %v3470_v38 }
 0x2f4   : > { %4441 = vpow2.f32 %v3481_v4  ;;  %v3488_v58 = vsub.f32 %v5754_v15, %v5796_v55  ;;  %v3517_v60 = vmul.f32 1.442695, %v3514_v2  ;;  %v3483_v62 = vmul.f32 1.442695, %v3479_v26 }
 0x2f5   : > { %v5813_v37 = vpop.eup %4417  ;;  %4443 = vpow2.f32 %v3490_v35  ;;  %v3497_v8 = vsub.f32 %v5763_v7, %v5796_v55  ;;  %v3526_v21 = vmul.f32 1.442695, %v3523_v52  ;;  %v3506_v5 = vsub.f32 %v5772_v29, %v5796_v55 }
 0x2f6   : > { %v5817_v14 = vpop.eup %4419  ;;  %4445 = vpow2.f32 %v3499_v53  ;;  %v3492_v15 = vmul.f32 1.442695, %v3488_v58  ;;  %v3515_v47 = vsub.f32 %v5779_v51, %v5796_v55  ;;  %v3524_v56 = vsub.f32 %v5785_v0, %v5796_v55 }
 0x2f7   : > { %v3534_v57 = vadd.f32 %v5817_v14, %v5813_v37  ;;  %v5825_v11 = vpop.eup %4421  ;;  %4447 = vpow2.f32 %v3456_v3  ;;  %v3501_v7 = vmul.f32 1.442695, %v3497_v8  ;;  %v3510_v49 = vmul.f32 1.442695, %v3506_v5 }
 0x2f8   : > { %v5830_v9 = vpop.eup %4423  ;;  %4449 = vpow2.f32 %v3465_v45  ;;  %v3519_v51 = vmul.f32 1.442695, %v3515_v47  ;;  %v3528_v39 = vmul.f32 1.442695, %v3524_v56 }
 0x2f9   : > { %v3537_v16 = vadd.f32 %v5825_v11, %v3534_v57  ;;  %v5834_v25 = vpop.eup %4425  ;;  %4451 = vpow2.f32 %v3508_v48 }
 0x2fa   : > { %v5837_v33 = vpop.eup %4427  ;;  %4453 = vpow2.f32 %v3474_v40 }
 0x2fb   : > { %v3540_v6 = vadd.f32 %v5830_v9, %v3537_v16  ;;  %v4430_v24 = vpop.eup %4429  ;;  %4455 = vpow2.f32 %v3517_v60 }
 0x2fc   : > { %v5842_v42 = vpop.eup %4431  ;;  %4457 = vpow2.f32 %v3483_v62 }
 0x2fd   : > { %v3543_v34 = vadd.f32 %v5837_v33, %v3540_v6  ;;  %v5846_v12 = vpop.eup %4433  ;;  %4459 = vpow2.f32 %v3526_v21 }
 0x2fe   : > { %v4436_v44 = vpop.eup %4435  ;;  %v3532_v29 = vadd.f32 %v5846_v12, %v5842_v42  ;;  %4461 = vpow2.f32 %v3492_v15 }
 0x2ff   : > { %v3546_v23 = vadd.f32 %v4430_v24, %v3543_v34  ;;  %v5852_v31 = vpop.eup %4437  ;;  %4463 = vpow2.f32 %v3501_v7  ;;  %v5911_v34 = vld [vmem:[%s4887_s30 + $0x8] sm:$0xf] }
 0x300   : > { %v4440_v54 = vpop.eup %4439  ;;  %v3535_v36 = vadd.f32 %v5852_v31, %v3532_v29  ;;  %4465 = vpow2.f32 %v3510_v49 }
 0x301   : > { %v3549_v27 = vadd.f32 %v4436_v44, %v3546_v23  ;;  %v4442_v22 = vpop.eup %4441  ;;  %4467 = vpow2.f32 %v3519_v51 }
 0x302   : > { %v4444_v18 = vpop.eup %4443  ;;  %v3538_v1 = vadd.f32 %v4442_v22, %v3535_v36  ;;  %v5925_v36 = vld [vmem:[%s4880_s22] sm:$0xff] }
 0x303   : > { %v3552_v41 = vadd.f32 %v4440_v54, %v3549_v27  ;;  %v5855_v0 = vpop.eup %4445  ;;  %v5921_v27 = vld [vmem:[%s4911_s16] sm:$0xff] }
 0x304   : > { %v5858_v55 = vpop.eup %4447  ;;  %v3541_v10 = vadd.f32 %v4444_v18, %v3538_v1 }
 0x305   : > { %v3555_v50 = vadd.f32 %v5834_v25, %v3552_v41  ;;  %v5860_v32 = vpop.eup %4449  ;;  %v5933_v41 = vld [vmem:[%s4887_s30] sm:$0xff] }
 0x306   : > { %v5862_v13 = vpop.eup %4451  ;;  %v3544_v20 = vadd.f32 %v5855_v0, %v3541_v10  ;;  %v3533_v17 = vadd.f32 %v5860_v32, %v5858_v55 }
 0x307   : > { %4469 = vrcp.f32 %v3555_v50  ;;  %v5867_v59 = vpop.eup %4453 }
 0x308   : > { %4471 = vpow2.f32 %v3528_v39  ;;  %v4456_v30 = vpop.eup %4455  ;;  %v3547_v61 = vadd.f32 %v5862_v13, %v3544_v20  ;;  %v3536_v43 = vadd.f32 %v5867_v59, %v3533_v17 }
 0x309   : > { %v5871_v63 = vpop.eup %4457 }
 0x30a   : > { %v4460_v4 = vpop.eup %4459  ;;  %v3550_v46 = vadd.f32 %v4456_v30, %v3547_v61  ;;  %v3539_v35 = vadd.f32 %v5871_v63, %v3536_v43  ;;  %v6185_v43 = vld [vmem:[#allocation22_spill] sm:$0xff] }
 0x30b   : > { %v4462_v19 = vpop.eup %4461 }
 0x30c   : > { %v3553_v53 = vadd.f32 %v4460_v4, %v3550_v46  ;;  %v3542_v38 = vadd.f32 %v4462_v19, %v3539_v35  ;;  %v5874_v2 = vpop.eup %4463  ;;  %v6186_v35 = vld [vmem:[#allocation24_spill] sm:$0xff] }
 0x30d   : > { %v5877_v45 = vpop.eup %4465 }
 0x30e   : > { %4473 = vrcp.f32 %v3553_v53  ;;  %v3545_v3 = vadd.f32 %v5874_v2, %v3542_v38  ;;  %v4468_v52 = vpop.eup %4467 }
 0x310   : > { %v3548_v26 = vadd.f32 %v5877_v45, %v3545_v3 }
 0x312   : > { %v3551_v48 = vadd.f32 %v4468_v52, %v3548_v26 }
 0x314   : > { %v4470_v57 = vpop.eup %4469 }
 0x315   : > { %v5880_v40 = vpop.eup %4471  ;;  %v5883_v58 = vmul.f32 %v4470_v57, %v5830_v9  ;;  %v5886_v16 = vmul.f32 %v4470_v57, %v5813_v37  ;;  %v3567_v60 = vmul.f32 %v4470_v57, %v5825_v11  ;;  %v5889_v62 = vmul.f32 %v4470_v57, %v4436_v44  ;;  %v5900_v11 = vld [vmem:[%s4911_s16 + $0x8] sm:$0xf]  ;;  %s6187_s16 = sld [smem:[#allocation41_spill]] }
 0x316   : > { %v3576_v8 = vmul.f32 %v4470_v57, %v4430_v24  ;;  %v3554_v21 = vadd.f32 %v5880_v40, %v3551_v48  ;;  %v3585_v6 = vmul.f32 %v4470_v57, %v5834_v25  ;;  %v3564_v15 = vmul.f32 %v4470_v57, %v5817_v14  ;;  %v5904_v24 = vld [vmem:[%s4880_s22 + $0x8] sm:$0xf] }
 0x317   : > { %3641 = vrot.lane.b32.xlu1 %v5883_v58, %s4664_s3  ;;  %3611 = vrot.lane.b32.xlu0 %v5886_v16, %s4664_s3  ;;  %v3573_v37 = vmul.f32 %v4470_v57, %v5837_v33  ;;  %v3582_v9 = vmul.f32 %v4470_v57, %v4440_v54 }
 0x318   : > { %4475 = vrcp.f32 %v3554_v21  ;;  %v3589_v5 = vmul.f32 %v5900_v11, %v3564_v15 }
 0x319   : > { %v3593_v25 = vmul.f32 %v5904_v24, %v3573_v37  ;;  %v3600_v33 = vmul.f32 %v5911_v34, %v3582_v9 }
 0x31b   : > { %3707 = vrot.lane.b32.xlu1 %v3567_v60, %s4663_s26  ;;  %3674 = vrot.lane.b32.xlu0 %v5889_v62, %s4664_s3  ;;  %v3596_v14 = vadd.f32 %v3593_v25, %v3589_v5  ;;  %v4474_v7 = vpop.eup %4473 }
 0x31c   : > { %v3568_v23 = vmul.f32 %v4474_v7, %v4442_v22  ;;  %v3562_v44 = vmul.f32 %v4474_v7, %v5846_v12  ;;  %v3571_v56 = vmul.f32 %v4474_v7, %v4444_v18  ;;  %v3580_v29 = vmul.f32 %v4474_v7, %v4456_v30  ;;  %v6184_v30 = vld [vmem:[#allocation23_spill] sm:$0xff] }
 0x31d   : > { %v5914_v47 = vadd.f32 %v3600_v33, %v3596_v14  ;;  %v3559_v49 = vmul.f32 %v4474_v7, %v5842_v42  ;;  %v5929_v22 = vmul.f32 %v4474_v7, %v5852_v31  ;;  %v3577_v39 = vmul.f32 %v4474_v7, %v5862_v13 }
 0x31e   : > { %v3587_v54 = vmul.f32 %v5921_v27, %v3562_v44  ;;  %v3591_v51 = vmul.f32 %v5925_v36, %v3571_v56  ;;  %v3598_v18 = vmul.f32 %v5933_v41, %v3580_v29  ;;  %v5941_v50 = vmul.f32 %v4474_v7, %v4460_v4 }
 0x31f   : > { %3737 = vrot.lane.b32.xlu0 %v3576_v8, %s4663_s26  ;;  %3637 = vrot.lane.b32.xlu1 %v3568_v23, %s4664_s3  ;;  %v3574_v17 = vmul.f32 %v4474_v7, %v5855_v0 }
 0x320   : > { %v3594_v12 = vadd.f32 %v3591_v51, %v3587_v54 }
 0x322   : > { %v5939_v1 = vadd.f32 %v3598_v18, %v3594_v12 }
 0x323   : > { %3607 = vrot.lane.b32.xlu0 %v3559_v49, %s4664_s3  ;;  %3703 = vrot.lane.b32.xlu1 %v5929_v22, %s4663_s26 }
 0x325   : > { %v4476_v42 = vpop.eup %4475 }
 0x326   : > { %v3563_v31 = vmul.f32 %v4476_v42, %v5860_v32  ;;  %v3572_v10 = vmul.f32 %v4476_v42, %v4462_v19  ;;  %v3581_v20 = vmul.f32 %v4476_v42, %v4468_v52  ;;  %v3560_v13 = vmul.f32 %v4476_v42, %v5858_v55 }
 0x327   : > { %3670 = vrot.lane.b32.xlu0 %v3577_v39, %s4664_s3  ;;  %3766 = vrot.lane.b32.xlu1 %v5941_v50, %s4663_s26  ;;  %v3569_v32 = vmul.f32 %v4476_v42, %v5871_v63  ;;  %v3578_v38 = vmul.f32 %v4476_v42, %v5877_v45  ;;  %v3566_v0 = vmul.f32 %v4476_v42, %v5867_v59 }
 0x328   : > { %v3588_v61 = vmul.f32 %v3563_v31, %v6184_v30  ;;  %v3592_v46 = vmul.f32 %v3572_v10, %v6185_v43  ;;  %v3599_v53 = vmul.f32 %v3581_v20, %v6186_v35  ;;  %v3575_v55 = vmul.f32 %v4476_v42, %v5874_v2 }
 0x329   : > { %v3584_v3 = vmul.f32 %v4476_v42, %v5880_v40 }
 0x32a   : > { %v3595_v4 = vadd.f32 %v3592_v46, %v3588_v61 }
 0x32b   : > { %3733 = vrot.lane.b32.xlu0 %v3574_v17, %s4663_s26  ;;  %3609 = vrot.lane.b32.xlu1 %v3560_v13, %s4664_s3 }
 0x32c   : > { %v5955_v19 = vadd.f32 %v3599_v53, %v3595_v4 }
 0x32f   : > { %3639 = vrot.lane.b32.xlu0 %v3569_v32, %s4664_s3  ;;  %3672 = vrot.lane.b32.xlu1 %v3578_v38, %s4664_s3 }
 0x333   : > { %3705 = vrot.lane.b32.xlu0 %v3566_v0, %s4663_s26  ;;  %3735 = vrot.lane.b32.xlu1 %v3575_v55, %s4663_s26 }
 0x337   : > { %3768 = vrot.lane.b32.xlu0 %v3584_v3, %s4663_s26  ;;  %3770 = vrot.lane.b32.xlu1 %v3585_v6, %s4663_s26 }
 0x389   : > { %v3642_v63 = vpop.permute.xlu1 %3641  ;;  %v3612_v45 = vpop.permute.xlu0 %3611 }
 0x38a   : > { %v3648_v15 = vsel %vm1253_vm4, %v3642_v63, %v5883_v58  ;;  %v3618_v40 = vsel %vm1253_vm4, %v3612_v45, %v5886_v16 }
 0x38b   : > { %v3660_v5 = vrot.slane %v3648_v15, %v5220_v28  ;;  %v3630_v58 = vrot.slane %v3618_v40, %v5220_v28 }
 0x38d   : > { %v3708_v26 = vpop.permute.xlu1 %3707  ;;  %v3675_v52 = vpop.permute.xlu0 %3674 }
 0x38e   : > { %v3681_v25 = vsel %vm1253_vm4, %v3675_v52, %v5889_v62 }
 0x38f   : > { %v3693_v51 = vrot.slane %v3681_v25, %v5220_v28 }
 0x391   : > { %v3738_v57 = vpop.permute.xlu0 %3737  ;;  %v3638_v48 = vpop.permute.xlu1 %3637 }
 0x395   : > { %v3608_v60 = vpop.permute.xlu0 %3607  ;;  %v3704_v59 = vpop.permute.xlu1 %3703 }
 0x396   : > { %v3714_v12 = vsel %vm1212_vm3, %v5929_v22, %v3704_v59 }
 0x399   : > { %v3671_v8 = vpop.permute.xlu0 %3670  ;;  %v3767_v2 = vpop.permute.xlu1 %3766 }
 0x39a   : > { %v3777_v40 = vsel %vm1212_vm3, %v5941_v50, %v3767_v2 }
 0x39d   : > { %v3734_v21 = vpop.permute.xlu0 %3733  ;;  %v3610_v37 = vpop.permute.xlu1 %3609 }
 0x39e   : > { %v3613_v6 = vsel %vm1249_vm5, %v3608_v60, %v3610_v37  ;;  %v3614_v9 = vsel %vm1249_vm5, %v3610_v37, %v3612_v45  ;;  %v3744_v33 = vsel %vm1212_vm3, %v3574_v17, %v3734_v21 }
 0x39f   : > { %v3622_v14 = vrot.slane %v3613_v6, %v5220_v28  ;;  %v3626_v23 = vrot.slane %v3614_v9, %v5220_v28  ;;  %v3748_v18 = vrot.slane %v3744_v33, %v5220_v28  ;;  %v3633_v33 = vmul.f32 %v5900_v11, %v3630_v58 }
 0x3a1   : > { %v3640_v7 = vpop.permute.xlu0 %3639  ;;  %v3673_v44 = vpop.permute.xlu1 %3672  ;;  %v3631_v39 = vmul.f32 %v5921_v27, %v3622_v14  ;;  %v3632_v61 = vmul.f32 %v3626_v23, %v6184_v30  ;;  %v3781_v23 = vrot.slane %v3777_v40, %v5220_v28 }
 0x3a2   : > { %v3643_v16 = vsel %vm1249_vm5, %v3638_v48, %v3640_v7  ;;  %v3644_v56 = vsel %vm1249_vm5, %v3640_v7, %v3642_v63  ;;  %v3676_v29 = vsel %vm1249_vm5, %v3671_v8, %v3673_v44  ;;  %v3677_v49 = vsel %vm1249_vm5, %v3673_v44, %v3675_v52 }
 0x3a3   : > { %v3652_v62 = vrot.slane %v3643_v16, %v5220_v28  ;;  %v3656_v54 = vrot.slane %v3644_v56, %v5220_v28  ;;  %v3689_v42 = vrot.slane %v3677_v49, %v5220_v28  ;;  %v3685_v31 = vrot.slane %v3676_v29, %v5220_v28 }
 0x3a4   : > { %v3718_v52 = vrot.slane %v3714_v12, %v5220_v28  ;;  %v3696_v16 = vmul.f32 %v5911_v34, %v3693_v51 }
 0x3a5   : > { %v3661_v10 = vmul.f32 %v5925_v36, %v3652_v62  ;;  %v3662_v20 = vmul.f32 %v3656_v54, %v6185_v43  ;;  %v3706_v17 = vpop.permute.xlu0 %3705  ;;  %v3695_v46 = vmul.f32 %v3689_v42, %v6186_v35  ;;  %v3736_v13 = vpop.permute.xlu1 %3735  ;;  %v3694_v48 = vmul.f32 %v5933_v41, %v3685_v31 }
 0x3a6   : > { %v3709_v22 = vsel %vm1212_vm3, %v3704_v59, %v3706_v17  ;;  %v3710_v4 = vsel %vm1212_vm3, %v3706_v17, %v3708_v26  ;;  %v3739_v53 = vsel %vm1212_vm3, %v3734_v21, %v3736_v13  ;;  %v3740_v32 = vsel %vm1212_vm3, %v3736_v13, %v3738_v57 }
 0x3a7   : > { %v3722_v38 = vrot.slane %v3709_v22, %v5220_v28  ;;  %v3726_v0 = vrot.slane %v3710_v4, %v5220_v28  ;;  %v3752_v55 = vrot.slane %v3739_v53, %v5220_v28  ;;  %v3756_v3 = vrot.slane %v3740_v32, %v5220_v28 }
 0x3a8   : > { %v3665_v63 = vadd.f32 %v3662_v20, %v3632_v61  ;;  %v3664_v45 = vadd.f32 %v3661_v10, %v3631_v39 }
 0x3a9   : > { %v3728_v26 = vmul.f32 %v3722_v38, %v6184_v30  ;;  %v3729_v60 = vmul.f32 %v5900_v11, %v3726_v0  ;;  %v3769_v59 = vpop.permute.xlu0 %3768  ;;  %v3758_v57 = vmul.f32 %v3752_v55, %v6185_v43  ;;  %v3759_v8 = vmul.f32 %v5904_v24, %v3756_v3  ;;  %v3771_v21 = vpop.permute.xlu1 %3770 }
 0x3aa   : > { %v3772_v15 = vsel %vm1212_vm3, %v3767_v2, %v3769_v59  ;;  %v3698_v37 = vadd.f32 %v3695_v46, %v3665_v63  ;;  %v3773_v6 = vsel %vm1212_vm3, %v3769_v59, %v3771_v21  ;;  %v3697_v25 = vadd.f32 %v3694_v48, %v3664_v45  ;;  %v715_v46 = vld [vmem:[%s6188_s28] sm:$0xff] }
 0x3ab   : > { %v3785_v9 = vrot.slane %v3772_v15, %v5220_v28  ;;  %v3757_v30 = vmul.f32 %v5925_v36, %v3748_v18  ;;  %v3789_v14 = vrot.slane %v3773_v6, %v5220_v28  ;;  %v3663_v43 = vmul.f32 %v5904_v24, %v3660_v5  ;;  %v716_v28 = vld [vmem:[%s6187_s16] sm:$0xff] }
 0x3ac   : > { %3801 = vrot.lane.b32.xlu1 %v3698_v37, %s4663_s26  ;;  %3799 = vrot.lane.b32.xlu0 %v3697_v25, %s4663_s26  ;;  %v3761_v50 = vadd.f32 %v3758_v57, %v3728_v26  ;;  %v3727_v2 = vmul.f32 %v5921_v27, %v3718_v52  ;;  %v3762_v36 = vadd.f32 %v3759_v8, %v3729_v60 }
 0x3ad   : > { %v3791_v7 = vmul.f32 %v3785_v9, %v6186_v35  ;;  %v3792_v44 = vmul.f32 %v5911_v34, %v3789_v14  ;;  %v3666_v11 = vadd.f32 %v3663_v43, %v3633_v33  ;;  %v3790_v24 = vmul.f32 %v5933_v41, %v3781_v23 }
 0x3ae   : > { %v3760_v49 = vadd.f32 %v3757_v30, %v3727_v2 }
 0x3af   : > { %v3794_v56 = vadd.f32 %v3791_v7, %v3761_v50  ;;  %v3795_v29 = vadd.f32 %v3792_v44, %v3762_v36  ;;  %v3699_v35 = vadd.f32 %v3696_v16, %v3666_v11 }
 0x3b0   : > { %v3793_v5 = vadd.f32 %v3790_v24, %v3760_v49 }
 0x3b1   : > { %3819 = vrot.lane.b32.xlu0 %v3794_v56, %s4664_s3  ;;  %3821 = vrot.lane.b32.xlu1 %v3795_v29, %s4664_s3 }
 0x3b5   : > { %3803 = vrot.lane.b32.xlu0 %v3699_v35, %s4663_s26  ;;  %3817 = vrot.lane.b32.xlu1 %v3793_v5, %s4664_s3 }
 0x3b9   : > { %3834 = vperm.xlu0 %4412, %v716_v28  }
 0x41e   : > { %v3802_v34 = vpop.permute.xlu1 %3801  ;;  %v3800_v27 = vpop.permute.xlu0 %3799 }
 0x41f   : > { %v3805_v58 = vsel %vm1212_vm3, %v3800_v27, %v3802_v34  ;;  %v3810_v51 = vsel %vm1212_vm3, %v3697_v25, %v3800_v27 }
 0x420   : > { %v3812_v41 = vadd.f32 %v3805_v58, %v5955_v19  ;;  %v3811_v39 = vadd.f32 %v3810_v51, %v5939_v1 }
 0x423   : > { %v3820_v62 = vpop.permute.xlu0 %3819  ;;  %v3822_v54 = vpop.permute.xlu1 %3821 }
 0x424   : > { %v3824_v12 = vsel %vm1249_vm5, %v3820_v62, %v3822_v54  ;;  %v3828_v17 = vsel %vm1253_vm4, %v3822_v54, %v3795_v29 }
 0x425   : > { %v3830_v18 = vadd.f32 %v3824_v12, %v3812_v41 }
 0x427   : > { %v3804_v42 = vpop.permute.xlu0 %3803  ;;  %v3818_v31 = vpop.permute.xlu1 %3817  ;;  %4220 = vmatprep.subr.msk.mxu0 %vm724_vm1, %v3830_v18 }
 0x428   : > { %v3806_v10 = vsel %vm1212_vm3, %v3802_v34, %v3804_v42  ;;  %v3823_v20 = vsel %vm1249_vm5, %v3818_v31, %v3820_v62 }
 0x429   : > { %v3813_v19 = vadd.f32 %v3806_v10, %v5914_v47  ;;  %v3829_v61 = vadd.f32 %v3823_v20, %v3811_v39 }
 0x42b   : > { %v3831_v13 = vadd.f32 %v3828_v17, %v3813_v19  ;;  %4221 = vmatpush1.msk.msra.mxu0 %vm724_vm1, %v3829_v61 }
 0x42c   : > { %4222 = vmatmul.mubr.msk.f32.vlgmr.msra.gmra.mxu0 %vm720_vm2, %v715_v46 }
 0x42d   : > { %4315 = vmatpush3.msk.msra.mxu1 %vm724_vm1, %v3831_v13 }
 0x42e   : > { %4317 = vmatmul.mubr.msk.f32.vlgmr.msra.gmra.mxu1 %vm720_vm2, %v715_v46 }
 0x434   : > { %v3835_v1 = vpop.permute.xlu0 %3834 }
 0x4ec   : > { %v3915_v47 = vpop.f32.mrf.mxu0 }
 0x4ed   : > { %v3916_v22 = vadd.f32 %v3915_v47, %v3835_v1 }
 0x4ee   : > { %v3986_v4 = vpop.f32.mrf.mxu1  ;;  %v3917_v53 = vpop.f32.mrf.mxu0 }
 0x4ef   : > { %v3987_v32 = vadd.f32 %v3986_v4, %v3835_v1  ;;  %3990 = vst [vmem:[%s674_s20] sm:$0xff] %v3916_v22  ;;  %v3918_v38 = vadd.f32 %v3917_v53, %v3835_v1 }
 0x4f0   : > { %v4318_v0 = vpop.f32.mrf.mxu1 }
 0x4f1   : > { %3993 = vst.msk [vmem:[%s674_s20 + $0x10] sm:$0xff] %vm3992_vm9, %v3987_v32  ;;  %3991 = vst [vmem:[%s674_s20 + $0x8] sm:$0xff] %v3918_v38 }
 0x4f2   : > { %4578 = shalt.err (!%p4575_p12)
}
 0x4f3   : > { %s4579_s22 = scalar_lea.hbm %s6057_s18, 384  ;;  %s4583_s16 = scalar_lea.hbm %s6190_s23, 768 }
 0x4f4   : > { %p4580_p9 = scmp.ne.s32.totalorder %s6057_s18, %s4579_s22  ;;  %p4584_p5 = scmp.lt.s32.totalorder %s6057_s18, %s6190_s23 }
 0x4f5   : > { %p4585_p8 = scmp.lt.s32.totalorder %s4583_s16, %s4579_s22 }
 0x4f6   : > { %p4581_p13 = pnand %p4580_p9, %p4838_p0 }
 0x4f7   : > { %p4586_p1 = por %p4585_p8, %p4584_p5 }
 0x4f8   : > { %p4582_p3 = pneg %p4581_p13 }
 0x4fa   : > { %p4587_p4 = pnand %p4586_p1, %p4582_p3 }
 0x4fc   : > { %4590 = shalt.err (!%p4587_p4)
}
 0x4fd   : > { %4335 = dma.vmem_to_hbm [thread:$0]  (%p4838_p0), %s4012_s21, 384, %s6057_s18, %s3995_s29  }
 0x4fe PF: > { %s6191_s28 = sld [smem:[#allocation14_spill]] }
 0x4ff   : > { %s6192_s19 = sld [smem:[#allocation18_spill]] }
 0x500   : > { %s6193_s14 = sld [smem:[#allocation17_spill]] }
 0x504   : > { %s4023_s20 = sand.u32 1, %s6191_s28  }
 0x505   : > { %p6194_p11 = scmp.ne.s32.totalorder %s6192_s19, 0  ;;  %s4024_s8 = scalar_lea.sflag [#allocation5], %s4023_s20 }
 0x507   : > { %p4349_p7 = pnand %p4154_p10, %p6194_p11 }
 0x509   : > { %p4350_p2 = pneg %p4349_p7 }
 0x50b   : > { %4628 = dma.done.wait (%p4350_p2), %s4024_s8, 384  }
 0x50c   : > { %4630 = vsyncadd (%p4350_p2), %s4024_s8, 4294966912  ;;  %s38_s30 = sadd.s32 1, %s6193_s14   ;;  %s6195_s12 = sld [smem:[#allocation15_spill]] }
 0x50d   : > { %p35_p6 = scmp.ge.s32.totalorder %s38_s30, 4   ;;  %s6196_s28 = sld [smem:[#allocation21_spill]] }
 0x50e   : > { %s6197_s29 = sld [smem:[#allocation16_spill]]  ;;  %s6199_s26 = smov %s4637_s27 }
 0x50f   : > { %s6198_s0 = sld [smem:[#allocation19_spill]]  ;;  %37 = sbr.rel (!%p35_p6) target bundleno = 17 (0x11), region = 154 }
 0x512   : > { %s6200_s27 = smov %s6195_s12 }
 0x514   :  { %4029 = vsyncpa [#allocation4], 1 }
 0x515   :  { %4031 = vsyncpa [#allocation4 + $0x1], 1 }
 0x516   :  { %4032 = vsyncpa [#allocation7], 1 }
 0x517   :  { %4034 = vsyncpa [#allocation7 + $0x1], 1 }
 0x518   :  { %4035 = vsyncpa [#allocation5], 1 }
 0x519   :  { %4037 = vsyncpa [#allocation5 + $0x1], 1 }

</bundles_post_ra>
